<compile_context>
chip_gen: v7x
topology: tpu7x:2x2x1
jax: 0.10.0
libtpu: 0.0.40
codegen_flags: <defaults>
</compile_context>

<pallas_src>
import functools
import math

import jax
import jax.numpy as jnp
import numpy as np
from jax import lax
from jax.experimental import pallas as pl
from jax.experimental.pallas import tpu as pltpu

LEAKY_SLOPE = 0.01


# ----------------------------------------------------------------------------
# Fused Pallas kernel: whole SmallNatureEncoder3D forward, one batch element
# per grid step. All operands and intermediates are VMEM-resident.
# ----------------------------------------------------------------------------
def _encoder3d_kernel(p1_ref, w1_ref, b1_ref,
                      s2_ref, w2_ref, b2_ref,
                      s3_ref, w3_ref, b3_ref,
                      perm_ref,
                      s5_ref, m1_ref, bb1_ref, m2_ref, bb2_ref,
                      out_ref, *, n2, n3, n5):
    def dot(a, b):
        return jnp.dot(a, b, preferred_element_type=jnp.float32)

    def gathered_conv(y, s_ref, w_ref, b_ref, n_off):
        # sum_o (S_o @ y) @ W_o + b  ==  conv via im2col, never materialized.
        acc = None
        for o in range(n_off):
            t = dot(dot(s_ref[o], y), w_ref[o])
            acc = t if acc is None else acc + t
        return acc + b_ref[...]

    # --- Conv2d(1, 32, k=8, s=4) + ReLU  (patches precomputed in glue) ------
    y = dot(p1_ref[0], w1_ref[...]) + b1_ref[...]
    y = jnp.maximum(y, 0.0)                                   # (H1*W1, 32)
    # --- Conv2d(32, 64, k=4, s=2) + ReLU -------------------------------------
    y = jnp.maximum(gathered_conv(y, s2_ref, w2_ref, b2_ref, n2), 0.0)
    # --- Conv2d(64, 96, k=3, s=1) + ReLU -------------------------------------
    y = jnp.maximum(gathered_conv(y, s3_ref, w3_ref, b3_ref, n3), 0.0)
    # --- reshape C=96 -> (depth, per_depth_channel): column permutation ------
    z = dot(y, perm_ref[...])                                 # (H3*W3, depth*pdc)
    # --- ConvTranspose3d #1 (depth folded into lanes) + LeakyReLU ------------
    z = gathered_conv(z, s5_ref, m1_ref, bb1_ref, n5)
    z = jnp.where(z >= 0.0, z, LEAKY_SLOPE * z)
    # --- ConvTranspose3d #2 + LeakyReLU --------------------------------------
    z = gathered_conv(z, s5_ref, m2_ref, bb2_ref, n5)
    z = jnp.where(z >= 0.0, z, LEAKY_SLOPE * z)

    out_ref[0] = z.astype(out_ref.dtype)                      # (H3*W3, depth*16)


def _const_spec(arr):
    shape = tuple(arr.shape)
    return pl.BlockSpec(shape, lambda b, n=len(shape): (0,) * n)


def fused_forward_2d_to_3d(patches1, plan):
    """patches1: (B, H1*W1, 64) layer-1 im2col rows. Returns (B, H3*W3, depth*16)."""
    B, m_rows, k1 = patches1.shape
    hw3 = plan["s3"].shape[1]          # H3 * W3
    dc = plan["m1"].shape[2]           # depth * 16
    kernel = functools.partial(
        _encoder3d_kernel,
        n2=plan["s2"].shape[0], n3=plan["s3"].shape[0], n5=plan["s5"].shape[0])
    args = (patches1, plan["w1m"], plan["b1"],
            plan["s2"], plan["w2"], plan["b2"],
            plan["s3"], plan["w3"], plan["b3"],
            plan["perm"],
            plan["s5"], plan["m1"], plan["bb1"], plan["m2"], plan["bb2"])
    in_specs = [pl.BlockSpec((1, m_rows, k1), lambda b: (b, 0, 0))]
    in_specs += [_const_spec(a) for a in args[1:]]
    return pl.pallas_call(
        kernel,
        out_shape=jax.ShapeDtypeStruct((B, hw3, dc), jnp.float32),
        grid=(B,),
        in_specs=in_specs,
        out_specs=pl.BlockSpec((1, hw3, dc), lambda b: (b, 0, 0)),
        compiler_params=pltpu.CompilerParams(
            dimension_semantics=("parallel",)),
    )(*args)


# ----------------------------------------------------------------------------
# Glue: layer-1 patch extraction (single XLA conv op) + final NCDHW transpose.
# ----------------------------------------------------------------------------
@functools.partial(jax.jit, static_argnames=("depth",))
def small_nature_encoder3d(plan, img, depth=6):
    B, C, H, W = img.shape
    assert C == 1
    x = img.reshape(B, H, W, 1)                                # NCHW -> NHWC (C==1)
    patches = lax.conv_general_dilated_patches(
        x, filter_shape=(8, 8), window_strides=(4, 4), padding="VALID",
        dimension_numbers=("NHWC", "HWIO", "NHWC"))            # (B, H1, W1, 64)
    _, H1, W1, K1 = patches.shape
    patches = patches.reshape(B, H1 * W1, K1)

    out2d = fused_forward_2d_to_3d(patches, plan)              # (B, H3*W3, depth*16)

    H2, W2 = (H1 - 4) // 2 + 1, (W1 - 4) // 2 + 1
    H3, W3 = H2 - 2, W2 - 2
    out = out2d.reshape(B, H3, W3, depth, 16)                  # cols are (d, c)
    return jnp.transpose(out, (0, 4, 3, 1, 2))                 # (B, 16, depth, H3, W3)


# ----------------------------------------------------------------------------
# Parameter init + one-time "plan" (matmul-form weights & selection matrices)
# ----------------------------------------------------------------------------
def xavier_uniform(key, shape):
    fan_in = int(np.prod(shape[1:]))
    fan_out = int(shape[0] * np.prod(shape[2:]))
    a = math.sqrt(6.0 / (fan_in + fan_out))
    return jax.random.uniform(key, shape, jnp.float32, -a, a)


def init_params(key, depth=6):
    pdc = 6 * 16 // depth
    ks = jax.random.split(key, 5)
    return {
        "w1": xavier_uniform(ks[0], (32, 1, 8, 8)),   "b1": jnp.zeros((32,), jnp.float32),
        "w2": xavier_uniform(ks[1], (64, 32, 4, 4)),  "b2": jnp.zeros((64,), jnp.float32),
        "w3": xavier_uniform(ks[2], (96, 64, 3, 3)),  "b3": jnp.zeros((96,), jnp.float32),
        "wt1": xavier_uniform(ks[3], (pdc, 16, 3, 3, 3)), "bt1": jnp.zeros((16,), jnp.float32),
        "wt2": xavier_uniform(ks[4], (16, 16, 3, 3, 3)),  "bt2": jnp.zeros((16,), jnp.float32),
    }


def build_plan(params, H, W, depth=6):
    pdc = 6 * 16 // depth
    H1, W1 = (H - 8) // 4 + 1, (W - 8) // 4 + 1
    H2, W2 = (H1 - 4) // 2 + 1, (W1 - 4) // 2 + 1
    H3, W3 = H2 - 2, W2 - 2

    # Conv2d weights in matmul form (K ordering matches the selection gathers).
    w1m = jnp.reshape(params["w1"], (32, 64)).T                       # (64, 32)
    w2o = jnp.transpose(params["w2"], (2, 3, 1, 0)).reshape(16, 32, 64)
    w3o = jnp.transpose(params["w3"], (2, 3, 1, 0)).reshape(9, 64, 96)
    b1 = params["b1"].reshape(1, 32)
    b2 = params["b2"].reshape(1, 64)
    b3 = params["b3"].reshape(1, 96)

    # Static 0/1 row-selection matrices for the strided VALID 2D convs.
    def sel_2d(kh, kw, stride, hi, wi, ho, wo):
        s = np.zeros((kh * kw, ho * wo, hi * wi), np.float32)
        for i in range(kh):
            for j in range(kw):
                o = i * kw + j
                for p in range(ho):
                    for q in range(wo):
                        s[o, p * wo + q, (stride * p + i) * wi + (stride * q + j)] = 1.0
        return s

    s2 = sel_2d(4, 4, 2, H1, W1, H2, W2)          # (16, H2*W2, H1*W1)
    s3 = sel_2d(3, 3, 1, H2, W2, H3, W3)          # (9,  H3*W3, H2*W2)

    # C=96 -> (depth, per_depth_channel) column permutation (the .reshape()).
    perm = np.zeros((96, depth * pdc), np.float32)
    for pc in range(pdc):
        for d in range(depth):
            perm[pc * depth + d, d * pdc + pc] = 1.0

    # 'same' 3x3 spatial selection with zero-padded borders (for both 3D convs).
    s5 = np.zeros((9, H3 * W3, H3 * W3), np.float32)
    for oh in range(3):
        for ow in range(3):
            o = oh * 3 + ow
            for h in range(H3):
                for w in range(W3):
                    hh, ww = h + oh - 1, w + ow - 1
                    if 0 <= hh < H3 and 0 <= ww < W3:
                        s5[o, h * W3 + w, hh * W3 + ww] = 1.0

    # ConvTranspose3d(k=3,s=1,p=1) folded over depth: for each spatial offset,
    # a banded (depth*Cin, depth*Cout) matrix built from the flipped,
    # channel-transposed weight ("same"-conv equivalence).
    def fold_ct3d(wt):
        wt = np.asarray(wt)                        # (Cin, Cout, 3, 3, 3)
        cin, cout = wt.shape[0], wt.shape[1]
        m = np.zeros((9, depth * cin, depth * cout), np.float32)
        for oh in range(3):
            for ow in range(3):
                o = oh * 3 + ow
                for dout in range(depth):
                    for od in range(3):
                        din = dout + od - 1
                        if 0 <= din < depth:
                            m[o, din * cin:(din + 1) * cin,
                                 dout * cout:(dout + 1) * cout] = \
                                wt[:, :, 2 - od, 2 - oh, 2 - ow]
        return m

    m1 = fold_ct3d(params["wt1"])
    m2 = fold_ct3d(params["wt2"])
    bb1 = jnp.tile(params["bt1"], depth).reshape(1, depth * 16)
    bb2 = jnp.tile(params["bt2"], depth).reshape(1, depth * 16)

    return {
        "w1m": w1m, "b1": b1,
        "s2": jnp.asarray(s2), "w2": w2o, "b2": b2,
        "s3": jnp.asarray(s3), "w3": w3o, "b3": b3,
        "perm": jnp.asarray(perm),
        "s5": jnp.asarray(s5), "m1": jnp.asarray(m1), "bb1": bb1,
        "m2": jnp.asarray(m2), "bb2": bb2,
    }


# ----------------------------------------------------------------------------
# Pure-XLA reference (for a correctness cross-check)
# ----------------------------------------------------------------------------
def reference_forward(params, img, depth=6):
    pdc = 6 * 16 // depth
    dn2 = ("NCHW", "OIHW", "NCHW")
    z = lax.conv_general_dilated(img, params["w1"], (4, 4), "VALID",
                                 dimension_numbers=dn2) + params["b1"][None, :, None, None]
    z = jnp.maximum(z, 0.0)
    z = lax.conv_general_dilated(z, params["w2"], (2, 2), "VALID",
                                 dimension_numbers=dn2) + params["b2"][None, :, None, None]
    z = jnp.maximum(z, 0.0)
    z = lax.conv_general_dilated(z, params["w3"], (1, 1), "VALID",
                                 dimension_numbers=dn2) + params["b3"][None, :, None, None]
    z = jnp.maximum(z, 0.0)
    B, C, H, W = z.shape
    z = z.reshape(B, pdc, depth, H, W)

    dn3 = ("NCDHW", "OIDHW", "NCDHW")

    def conv_t(x, wt, b):
        w_conv = jnp.flip(wt, axis=(2, 3, 4)).transpose(1, 0, 2, 3, 4)
        y = lax.conv_general_dilated(x, w_conv, (1, 1, 1), [(1, 1)] * 3,
                                     dimension_numbers=dn3)
        return y + b[None, :, None, None, None]

    z = conv_t(z, params["wt1"], params["bt1"])
    z = jnp.where(z >= 0, z, LEAKY_SLOPE * z)
    z = conv_t(z, params["wt2"], params["bt2"])
    z = jnp.where(z >= 0, z, LEAKY_SLOPE * z)
    return z


if __name__ == "__main__":
    key = jax.random.PRNGKey(0)
    k_img, k_par = jax.random.split(key)

    depth = 6
    img = jax.random.normal(k_img, (2, 1, 64, 64), jnp.float32)
    params = init_params(k_par, depth=depth)
    plan = build_plan(params, H=64, W=64, depth=depth)

    out = small_nature_encoder3d(plan, img, depth=depth)
    out = jax.block_until_ready(out)

    assert out.shape == (2, 16, depth, 4, 4), out.shape
    assert out.dtype == jnp.float32
    assert bool(jnp.all(jnp.isfinite(out)))

    # Cross-check the fused Pallas forward against the plain-XLA reference.
    ref = jax.block_until_ready(reference_forward(params, img, depth=depth))
    max_err = float(jnp.max(jnp.abs(out - ref)))
    assert max_err < 5e-3, f"mismatch vs reference: {max_err}"

    print("KERNEL_OK")
</pallas_src>

<mosaic_0001>
module attributes {stable_mosaic.version = 11 : i64} {
  func.func @_encoder3d_kernel(%arg0: i32, %arg1: memref<1x225x64xf32, #tpu.memory_space<vmem>>, %arg2: memref<64x32xf32, #tpu.memory_space<vmem>>, %arg3: memref<1x32xf32, #tpu.memory_space<vmem>>, %arg4: memref<16x36x225xf32, #tpu.memory_space<vmem>>, %arg5: memref<16x32x64xf32, #tpu.memory_space<vmem>>, %arg6: memref<1x64xf32, #tpu.memory_space<vmem>>, %arg7: memref<9x16x36xf32, #tpu.memory_space<vmem>>, %arg8: memref<9x64x96xf32, #tpu.memory_space<vmem>>, %arg9: memref<1x96xf32, #tpu.memory_space<vmem>>, %arg10: memref<96x96xf32, #tpu.memory_space<vmem>>, %arg11: memref<9x16x16xf32, #tpu.memory_space<vmem>>, %arg12: memref<9x96x96xf32, #tpu.memory_space<vmem>>, %arg13: memref<1x96xf32, #tpu.memory_space<vmem>>, %arg14: memref<9x96x96xf32, #tpu.memory_space<vmem>>, %arg15: memref<1x96xf32, #tpu.memory_space<vmem>>, %arg16: memref<1x16x96xf32, #tpu.memory_space<vmem>>) attributes {dimension_semantics = [#tpu.dimension_semantics<parallel>], iteration_bounds = array<i64: 2>, scalar_prefetch = 0 : i64, scratch_operands = 0 : i64, tpu.core_type = #tpu.core_type<tc>, window_params = [{transform_indices = @transform_0, window_bounds = array<i64: 1, 225, 64>}, {pipeline_mode = #tpu.pipeline_mode<synchronous>, transform_indices = @transform_1, window_bounds = array<i64: 64, 32>}, {pipeline_mode = #tpu.pipeline_mode<synchronous>, transform_indices = @transform_2, window_bounds = array<i64: 1, 32>}, {pipeline_mode = #tpu.pipeline_mode<synchronous>, transform_indices = @transform_3, window_bounds = array<i64: 16, 36, 225>}, {pipeline_mode = #tpu.pipeline_mode<synchronous>, transform_indices = @transform_4, window_bounds = array<i64: 16, 32, 64>}, {pipeline_mode = #tpu.pipeline_mode<synchronous>, transform_indices = @transform_5, window_bounds = array<i64: 1, 64>}, {pipeline_mode = #tpu.pipeline_mode<synchronous>, transform_indices = @transform_6, window_bounds = array<i64: 9, 16, 36>}, {pipeline_mode = #tpu.pipeline_mode<synchronous>, transform_indices = @transform_7, window_bounds = array<i64: 9, 64, 96>}, {pipeline_mode = #tpu.pipeline_mode<synchronous>, transform_indices = @transform_8, window_bounds = array<i64: 1, 96>}, {pipeline_mode = #tpu.pipeline_mode<synchronous>, transform_indices = @transform_9, window_bounds = array<i64: 96, 96>}, {pipeline_mode = #tpu.pipeline_mode<synchronous>, transform_indices = @transform_10, window_bounds = array<i64: 9, 16, 16>}, {pipeline_mode = #tpu.pipeline_mode<synchronous>, transform_indices = @transform_11, window_bounds = array<i64: 9, 96, 96>}, {pipeline_mode = #tpu.pipeline_mode<synchronous>, transform_indices = @transform_12, window_bounds = array<i64: 1, 96>}, {pipeline_mode = #tpu.pipeline_mode<synchronous>, transform_indices = @transform_13, window_bounds = array<i64: 9, 96, 96>}, {pipeline_mode = #tpu.pipeline_mode<synchronous>, transform_indices = @transform_14, window_bounds = array<i64: 1, 96>}, {transform_indices = @transform_15, window_bounds = array<i64: 1, 16, 96>}]} {
    %c0 = arith.constant 0 : index
    %c0_0 = arith.constant 0 : index
    %c0_1 = arith.constant 0 : index
    %0 = vector.load %arg1[%c0, %c0_0, %c0_1] : memref<1x225x64xf32, #tpu.memory_space<vmem>>, vector<1x225x64xf32>
    %1 = vector.shape_cast %0 : vector<1x225x64xf32> to vector<225x64xf32>
    %c0_2 = arith.constant 0 : index
    %c0_3 = arith.constant 0 : index
    %2 = vector.load %arg2[%c0_2, %c0_3] : memref<64x32xf32, #tpu.memory_space<vmem>>, vector<64x32xf32>
    %cst = arith.constant dense<0.000000e+00> : vector<225x32xf32>
    %3 = tpu.matmul %1, %2, %cst {dimension_numbers = #tpu.dot_dimension_numbers<[1], [0], [0], [1], [0, 0, 1, 1], [], []>} : vector<225x64xf32>, vector<64x32xf32>, vector<225x32xf32> -> vector<225x32xf32>
    %c0_4 = arith.constant 0 : index
    %c0_5 = arith.constant 0 : index
    %4 = vector.load %arg3[%c0_4, %c0_5] : memref<1x32xf32, #tpu.memory_space<vmem>>, vector<1x32xf32>
    %5 = vector.broadcast %4 : vector<1x32xf32> to vector<225x32xf32>
    %6 = arith.addf %3, %5 : vector<225x32xf32>
    %cst_6 = arith.constant 0.000000e+00 : f32
    %7 = vector.broadcast %cst_6 : f32 to vector<225x32xf32>
    %8 = arith.maximumf %6, %7 : vector<225x32xf32>
    %c0_7 = arith.constant 0 : index
    %c0_8 = arith.constant 0 : index
    %c0_9 = arith.constant 0 : index
    %9 = vector.load %arg4[%c0_7, %c0_8, %c0_9] : memref<16x36x225xf32, #tpu.memory_space<vmem>>, vector<1x36x225xf32>
    %10 = vector.shape_cast %9 : vector<1x36x225xf32> to vector<36x225xf32>
    %cst_10 = arith.constant dense<0.000000e+00> : vector<36x32xf32>
    %11 = tpu.matmul %10, %8, %cst_10 {dimension_numbers = #tpu.dot_dimension_numbers<[1], [0], [0], [1], [0, 0, 1, 1], [], []>} : vector<36x225xf32>, vector<225x32xf32>, vector<36x32xf32> -> vector<36x32xf32>
    %c0_11 = arith.constant 0 : index
    %c0_12 = arith.constant 0 : index
    %c0_13 = arith.constant 0 : index
    %12 = vector.load %arg5[%c0_11, %c0_12, %c0_13] : memref<16x32x64xf32, #tpu.memory_space<vmem>>, vector<1x32x64xf32>
    %13 = vector.shape_cast %12 : vector<1x32x64xf32> to vector<32x64xf32>
    %cst_14 = arith.constant dense<0.000000e+00> : vector<36x64xf32>
    %14 = tpu.matmul %11, %13, %cst_14 {dimension_numbers = #tpu.dot_dimension_numbers<[1], [0], [0], [1], [0, 0, 1, 1], [], []>} : vector<36x32xf32>, vector<32x64xf32>, vector<36x64xf32> -> vector<36x64xf32>
    %c1 = arith.constant 1 : index
    %c0_15 = arith.constant 0 : index
    %c0_16 = arith.constant 0 : index
    %15 = vector.load %arg4[%c1, %c0_15, %c0_16] : memref<16x36x225xf32, #tpu.memory_space<vmem>>, vector<1x36x225xf32>
    %16 = vector.shape_cast %15 : vector<1x36x225xf32> to vector<36x225xf32>
    %cst_17 = arith.constant dense<0.000000e+00> : vector<36x32xf32>
    %17 = tpu.matmul %16, %8, %cst_17 {dimension_numbers = #tpu.dot_dimension_numbers<[1], [0], [0], [1], [0, 0, 1, 1], [], []>} : vector<36x225xf32>, vector<225x32xf32>, vector<36x32xf32> -> vector<36x32xf32>
    %c1_18 = arith.constant 1 : index
    %c0_19 = arith.constant 0 : index
    %c0_20 = arith.constant 0 : index
    %18 = vector.load %arg5[%c1_18, %c0_19, %c0_20] : memref<16x32x64xf32, #tpu.memory_space<vmem>>, vector<1x32x64xf32>
    %19 = vector.shape_cast %18 : vector<1x32x64xf32> to vector<32x64xf32>
    %cst_21 = arith.constant dense<0.000000e+00> : vector<36x64xf32>
    %20 = tpu.matmul %17, %19, %cst_21 {dimension_numbers = #tpu.dot_dimension_numbers<[1], [0], [0], [1], [0, 0, 1, 1], [], []>} : vector<36x32xf32>, vector<32x64xf32>, vector<36x64xf32> -> vector<36x64xf32>
    %21 = arith.addf %14, %20 : vector<36x64xf32>
    %c2 = arith.constant 2 : index
    %c0_22 = arith.constant 0 : index
    %c0_23 = arith.constant 0 : index
    %22 = vector.load %arg4[%c2, %c0_22, %c0_23] : memref<16x36x225xf32, #tpu.memory_space<vmem>>, vector<1x36x225xf32>
    %23 = vector.shape_cast %22 : vector<1x36x225xf32> to vector<36x225xf32>
    %cst_24 = arith.constant dense<0.000000e+00> : vector<36x32xf32>
    %24 = tpu.matmul %23, %8, %cst_24 {dimension_numbers = #tpu.dot_dimension_numbers<[1], [0], [0], [1], [0, 0, 1, 1], [], []>} : vector<36x225xf32>, vector<225x32xf32>, vector<36x32xf32> -> vector<36x32xf32>
    %c2_25 = arith.constant 2 : index
    %c0_26 = arith.constant 0 : index
    %c0_27 = arith.constant 0 : index
    %25 = vector.load %arg5[%c2_25, %c0_26, %c0_27] : memref<16x32x64xf32, #tpu.memory_space<vmem>>, vector<1x32x64xf32>
    %26 = vector.shape_cast %25 : vector<1x32x64xf32> to vector<32x64xf32>
    %cst_28 = arith.constant dense<0.000000e+00> : vector<36x64xf32>
    %27 = tpu.matmul %24, %26, %cst_28 {dimension_numbers = #tpu.dot_dimension_numbers<[1], [0], [0], [1], [0, 0, 1, 1], [], []>} : vector<36x32xf32>, vector<32x64xf32>, vector<36x64xf32> -> vector<36x64xf32>
    %28 = arith.addf %21, %27 : vector<36x64xf32>
    %c3 = arith.constant 3 : index
    %c0_29 = arith.constant 0 : index
    %c0_30 = arith.constant 0 : index
    %29 = vector.load %arg4[%c3, %c0_29, %c0_30] : memref<16x36x225xf32, #tpu.memory_space<vmem>>, vector<1x36x225xf32>
    %30 = vector.shape_cast %29 : vector<1x36x225xf32> to vector<36x225xf32>
    %cst_31 = arith.constant dense<0.000000e+00> : vector<36x32xf32>
    %31 = tpu.matmul %30, %8, %cst_31 {dimension_numbers = #tpu.dot_dimension_numbers<[1], [0], [0], [1], [0, 0, 1, 1], [], []>} : vector<36x225xf32>, vector<225x32xf32>, vector<36x32xf32> -> vector<36x32xf32>
    %c3_32 = arith.constant 3 : index
    %c0_33 = arith.constant 0 : index
    %c0_34 = arith.constant 0 : index
    %32 = vector.load %arg5[%c3_32, %c0_33, %c0_34] : memref<16x32x64xf32, #tpu.memory_space<vmem>>, vector<1x32x64xf32>
    %33 = vector.shape_cast %32 : vector<1x32x64xf32> to vector<32x64xf32>
    %cst_35 = arith.constant dense<0.000000e+00> : vector<36x64xf32>
    %34 = tpu.matmul %31, %33, %cst_35 {dimension_numbers = #tpu.dot_dimension_numbers<[1], [0], [0], [1], [0, 0, 1, 1], [], []>} : vector<36x32xf32>, vector<32x64xf32>, vector<36x64xf32> -> vector<36x64xf32>
    %35 = arith.addf %28, %34 : vector<36x64xf32>
    %c4 = arith.constant 4 : index
    %c0_36 = arith.constant 0 : index
    %c0_37 = arith.constant 0 : index
    %36 = vector.load %arg4[%c4, %c0_36, %c0_37] : memref<16x36x225xf32, #tpu.memory_space<vmem>>, vector<1x36x225xf32>
    %37 = vector.shape_cast %36 : vector<1x36x225xf32> to vector<36x225xf32>
    %cst_38 = arith.constant dense<0.000000e+00> : vector<36x32xf32>
    %38 = tpu.matmul %37, %8, %cst_38 {dimension_numbers = #tpu.dot_dimension_numbers<[1], [0], [0], [1], [0, 0, 1, 1], [], []>} : vector<36x225xf32>, vector<225x32xf32>, vector<36x32xf32> -> vector<36x32xf32>
    %c4_39 = arith.constant 4 : index
    %c0_40 = arith.constant 0 : index
    %c0_41 = arith.constant 0 : index
    %39 = vector.load %arg5[%c4_39, %c0_40, %c0_41] : memref<16x32x64xf32, #tpu.memory_space<vmem>>, vector<1x32x64xf32>
    %40 = vector.shape_cast %39 : vector<1x32x64xf32> to vector<32x64xf32>
    %cst_42 = arith.constant dense<0.000000e+00> : vector<36x64xf32>
    %41 = tpu.matmul %38, %40, %cst_42 {dimension_numbers = #tpu.dot_dimension_numbers<[1], [0], [0], [1], [0, 0, 1, 1], [], []>} : vector<36x32xf32>, vector<32x64xf32>, vector<36x64xf32> -> vector<36x64xf32>
    %42 = arith.addf %35, %41 : vector<36x64xf32>
    %c5 = arith.constant 5 : index
    %c0_43 = arith.constant 0 : index
    %c0_44 = arith.constant 0 : index
    %43 = vector.load %arg4[%c5, %c0_43, %c0_44] : memref<16x36x225xf32, #tpu.memory_space<vmem>>, vector<1x36x225xf32>
    %44 = vector.shape_cast %43 : vector<1x36x225xf32> to vector<36x225xf32>
    %cst_45 = arith.constant dense<0.000000e+00> : vector<36x32xf32>
    %45 = tpu.matmul %44, %8, %cst_45 {dimension_numbers = #tpu.dot_dimension_numbers<[1], [0], [0], [1], [0, 0, 1, 1], [], []>} : vector<36x225xf32>, vector<225x32xf32>, vector<36x32xf32> -> vector<36x32xf32>
    %c5_46 = arith.constant 5 : index
    %c0_47 = arith.constant 0 : index
    %c0_48 = arith.constant 0 : index
    %46 = vector.load %arg5[%c5_46, %c0_47, %c0_48] : memref<16x32x64xf32, #tpu.memory_space<vmem>>, vector<1x32x64xf32>
    %47 = vector.shape_cast %46 : vector<1x32x64xf32> to vector<32x64xf32>
    %cst_49 = arith.constant dense<0.000000e+00> : vector<36x64xf32>
    %48 = tpu.matmul %45, %47, %cst_49 {dimension_numbers = #tpu.dot_dimension_numbers<[1], [0], [0], [1], [0, 0, 1, 1], [], []>} : vector<36x32xf32>, vector<32x64xf32>, vector<36x64xf32> -> vector<36x64xf32>
    %49 = arith.addf %42, %48 : vector<36x64xf32>
    %c6 = arith.constant 6 : index
    %c0_50 = arith.constant 0 : index
    %c0_51 = arith.constant 0 : index
    %50 = vector.load %arg4[%c6, %c0_50, %c0_51] : memref<16x36x225xf32, #tpu.memory_space<vmem>>, vector<1x36x225xf32>
    %51 = vector.shape_cast %50 : vector<1x36x225xf32> to vector<36x225xf32>
    %cst_52 = arith.constant dense<0.000000e+00> : vector<36x32xf32>
    %52 = tpu.matmul %51, %8, %cst_52 {dimension_numbers = #tpu.dot_dimension_numbers<[1], [0], [0], [1], [0, 0, 1, 1], [], []>} : vector<36x225xf32>, vector<225x32xf32>, vector<36x32xf32> -> vector<36x32xf32>
    %c6_53 = arith.constant 6 : index
    %c0_54 = arith.constant 0 : index
    %c0_55 = arith.constant 0 : index
    %53 = vector.load %arg5[%c6_53, %c0_54, %c0_55] : memref<16x32x64xf32, #tpu.memory_space<vmem>>, vector<1x32x64xf32>
    %54 = vector.shape_cast %53 : vector<1x32x64xf32> to vector<32x64xf32>
    %cst_56 = arith.constant dense<0.000000e+00> : vector<36x64xf32>
    %55 = tpu.matmul %52, %54, %cst_56 {dimension_numbers = #tpu.dot_dimension_numbers<[1], [0], [0], [1], [0, 0, 1, 1], [], []>} : vector<36x32xf32>, vector<32x64xf32>, vector<36x64xf32> -> vector<36x64xf32>
    %56 = arith.addf %49, %55 : vector<36x64xf32>
    %c7 = arith.constant 7 : index
    %c0_57 = arith.constant 0 : index
    %c0_58 = arith.constant 0 : index
    %57 = vector.load %arg4[%c7, %c0_57, %c0_58] : memref<16x36x225xf32, #tpu.memory_space<vmem>>, vector<1x36x225xf32>
    %58 = vector.shape_cast %57 : vector<1x36x225xf32> to vector<36x225xf32>
    %cst_59 = arith.constant dense<0.000000e+00> : vector<36x32xf32>
    %59 = tpu.matmul %58, %8, %cst_59 {dimension_numbers = #tpu.dot_dimension_numbers<[1], [0], [0], [1], [0, 0, 1, 1], [], []>} : vector<36x225xf32>, vector<225x32xf32>, vector<36x32xf32> -> vector<36x32xf32>
    %c7_60 = arith.constant 7 : index
    %c0_61 = arith.constant 0 : index
    %c0_62 = arith.constant 0 : index
    %60 = vector.load %arg5[%c7_60, %c0_61, %c0_62] : memref<16x32x64xf32, #tpu.memory_space<vmem>>, vector<1x32x64xf32>
    %61 = vector.shape_cast %60 : vector<1x32x64xf32> to vector<32x64xf32>
    %cst_63 = arith.constant dense<0.000000e+00> : vector<36x64xf32>
    %62 = tpu.matmul %59, %61, %cst_63 {dimension_numbers = #tpu.dot_dimension_numbers<[1], [0], [0], [1], [0, 0, 1, 1], [], []>} : vector<36x32xf32>, vector<32x64xf32>, vector<36x64xf32> -> vector<36x64xf32>
    %63 = arith.addf %56, %62 : vector<36x64xf32>
    %c8 = arith.constant 8 : index
    %c0_64 = arith.constant 0 : index
    %c0_65 = arith.constant 0 : index
    %64 = vector.load %arg4[%c8, %c0_64, %c0_65] : memref<16x36x225xf32, #tpu.memory_space<vmem>>, vector<1x36x225xf32>
    %65 = vector.shape_cast %64 : vector<1x36x225xf32> to vector<36x225xf32>
    %cst_66 = arith.constant dense<0.000000e+00> : vector<36x32xf32>
    %66 = tpu.matmul %65, %8, %cst_66 {dimension_numbers = #tpu.dot_dimension_numbers<[1], [0], [0], [1], [0, 0, 1, 1], [], []>} : vector<36x225xf32>, vector<225x32xf32>, vector<36x32xf32> -> vector<36x32xf32>
    %c8_67 = arith.constant 8 : index
    %c0_68 = arith.constant 0 : index
    %c0_69 = arith.constant 0 : index
    %67 = vector.load %arg5[%c8_67, %c0_68, %c0_69] : memref<16x32x64xf32, #tpu.memory_space<vmem>>, vector<1x32x64xf32>
    %68 = vector.shape_cast %67 : vector<1x32x64xf32> to vector<32x64xf32>
    %cst_70 = arith.constant dense<0.000000e+00> : vector<36x64xf32>
    %69 = tpu.matmul %66, %68, %cst_70 {dimension_numbers = #tpu.dot_dimension_numbers<[1], [0], [0], [1], [0, 0, 1, 1], [], []>} : vector<36x32xf32>, vector<32x64xf32>, vector<36x64xf32> -> vector<36x64xf32>
    %70 = arith.addf %63, %69 : vector<36x64xf32>
    %c9 = arith.constant 9 : index
    %c0_71 = arith.constant 0 : index
    %c0_72 = arith.constant 0 : index
    %71 = vector.load %arg4[%c9, %c0_71, %c0_72] : memref<16x36x225xf32, #tpu.memory_space<vmem>>, vector<1x36x225xf32>
    %72 = vector.shape_cast %71 : vector<1x36x225xf32> to vector<36x225xf32>
    %cst_73 = arith.constant dense<0.000000e+00> : vector<36x32xf32>
    %73 = tpu.matmul %72, %8, %cst_73 {dimension_numbers = #tpu.dot_dimension_numbers<[1], [0], [0], [1], [0, 0, 1, 1], [], []>} : vector<36x225xf32>, vector<225x32xf32>, vector<36x32xf32> -> vector<36x32xf32>
    %c9_74 = arith.constant 9 : index
    %c0_75 = arith.constant 0 : index
    %c0_76 = arith.constant 0 : index
    %74 = vector.load %arg5[%c9_74, %c0_75, %c0_76] : memref<16x32x64xf32, #tpu.memory_space<vmem>>, vector<1x32x64xf32>
    %75 = vector.shape_cast %74 : vector<1x32x64xf32> to vector<32x64xf32>
    %cst_77 = arith.constant dense<0.000000e+00> : vector<36x64xf32>
    %76 = tpu.matmul %73, %75, %cst_77 {dimension_numbers = #tpu.dot_dimension_numbers<[1], [0], [0], [1], [0, 0, 1, 1], [], []>} : vector<36x32xf32>, vector<32x64xf32>, vector<36x64xf32> -> vector<36x64xf32>
    %77 = arith.addf %70, %76 : vector<36x64xf32>
    %c10 = arith.constant 10 : index
    %c0_78 = arith.constant 0 : index
    %c0_79 = arith.constant 0 : index
    %78 = vector.load %arg4[%c10, %c0_78, %c0_79] : memref<16x36x225xf32, #tpu.memory_space<vmem>>, vector<1x36x225xf32>
    %79 = vector.shape_cast %78 : vector<1x36x225xf32> to vector<36x225xf32>
    %cst_80 = arith.constant dense<0.000000e+00> : vector<36x32xf32>
    %80 = tpu.matmul %79, %8, %cst_80 {dimension_numbers = #tpu.dot_dimension_numbers<[1], [0], [0], [1], [0, 0, 1, 1], [], []>} : vector<36x225xf32>, vector<225x32xf32>, vector<36x32xf32> -> vector<36x32xf32>
    %c10_81 = arith.constant 10 : index
    %c0_82 = arith.constant 0 : index
    %c0_83 = arith.constant 0 : index
    %81 = vector.load %arg5[%c10_81, %c0_82, %c0_83] : memref<16x32x64xf32, #tpu.memory_space<vmem>>, vector<1x32x64xf32>
    %82 = vector.shape_cast %81 : vector<1x32x64xf32> to vector<32x64xf32>
    %cst_84 = arith.constant dense<0.000000e+00> : vector<36x64xf32>
    %83 = tpu.matmul %80, %82, %cst_84 {dimension_numbers = #tpu.dot_dimension_numbers<[1], [0], [0], [1], [0, 0, 1, 1], [], []>} : vector<36x32xf32>, vector<32x64xf32>, vector<36x64xf32> -> vector<36x64xf32>
    %84 = arith.addf %77, %83 : vector<36x64xf32>
    %c11 = arith.constant 11 : index
    %c0_85 = arith.constant 0 : index
    %c0_86 = arith.constant 0 : index
    %85 = vector.load %arg4[%c11, %c0_85, %c0_86] : memref<16x36x225xf32, #tpu.memory_space<vmem>>, vector<1x36x225xf32>
    %86 = vector.shape_cast %85 : vector<1x36x225xf32> to vector<36x225xf32>
    %cst_87 = arith.constant dense<0.000000e+00> : vector<36x32xf32>
    %87 = tpu.matmul %86, %8, %cst_87 {dimension_numbers = #tpu.dot_dimension_numbers<[1], [0], [0], [1], [0, 0, 1, 1], [], []>} : vector<36x225xf32>, vector<225x32xf32>, vector<36x32xf32> -> vector<36x32xf32>
    %c11_88 = arith.constant 11 : index
    %c0_89 = arith.constant 0 : index
    %c0_90 = arith.constant 0 : index
    %88 = vector.load %arg5[%c11_88, %c0_89, %c0_90] : memref<16x32x64xf32, #tpu.memory_space<vmem>>, vector<1x32x64xf32>
    %89 = vector.shape_cast %88 : vector<1x32x64xf32> to vector<32x64xf32>
    %cst_91 = arith.constant dense<0.000000e+00> : vector<36x64xf32>
    %90 = tpu.matmul %87, %89, %cst_91 {dimension_numbers = #tpu.dot_dimension_numbers<[1], [0], [0], [1], [0, 0, 1, 1], [], []>} : vector<36x32xf32>, vector<32x64xf32>, vector<36x64xf32> -> vector<36x64xf32>
    %91 = arith.addf %84, %90 : vector<36x64xf32>
    %c12 = arith.constant 12 : index
    %c0_92 = arith.constant 0 : index
    %c0_93 = arith.constant 0 : index
    %92 = vector.load %arg4[%c12, %c0_92, %c0_93] : memref<16x36x225xf32, #tpu.memory_space<vmem>>, vector<1x36x225xf32>
    %93 = vector.shape_cast %92 : vector<1x36x225xf32> to vector<36x225xf32>
    %cst_94 = arith.constant dense<0.000000e+00> : vector<36x32xf32>
    %94 = tpu.matmul %93, %8, %cst_94 {dimension_numbers = #tpu.dot_dimension_numbers<[1], [0], [0], [1], [0, 0, 1, 1], [], []>} : vector<36x225xf32>, vector<225x32xf32>, vector<36x32xf32> -> vector<36x32xf32>
    %c12_95 = arith.constant 12 : index
    %c0_96 = arith.constant 0 : index
    %c0_97 = arith.constant 0 : index
    %95 = vector.load %arg5[%c12_95, %c0_96, %c0_97] : memref<16x32x64xf32, #tpu.memory_space<vmem>>, vector<1x32x64xf32>
    %96 = vector.shape_cast %95 : vector<1x32x64xf32> to vector<32x64xf32>
    %cst_98 = arith.constant dense<0.000000e+00> : vector<36x64xf32>
    %97 = tpu.matmul %94, %96, %cst_98 {dimension_numbers = #tpu.dot_dimension_numbers<[1], [0], [0], [1], [0, 0, 1, 1], [], []>} : vector<36x32xf32>, vector<32x64xf32>, vector<36x64xf32> -> vector<36x64xf32>
    %98 = arith.addf %91, %97 : vector<36x64xf32>
    %c13 = arith.constant 13 : index
    %c0_99 = arith.constant 0 : index
    %c0_100 = arith.constant 0 : index
    %99 = vector.load %arg4[%c13, %c0_99, %c0_100] : memref<16x36x225xf32, #tpu.memory_space<vmem>>, vector<1x36x225xf32>
    %100 = vector.shape_cast %99 : vector<1x36x225xf32> to vector<36x225xf32>
    %cst_101 = arith.constant dense<0.000000e+00> : vector<36x32xf32>
    %101 = tpu.matmul %100, %8, %cst_101 {dimension_numbers = #tpu.dot_dimension_numbers<[1], [0], [0], [1], [0, 0, 1, 1], [], []>} : vector<36x225xf32>, vector<225x32xf32>, vector<36x32xf32> -> vector<36x32xf32>
    %c13_102 = arith.constant 13 : index
    %c0_103 = arith.constant 0 : index
    %c0_104 = arith.constant 0 : index
    %102 = vector.load %arg5[%c13_102, %c0_103, %c0_104] : memref<16x32x64xf32, #tpu.memory_space<vmem>>, vector<1x32x64xf32>
    %103 = vector.shape_cast %102 : vector<1x32x64xf32> to vector<32x64xf32>
    %cst_105 = arith.constant dense<0.000000e+00> : vector<36x64xf32>
    %104 = tpu.matmul %101, %103, %cst_105 {dimension_numbers = #tpu.dot_dimension_numbers<[1], [0], [0], [1], [0, 0, 1, 1], [], []>} : vector<36x32xf32>, vector<32x64xf32>, vector<36x64xf32> -> vector<36x64xf32>
    %105 = arith.addf %98, %104 : vector<36x64xf32>
    %c14 = arith.constant 14 : index
    %c0_106 = arith.constant 0 : index
    %c0_107 = arith.constant 0 : index
    %106 = vector.load %arg4[%c14, %c0_106, %c0_107] : memref<16x36x225xf32, #tpu.memory_space<vmem>>, vector<1x36x225xf32>
    %107 = vector.shape_cast %106 : vector<1x36x225xf32> to vector<36x225xf32>
    %cst_108 = arith.constant dense<0.000000e+00> : vector<36x32xf32>
    %108 = tpu.matmul %107, %8, %cst_108 {dimension_numbers = #tpu.dot_dimension_numbers<[1], [0], [0], [1], [0, 0, 1, 1], [], []>} : vector<36x225xf32>, vector<225x32xf32>, vector<36x32xf32> -> vector<36x32xf32>
    %c14_109 = arith.constant 14 : index
    %c0_110 = arith.constant 0 : index
    %c0_111 = arith.constant 0 : index
    %109 = vector.load %arg5[%c14_109, %c0_110, %c0_111] : memref<16x32x64xf32, #tpu.memory_space<vmem>>, vector<1x32x64xf32>
    %110 = vector.shape_cast %109 : vector<1x32x64xf32> to vector<32x64xf32>
    %cst_112 = arith.constant dense<0.000000e+00> : vector<36x64xf32>
    %111 = tpu.matmul %108, %110, %cst_112 {dimension_numbers = #tpu.dot_dimension_numbers<[1], [0], [0], [1], [0, 0, 1, 1], [], []>} : vector<36x32xf32>, vector<32x64xf32>, vector<36x64xf32> -> vector<36x64xf32>
    %112 = arith.addf %105, %111 : vector<36x64xf32>
    %c15 = arith.constant 15 : index
    %c0_113 = arith.constant 0 : index
    %c0_114 = arith.constant 0 : index
    %113 = vector.load %arg4[%c15, %c0_113, %c0_114] : memref<16x36x225xf32, #tpu.memory_space<vmem>>, vector<1x36x225xf32>
    %114 = vector.shape_cast %113 : vector<1x36x225xf32> to vector<36x225xf32>
    %cst_115 = arith.constant dense<0.000000e+00> : vector<36x32xf32>
    %115 = tpu.matmul %114, %8, %cst_115 {dimension_numbers = #tpu.dot_dimension_numbers<[1], [0], [0], [1], [0, 0, 1, 1], [], []>} : vector<36x225xf32>, vector<225x32xf32>, vector<36x32xf32> -> vector<36x32xf32>
    %c15_116 = arith.constant 15 : index
    %c0_117 = arith.constant 0 : index
    %c0_118 = arith.constant 0 : index
    %116 = vector.load %arg5[%c15_116, %c0_117, %c0_118] : memref<16x32x64xf32, #tpu.memory_space<vmem>>, vector<1x32x64xf32>
    %117 = vector.shape_cast %116 : vector<1x32x64xf32> to vector<32x64xf32>
    %cst_119 = arith.constant dense<0.000000e+00> : vector<36x64xf32>
    %118 = tpu.matmul %115, %117, %cst_119 {dimension_numbers = #tpu.dot_dimension_numbers<[1], [0], [0], [1], [0, 0, 1, 1], [], []>} : vector<36x32xf32>, vector<32x64xf32>, vector<36x64xf32> -> vector<36x64xf32>
    %119 = arith.addf %112, %118 : vector<36x64xf32>
    %c0_120 = arith.constant 0 : index
    %c0_121 = arith.constant 0 : index
    %120 = vector.load %arg6[%c0_120, %c0_121] : memref<1x64xf32, #tpu.memory_space<vmem>>, vector<1x64xf32>
    %121 = vector.broadcast %120 : vector<1x64xf32> to vector<36x64xf32>
    %122 = arith.addf %119, %121 : vector<36x64xf32>
    %cst_122 = arith.constant 0.000000e+00 : f32
    %123 = vector.broadcast %cst_122 : f32 to vector<36x64xf32>
    %124 = arith.maximumf %122, %123 : vector<36x64xf32>
    %c0_123 = arith.constant 0 : index
    %c0_124 = arith.constant 0 : index
    %c0_125 = arith.constant 0 : index
    %125 = vector.load %arg7[%c0_123, %c0_124, %c0_125] : memref<9x16x36xf32, #tpu.memory_space<vmem>>, vector<1x16x36xf32>
    %126 = vector.shape_cast %125 : vector<1x16x36xf32> to vector<16x36xf32>
    %cst_126 = arith.constant dense<0.000000e+00> : vector<16x64xf32>
    %127 = tpu.matmul %126, %124, %cst_126 {dimension_numbers = #tpu.dot_dimension_numbers<[1], [0], [0], [1], [0, 0, 1, 1], [], []>} : vector<16x36xf32>, vector<36x64xf32>, vector<16x64xf32> -> vector<16x64xf32>
    %c0_127 = arith.constant 0 : index
    %c0_128 = arith.constant 0 : index
    %c0_129 = arith.constant 0 : index
    %128 = vector.load %arg8[%c0_127, %c0_128, %c0_129] : memref<9x64x96xf32, #tpu.memory_space<vmem>>, vector<1x64x96xf32>
    %129 = vector.shape_cast %128 : vector<1x64x96xf32> to vector<64x96xf32>
    %cst_130 = arith.constant dense<0.000000e+00> : vector<16x96xf32>
    %130 = tpu.matmul %127, %129, %cst_130 {dimension_numbers = #tpu.dot_dimension_numbers<[1], [0], [0], [1], [0, 0, 1, 1], [], []>} : vector<16x64xf32>, vector<64x96xf32>, vector<16x96xf32> -> vector<16x96xf32>
    %c1_131 = arith.constant 1 : index
    %c0_132 = arith.constant 0 : index
    %c0_133 = arith.constant 0 : index
    %131 = vector.load %arg7[%c1_131, %c0_132, %c0_133] : memref<9x16x36xf32, #tpu.memory_space<vmem>>, vector<1x16x36xf32>
    %132 = vector.shape_cast %131 : vector<1x16x36xf32> to vector<16x36xf32>
    %cst_134 = arith.constant dense<0.000000e+00> : vector<16x64xf32>
    %133 = tpu.matmul %132, %124, %cst_134 {dimension_numbers = #tpu.dot_dimension_numbers<[1], [0], [0], [1], [0, 0, 1, 1], [], []>} : vector<16x36xf32>, vector<36x64xf32>, vector<16x64xf32> -> vector<16x64xf32>
    %c1_135 = arith.constant 1 : index
    %c0_136 = arith.constant 0 : index
    %c0_137 = arith.constant 0 : index
    %134 = vector.load %arg8[%c1_135, %c0_136, %c0_137] : memref<9x64x96xf32, #tpu.memory_space<vmem>>, vector<1x64x96xf32>
    %135 = vector.shape_cast %134 : vector<1x64x96xf32> to vector<64x96xf32>
    %cst_138 = arith.constant dense<0.000000e+00> : vector<16x96xf32>
    %136 = tpu.matmul %133, %135, %cst_138 {dimension_numbers = #tpu.dot_dimension_numbers<[1], [0], [0], [1], [0, 0, 1, 1], [], []>} : vector<16x64xf32>, vector<64x96xf32>, vector<16x96xf32> -> vector<16x96xf32>
    %137 = arith.addf %130, %136 : vector<16x96xf32>
    %c2_139 = arith.constant 2 : index
    %c0_140 = arith.constant 0 : index
    %c0_141 = arith.constant 0 : index
    %138 = vector.load %arg7[%c2_139, %c0_140, %c0_141] : memref<9x16x36xf32, #tpu.memory_space<vmem>>, vector<1x16x36xf32>
    %139 = vector.shape_cast %138 : vector<1x16x36xf32> to vector<16x36xf32>
    %cst_142 = arith.constant dense<0.000000e+00> : vector<16x64xf32>
    %140 = tpu.matmul %139, %124, %cst_142 {dimension_numbers = #tpu.dot_dimension_numbers<[1], [0], [0], [1], [0, 0, 1, 1], [], []>} : vector<16x36xf32>, vector<36x64xf32>, vector<16x64xf32> -> vector<16x64xf32>
    %c2_143 = arith.constant 2 : index
    %c0_144 = arith.constant 0 : index
    %c0_145 = arith.constant 0 : index
    %141 = vector.load %arg8[%c2_143, %c0_144, %c0_145] : memref<9x64x96xf32, #tpu.memory_space<vmem>>, vector<1x64x96xf32>
    %142 = vector.shape_cast %141 : vector<1x64x96xf32> to vector<64x96xf32>
    %cst_146 = arith.constant dense<0.000000e+00> : vector<16x96xf32>
    %143 = tpu.matmul %140, %142, %cst_146 {dimension_numbers = #tpu.dot_dimension_numbers<[1], [0], [0], [1], [0, 0, 1, 1], [], []>} : vector<16x64xf32>, vector<64x96xf32>, vector<16x96xf32> -> vector<16x96xf32>
    %144 = arith.addf %137, %143 : vector<16x96xf32>
    %c3_147 = arith.constant 3 : index
    %c0_148 = arith.constant 0 : index
    %c0_149 = arith.constant 0 : index
    %145 = vector.load %arg7[%c3_147, %c0_148, %c0_149] : memref<9x16x36xf32, #tpu.memory_space<vmem>>, vector<1x16x36xf32>
    %146 = vector.shape_cast %145 : vector<1x16x36xf32> to vector<16x36xf32>
    %cst_150 = arith.constant dense<0.000000e+00> : vector<16x64xf32>
    %147 = tpu.matmul %146, %124, %cst_150 {dimension_numbers = #tpu.dot_dimension_numbers<[1], [0], [0], [1], [0, 0, 1, 1], [], []>} : vector<16x36xf32>, vector<36x64xf32>, vector<16x64xf32> -> vector<16x64xf32>
    %c3_151 = arith.constant 3 : index
    %c0_152 = arith.constant 0 : index
    %c0_153 = arith.constant 0 : index
    %148 = vector.load %arg8[%c3_151, %c0_152, %c0_153] : memref<9x64x96xf32, #tpu.memory_space<vmem>>, vector<1x64x96xf32>
    %149 = vector.shape_cast %148 : vector<1x64x96xf32> to vector<64x96xf32>
    %cst_154 = arith.constant dense<0.000000e+00> : vector<16x96xf32>
    %150 = tpu.matmul %147, %149, %cst_154 {dimension_numbers = #tpu.dot_dimension_numbers<[1], [0], [0], [1], [0, 0, 1, 1], [], []>} : vector<16x64xf32>, vector<64x96xf32>, vector<16x96xf32> -> vector<16x96xf32>
    %151 = arith.addf %144, %150 : vector<16x96xf32>
    %c4_155 = arith.constant 4 : index
    %c0_156 = arith.constant 0 : index
    %c0_157 = arith.constant 0 : index
    %152 = vector.load %arg7[%c4_155, %c0_156, %c0_157] : memref<9x16x36xf32, #tpu.memory_space<vmem>>, vector<1x16x36xf32>
    %153 = vector.shape_cast %152 : vector<1x16x36xf32> to vector<16x36xf32>
    %cst_158 = arith.constant dense<0.000000e+00> : vector<16x64xf32>
    %154 = tpu.matmul %153, %124, %cst_158 {dimension_numbers = #tpu.dot_dimension_numbers<[1], [0], [0], [1], [0, 0, 1, 1], [], []>} : vector<16x36xf32>, vector<36x64xf32>, vector<16x64xf32> -> vector<16x64xf32>
    %c4_159 = arith.constant 4 : index
    %c0_160 = arith.constant 0 : index
    %c0_161 = arith.constant 0 : index
    %155 = vector.load %arg8[%c4_159, %c0_160, %c0_161] : memref<9x64x96xf32, #tpu.memory_space<vmem>>, vector<1x64x96xf32>
    %156 = vector.shape_cast %155 : vector<1x64x96xf32> to vector<64x96xf32>
    %cst_162 = arith.constant dense<0.000000e+00> : vector<16x96xf32>
    %157 = tpu.matmul %154, %156, %cst_162 {dimension_numbers = #tpu.dot_dimension_numbers<[1], [0], [0], [1], [0, 0, 1, 1], [], []>} : vector<16x64xf32>, vector<64x96xf32>, vector<16x96xf32> -> vector<16x96xf32>
    %158 = arith.addf %151, %157 : vector<16x96xf32>
    %c5_163 = arith.constant 5 : index
    %c0_164 = arith.constant 0 : index
    %c0_165 = arith.constant 0 : index
    %159 = vector.load %arg7[%c5_163, %c0_164, %c0_165] : memref<9x16x36xf32, #tpu.memory_space<vmem>>, vector<1x16x36xf32>
    %160 = vector.shape_cast %159 : vector<1x16x36xf32> to vector<16x36xf32>
    %cst_166 = arith.constant dense<0.000000e+00> : vector<16x64xf32>
    %161 = tpu.matmul %160, %124, %cst_166 {dimension_numbers = #tpu.dot_dimension_numbers<[1], [0], [0], [1], [0, 0, 1, 1], [], []>} : vector<16x36xf32>, vector<36x64xf32>, vector<16x64xf32> -> vector<16x64xf32>
    %c5_167 = arith.constant 5 : index
    %c0_168 = arith.constant 0 : index
    %c0_169 = arith.constant 0 : index
    %162 = vector.load %arg8[%c5_167, %c0_168, %c0_169] : memref<9x64x96xf32, #tpu.memory_space<vmem>>, vector<1x64x96xf32>
    %163 = vector.shape_cast %162 : vector<1x64x96xf32> to vector<64x96xf32>
    %cst_170 = arith.constant dense<0.000000e+00> : vector<16x96xf32>
    %164 = tpu.matmul %161, %163, %cst_170 {dimension_numbers = #tpu.dot_dimension_numbers<[1], [0], [0], [1], [0, 0, 1, 1], [], []>} : vector<16x64xf32>, vector<64x96xf32>, vector<16x96xf32> -> vector<16x96xf32>
    %165 = arith.addf %158, %164 : vector<16x96xf32>
    %c6_171 = arith.constant 6 : index
    %c0_172 = arith.constant 0 : index
    %c0_173 = arith.constant 0 : index
    %166 = vector.load %arg7[%c6_171, %c0_172, %c0_173] : memref<9x16x36xf32, #tpu.memory_space<vmem>>, vector<1x16x36xf32>
    %167 = vector.shape_cast %166 : vector<1x16x36xf32> to vector<16x36xf32>
    %cst_174 = arith.constant dense<0.000000e+00> : vector<16x64xf32>
    %168 = tpu.matmul %167, %124, %cst_174 {dimension_numbers = #tpu.dot_dimension_numbers<[1], [0], [0], [1], [0, 0, 1, 1], [], []>} : vector<16x36xf32>, vector<36x64xf32>, vector<16x64xf32> -> vector<16x64xf32>
    %c6_175 = arith.constant 6 : index
    %c0_176 = arith.constant 0 : index
    %c0_177 = arith.constant 0 : index
    %169 = vector.load %arg8[%c6_175, %c0_176, %c0_177] : memref<9x64x96xf32, #tpu.memory_space<vmem>>, vector<1x64x96xf32>
    %170 = vector.shape_cast %169 : vector<1x64x96xf32> to vector<64x96xf32>
    %cst_178 = arith.constant dense<0.000000e+00> : vector<16x96xf32>
    %171 = tpu.matmul %168, %170, %cst_178 {dimension_numbers = #tpu.dot_dimension_numbers<[1], [0], [0], [1], [0, 0, 1, 1], [], []>} : vector<16x64xf32>, vector<64x96xf32>, vector<16x96xf32> -> vector<16x96xf32>
    %172 = arith.addf %165, %171 : vector<16x96xf32>
    %c7_179 = arith.constant 7 : index
    %c0_180 = arith.constant 0 : index
    %c0_181 = arith.constant 0 : index
    %173 = vector.load %arg7[%c7_179, %c0_180, %c0_181] : memref<9x16x36xf32, #tpu.memory_space<vmem>>, vector<1x16x36xf32>
    %174 = vector.shape_cast %173 : vector<1x16x36xf32> to vector<16x36xf32>
    %cst_182 = arith.constant dense<0.000000e+00> : vector<16x64xf32>
    %175 = tpu.matmul %174, %124, %cst_182 {dimension_numbers = #tpu.dot_dimension_numbers<[1], [0], [0], [1], [0, 0, 1, 1], [], []>} : vector<16x36xf32>, vector<36x64xf32>, vector<16x64xf32> -> vector<16x64xf32>
    %c7_183 = arith.constant 7 : index
    %c0_184 = arith.constant 0 : index
    %c0_185 = arith.constant 0 : index
    %176 = vector.load %arg8[%c7_183, %c0_184, %c0_185] : memref<9x64x96xf32, #tpu.memory_space<vmem>>, vector<1x64x96xf32>
    %177 = vector.shape_cast %176 : vector<1x64x96xf32> to vector<64x96xf32>
    %cst_186 = arith.constant dense<0.000000e+00> : vector<16x96xf32>
    %178 = tpu.matmul %175, %177, %cst_186 {dimension_numbers = #tpu.dot_dimension_numbers<[1], [0], [0], [1], [0, 0, 1, 1], [], []>} : vector<16x64xf32>, vector<64x96xf32>, vector<16x96xf32> -> vector<16x96xf32>
    %179 = arith.addf %172, %178 : vector<16x96xf32>
    %c8_187 = arith.constant 8 : index
    %c0_188 = arith.constant 0 : index
    %c0_189 = arith.constant 0 : index
    %180 = vector.load %arg7[%c8_187, %c0_188, %c0_189] : memref<9x16x36xf32, #tpu.memory_space<vmem>>, vector<1x16x36xf32>
    %181 = vector.shape_cast %180 : vector<1x16x36xf32> to vector<16x36xf32>
    %cst_190 = arith.constant dense<0.000000e+00> : vector<16x64xf32>
    %182 = tpu.matmul %181, %124, %cst_190 {dimension_numbers = #tpu.dot_dimension_numbers<[1], [0], [0], [1], [0, 0, 1, 1], [], []>} : vector<16x36xf32>, vector<36x64xf32>, vector<16x64xf32> -> vector<16x64xf32>
    %c8_191 = arith.constant 8 : index
    %c0_192 = arith.constant 0 : index
    %c0_193 = arith.constant 0 : index
    %183 = vector.load %arg8[%c8_191, %c0_192, %c0_193] : memref<9x64x96xf32, #tpu.memory_space<vmem>>, vector<1x64x96xf32>
    %184 = vector.shape_cast %183 : vector<1x64x96xf32> to vector<64x96xf32>
    %cst_194 = arith.constant dense<0.000000e+00> : vector<16x96xf32>
    %185 = tpu.matmul %182, %184, %cst_194 {dimension_numbers = #tpu.dot_dimension_numbers<[1], [0], [0], [1], [0, 0, 1, 1], [], []>} : vector<16x64xf32>, vector<64x96xf32>, vector<16x96xf32> -> vector<16x96xf32>
    %186 = arith.addf %179, %185 : vector<16x96xf32>
    %c0_195 = arith.constant 0 : index
    %c0_196 = arith.constant 0 : index
    %187 = vector.load %arg9[%c0_195, %c0_196] : memref<1x96xf32, #tpu.memory_space<vmem>>, vector<1x96xf32>
    %188 = vector.broadcast %187 : vector<1x96xf32> to vector<16x96xf32>
    %189 = arith.addf %186, %188 : vector<16x96xf32>
    %cst_197 = arith.constant 0.000000e+00 : f32
    %190 = vector.broadcast %cst_197 : f32 to vector<16x96xf32>
    %191 = arith.maximumf %189, %190 : vector<16x96xf32>
    %c0_198 = arith.constant 0 : index
    %c0_199 = arith.constant 0 : index
    %192 = vector.load %arg10[%c0_198, %c0_199] : memref<96x96xf32, #tpu.memory_space<vmem>>, vector<96x96xf32>
    %cst_200 = arith.constant dense<0.000000e+00> : vector<16x96xf32>
    %193 = tpu.matmul %191, %192, %cst_200 {dimension_numbers = #tpu.dot_dimension_numbers<[1], [0], [0], [1], [0, 0, 1, 1], [], []>} : vector<16x96xf32>, vector<96x96xf32>, vector<16x96xf32> -> vector<16x96xf32>
    %c0_201 = arith.constant 0 : index
    %c0_202 = arith.constant 0 : index
    %c0_203 = arith.constant 0 : index
    %194 = vector.load %arg11[%c0_201, %c0_202, %c0_203] : memref<9x16x16xf32, #tpu.memory_space<vmem>>, vector<1x16x16xf32>
    %195 = vector.shape_cast %194 : vector<1x16x16xf32> to vector<16x16xf32>
    %cst_204 = arith.constant dense<0.000000e+00> : vector<16x96xf32>
    %196 = tpu.matmul %195, %193, %cst_204 {dimension_numbers = #tpu.dot_dimension_numbers<[1], [0], [0], [1], [0, 0, 1, 1], [], []>} : vector<16x16xf32>, vector<16x96xf32>, vector<16x96xf32> -> vector<16x96xf32>
    %c0_205 = arith.constant 0 : index
    %c0_206 = arith.constant 0 : index
    %c0_207 = arith.constant 0 : index
    %197 = vector.load %arg12[%c0_205, %c0_206, %c0_207] : memref<9x96x96xf32, #tpu.memory_space<vmem>>, vector<1x96x96xf32>
    %198 = vector.shape_cast %197 : vector<1x96x96xf32> to vector<96x96xf32>
    %cst_208 = arith.constant dense<0.000000e+00> : vector<16x96xf32>
    %199 = tpu.matmul %196, %198, %cst_208 {dimension_numbers = #tpu.dot_dimension_numbers<[1], [0], [0], [1], [0, 0, 1, 1], [], []>} : vector<16x96xf32>, vector<96x96xf32>, vector<16x96xf32> -> vector<16x96xf32>
    %c1_209 = arith.constant 1 : index
    %c0_210 = arith.constant 0 : index
    %c0_211 = arith.constant 0 : index
    %200 = vector.load %arg11[%c1_209, %c0_210, %c0_211] : memref<9x16x16xf32, #tpu.memory_space<vmem>>, vector<1x16x16xf32>
    %201 = vector.shape_cast %200 : vector<1x16x16xf32> to vector<16x16xf32>
    %cst_212 = arith.constant dense<0.000000e+00> : vector<16x96xf32>
    %202 = tpu.matmul %201, %193, %cst_212 {dimension_numbers = #tpu.dot_dimension_numbers<[1], [0], [0], [1], [0, 0, 1, 1], [], []>} : vector<16x16xf32>, vector<16x96xf32>, vector<16x96xf32> -> vector<16x96xf32>
    %c1_213 = arith.constant 1 : index
    %c0_214 = arith.constant 0 : index
    %c0_215 = arith.constant 0 : index
    %203 = vector.load %arg12[%c1_213, %c0_214, %c0_215] : memref<9x96x96xf32, #tpu.memory_space<vmem>>, vector<1x96x96xf32>
    %204 = vector.shape_cast %203 : vector<1x96x96xf32> to vector<96x96xf32>
    %cst_216 = arith.constant dense<0.000000e+00> : vector<16x96xf32>
    %205 = tpu.matmul %202, %204, %cst_216 {dimension_numbers = #tpu.dot_dimension_numbers<[1], [0], [0], [1], [0, 0, 1, 1], [], []>} : vector<16x96xf32>, vector<96x96xf32>, vector<16x96xf32> -> vector<16x96xf32>
    %206 = arith.addf %199, %205 : vector<16x96xf32>
    %c2_217 = arith.constant 2 : index
    %c0_218 = arith.constant 0 : index
    %c0_219 = arith.constant 0 : index
    %207 = vector.load %arg11[%c2_217, %c0_218, %c0_219] : memref<9x16x16xf32, #tpu.memory_space<vmem>>, vector<1x16x16xf32>
    %208 = vector.shape_cast %207 : vector<1x16x16xf32> to vector<16x16xf32>
    %cst_220 = arith.constant dense<0.000000e+00> : vector<16x96xf32>
    %209 = tpu.matmul %208, %193, %cst_220 {dimension_numbers = #tpu.dot_dimension_numbers<[1], [0], [0], [1], [0, 0, 1, 1], [], []>} : vector<16x16xf32>, vector<16x96xf32>, vector<16x96xf32> -> vector<16x96xf32>
    %c2_221 = arith.constant 2 : index
    %c0_222 = arith.constant 0 : index
    %c0_223 = arith.constant 0 : index
    %210 = vector.load %arg12[%c2_221, %c0_222, %c0_223] : memref<9x96x96xf32, #tpu.memory_space<vmem>>, vector<1x96x96xf32>
    %211 = vector.shape_cast %210 : vector<1x96x96xf32> to vector<96x96xf32>
    %cst_224 = arith.constant dense<0.000000e+00> : vector<16x96xf32>
    %212 = tpu.matmul %209, %211, %cst_224 {dimension_numbers = #tpu.dot_dimension_numbers<[1], [0], [0], [1], [0, 0, 1, 1], [], []>} : vector<16x96xf32>, vector<96x96xf32>, vector<16x96xf32> -> vector<16x96xf32>
    %213 = arith.addf %206, %212 : vector<16x96xf32>
    %c3_225 = arith.constant 3 : index
    %c0_226 = arith.constant 0 : index
    %c0_227 = arith.constant 0 : index
    %214 = vector.load %arg11[%c3_225, %c0_226, %c0_227] : memref<9x16x16xf32, #tpu.memory_space<vmem>>, vector<1x16x16xf32>
    %215 = vector.shape_cast %214 : vector<1x16x16xf32> to vector<16x16xf32>
    %cst_228 = arith.constant dense<0.000000e+00> : vector<16x96xf32>
    %216 = tpu.matmul %215, %193, %cst_228 {dimension_numbers = #tpu.dot_dimension_numbers<[1], [0], [0], [1], [0, 0, 1, 1], [], []>} : vector<16x16xf32>, vector<16x96xf32>, vector<16x96xf32> -> vector<16x96xf32>
    %c3_229 = arith.constant 3 : index
    %c0_230 = arith.constant 0 : index
    %c0_231 = arith.constant 0 : index
    %217 = vector.load %arg12[%c3_229, %c0_230, %c0_231] : memref<9x96x96xf32, #tpu.memory_space<vmem>>, vector<1x96x96xf32>
    %218 = vector.shape_cast %217 : vector<1x96x96xf32> to vector<96x96xf32>
    %cst_232 = arith.constant dense<0.000000e+00> : vector<16x96xf32>
    %219 = tpu.matmul %216, %218, %cst_232 {dimension_numbers = #tpu.dot_dimension_numbers<[1], [0], [0], [1], [0, 0, 1, 1], [], []>} : vector<16x96xf32>, vector<96x96xf32>, vector<16x96xf32> -> vector<16x96xf32>
    %220 = arith.addf %213, %219 : vector<16x96xf32>
    %c4_233 = arith.constant 4 : index
    %c0_234 = arith.constant 0 : index
    %c0_235 = arith.constant 0 : index
    %221 = vector.load %arg11[%c4_233, %c0_234, %c0_235] : memref<9x16x16xf32, #tpu.memory_space<vmem>>, vector<1x16x16xf32>
    %222 = vector.shape_cast %221 : vector<1x16x16xf32> to vector<16x16xf32>
    %cst_236 = arith.constant dense<0.000000e+00> : vector<16x96xf32>
    %223 = tpu.matmul %222, %193, %cst_236 {dimension_numbers = #tpu.dot_dimension_numbers<[1], [0], [0], [1], [0, 0, 1, 1], [], []>} : vector<16x16xf32>, vector<16x96xf32>, vector<16x96xf32> -> vector<16x96xf32>
    %c4_237 = arith.constant 4 : index
    %c0_238 = arith.constant 0 : index
    %c0_239 = arith.constant 0 : index
    %224 = vector.load %arg12[%c4_237, %c0_238, %c0_239] : memref<9x96x96xf32, #tpu.memory_space<vmem>>, vector<1x96x96xf32>
    %225 = vector.shape_cast %224 : vector<1x96x96xf32> to vector<96x96xf32>
    %cst_240 = arith.constant dense<0.000000e+00> : vector<16x96xf32>
    %226 = tpu.matmul %223, %225, %cst_240 {dimension_numbers = #tpu.dot_dimension_numbers<[1], [0], [0], [1], [0, 0, 1, 1], [], []>} : vector<16x96xf32>, vector<96x96xf32>, vector<16x96xf32> -> vector<16x96xf32>
    %227 = arith.addf %220, %226 : vector<16x96xf32>
    %c5_241 = arith.constant 5 : index
    %c0_242 = arith.constant 0 : index
    %c0_243 = arith.constant 0 : index
    %228 = vector.load %arg11[%c5_241, %c0_242, %c0_243] : memref<9x16x16xf32, #tpu.memory_space<vmem>>, vector<1x16x16xf32>
    %229 = vector.shape_cast %228 : vector<1x16x16xf32> to vector<16x16xf32>
    %cst_244 = arith.constant dense<0.000000e+00> : vector<16x96xf32>
    %230 = tpu.matmul %229, %193, %cst_244 {dimension_numbers = #tpu.dot_dimension_numbers<[1], [0], [0], [1], [0, 0, 1, 1], [], []>} : vector<16x16xf32>, vector<16x96xf32>, vector<16x96xf32> -> vector<16x96xf32>
    %c5_245 = arith.constant 5 : index
    %c0_246 = arith.constant 0 : index
    %c0_247 = arith.constant 0 : index
    %231 = vector.load %arg12[%c5_245, %c0_246, %c0_247] : memref<9x96x96xf32, #tpu.memory_space<vmem>>, vector<1x96x96xf32>
    %232 = vector.shape_cast %231 : vector<1x96x96xf32> to vector<96x96xf32>
    %cst_248 = arith.constant dense<0.000000e+00> : vector<16x96xf32>
    %233 = tpu.matmul %230, %232, %cst_248 {dimension_numbers = #tpu.dot_dimension_numbers<[1], [0], [0], [1], [0, 0, 1, 1], [], []>} : vector<16x96xf32>, vector<96x96xf32>, vector<16x96xf32> -> vector<16x96xf32>
    %234 = arith.addf %227, %233 : vector<16x96xf32>
    %c6_249 = arith.constant 6 : index
    %c0_250 = arith.constant 0 : index
    %c0_251 = arith.constant 0 : index
    %235 = vector.load %arg11[%c6_249, %c0_250, %c0_251] : memref<9x16x16xf32, #tpu.memory_space<vmem>>, vector<1x16x16xf32>
    %236 = vector.shape_cast %235 : vector<1x16x16xf32> to vector<16x16xf32>
    %cst_252 = arith.constant dense<0.000000e+00> : vector<16x96xf32>
    %237 = tpu.matmul %236, %193, %cst_252 {dimension_numbers = #tpu.dot_dimension_numbers<[1], [0], [0], [1], [0, 0, 1, 1], [], []>} : vector<16x16xf32>, vector<16x96xf32>, vector<16x96xf32> -> vector<16x96xf32>
    %c6_253 = arith.constant 6 : index
    %c0_254 = arith.constant 0 : index
    %c0_255 = arith.constant 0 : index
    %238 = vector.load %arg12[%c6_253, %c0_254, %c0_255] : memref<9x96x96xf32, #tpu.memory_space<vmem>>, vector<1x96x96xf32>
    %239 = vector.shape_cast %238 : vector<1x96x96xf32> to vector<96x96xf32>
    %cst_256 = arith.constant dense<0.000000e+00> : vector<16x96xf32>
    %240 = tpu.matmul %237, %239, %cst_256 {dimension_numbers = #tpu.dot_dimension_numbers<[1], [0], [0], [1], [0, 0, 1, 1], [], []>} : vector<16x96xf32>, vector<96x96xf32>, vector<16x96xf32> -> vector<16x96xf32>
    %241 = arith.addf %234, %240 : vector<16x96xf32>
    %c7_257 = arith.constant 7 : index
    %c0_258 = arith.constant 0 : index
    %c0_259 = arith.constant 0 : index
    %242 = vector.load %arg11[%c7_257, %c0_258, %c0_259] : memref<9x16x16xf32, #tpu.memory_space<vmem>>, vector<1x16x16xf32>
    %243 = vector.shape_cast %242 : vector<1x16x16xf32> to vector<16x16xf32>
    %cst_260 = arith.constant dense<0.000000e+00> : vector<16x96xf32>
    %244 = tpu.matmul %243, %193, %cst_260 {dimension_numbers = #tpu.dot_dimension_numbers<[1], [0], [0], [1], [0, 0, 1, 1], [], []>} : vector<16x16xf32>, vector<16x96xf32>, vector<16x96xf32> -> vector<16x96xf32>
    %c7_261 = arith.constant 7 : index
    %c0_262 = arith.constant 0 : index
    %c0_263 = arith.constant 0 : index
    %245 = vector.load %arg12[%c7_261, %c0_262, %c0_263] : memref<9x96x96xf32, #tpu.memory_space<vmem>>, vector<1x96x96xf32>
    %246 = vector.shape_cast %245 : vector<1x96x96xf32> to vector<96x96xf32>
    %cst_264 = arith.constant dense<0.000000e+00> : vector<16x96xf32>
    %247 = tpu.matmul %244, %246, %cst_264 {dimension_numbers = #tpu.dot_dimension_numbers<[1], [0], [0], [1], [0, 0, 1, 1], [], []>} : vector<16x96xf32>, vector<96x96xf32>, vector<16x96xf32> -> vector<16x96xf32>
    %248 = arith.addf %241, %247 : vector<16x96xf32>
    %c8_265 = arith.constant 8 : index
    %c0_266 = arith.constant 0 : index
    %c0_267 = arith.constant 0 : index
    %249 = vector.load %arg11[%c8_265, %c0_266, %c0_267] : memref<9x16x16xf32, #tpu.memory_space<vmem>>, vector<1x16x16xf32>
    %250 = vector.shape_cast %249 : vector<1x16x16xf32> to vector<16x16xf32>
    %cst_268 = arith.constant dense<0.000000e+00> : vector<16x96xf32>
    %251 = tpu.matmul %250, %193, %cst_268 {dimension_numbers = #tpu.dot_dimension_numbers<[1], [0], [0], [1], [0, 0, 1, 1], [], []>} : vector<16x16xf32>, vector<16x96xf32>, vector<16x96xf32> -> vector<16x96xf32>
    %c8_269 = arith.constant 8 : index
    %c0_270 = arith.constant 0 : index
    %c0_271 = arith.constant 0 : index
    %252 = vector.load %arg12[%c8_269, %c0_270, %c0_271] : memref<9x96x96xf32, #tpu.memory_space<vmem>>, vector<1x96x96xf32>
    %253 = vector.shape_cast %252 : vector<1x96x96xf32> to vector<96x96xf32>
    %cst_272 = arith.constant dense<0.000000e+00> : vector<16x96xf32>
    %254 = tpu.matmul %251, %253, %cst_272 {dimension_numbers = #tpu.dot_dimension_numbers<[1], [0], [0], [1], [0, 0, 1, 1], [], []>} : vector<16x96xf32>, vector<96x96xf32>, vector<16x96xf32> -> vector<16x96xf32>
    %255 = arith.addf %248, %254 : vector<16x96xf32>
    %c0_273 = arith.constant 0 : index
    %c0_274 = arith.constant 0 : index
    %256 = vector.load %arg13[%c0_273, %c0_274] : memref<1x96xf32, #tpu.memory_space<vmem>>, vector<1x96xf32>
    %257 = vector.broadcast %256 : vector<1x96xf32> to vector<16x96xf32>
    %258 = arith.addf %255, %257 : vector<16x96xf32>
    %cst_275 = arith.constant 0.000000e+00 : f32
    %259 = vector.broadcast %cst_275 : f32 to vector<16x96xf32>
    %260 = arith.cmpf oge, %258, %259 : vector<16x96xf32>
    %cst_276 = arith.constant 0.00999999977 : f32
    %261 = vector.broadcast %cst_276 : f32 to vector<16x96xf32>
    %262 = arith.mulf %261, %258 : vector<16x96xf32>
    %263 = arith.select %260, %258, %262 : vector<16x96xi1>, vector<16x96xf32>
    %c0_277 = arith.constant 0 : index
    %c0_278 = arith.constant 0 : index
    %c0_279 = arith.constant 0 : index
    %264 = vector.load %arg11[%c0_277, %c0_278, %c0_279] : memref<9x16x16xf32, #tpu.memory_space<vmem>>, vector<1x16x16xf32>
    %265 = vector.shape_cast %264 : vector<1x16x16xf32> to vector<16x16xf32>
    %cst_280 = arith.constant dense<0.000000e+00> : vector<16x96xf32>
    %266 = tpu.matmul %265, %263, %cst_280 {dimension_numbers = #tpu.dot_dimension_numbers<[1], [0], [0], [1], [0, 0, 1, 1], [], []>} : vector<16x16xf32>, vector<16x96xf32>, vector<16x96xf32> -> vector<16x96xf32>
    %c0_281 = arith.constant 0 : index
    %c0_282 = arith.constant 0 : index
    %c0_283 = arith.constant 0 : index
    %267 = vector.load %arg14[%c0_281, %c0_282, %c0_283] : memref<9x96x96xf32, #tpu.memory_space<vmem>>, vector<1x96x96xf32>
    %268 = vector.shape_cast %267 : vector<1x96x96xf32> to vector<96x96xf32>
    %cst_284 = arith.constant dense<0.000000e+00> : vector<16x96xf32>
    %269 = tpu.matmul %266, %268, %cst_284 {dimension_numbers = #tpu.dot_dimension_numbers<[1], [0], [0], [1], [0, 0, 1, 1], [], []>} : vector<16x96xf32>, vector<96x96xf32>, vector<16x96xf32> -> vector<16x96xf32>
    %c1_285 = arith.constant 1 : index
    %c0_286 = arith.constant 0 : index
    %c0_287 = arith.constant 0 : index
    %270 = vector.load %arg11[%c1_285, %c0_286, %c0_287] : memref<9x16x16xf32, #tpu.memory_space<vmem>>, vector<1x16x16xf32>
    %271 = vector.shape_cast %270 : vector<1x16x16xf32> to vector<16x16xf32>
    %cst_288 = arith.constant dense<0.000000e+00> : vector<16x96xf32>
    %272 = tpu.matmul %271, %263, %cst_288 {dimension_numbers = #tpu.dot_dimension_numbers<[1], [0], [0], [1], [0, 0, 1, 1], [], []>} : vector<16x16xf32>, vector<16x96xf32>, vector<16x96xf32> -> vector<16x96xf32>
    %c1_289 = arith.constant 1 : index
    %c0_290 = arith.constant 0 : index
    %c0_291 = arith.constant 0 : index
    %273 = vector.load %arg14[%c1_289, %c0_290, %c0_291] : memref<9x96x96xf32, #tpu.memory_space<vmem>>, vector<1x96x96xf32>
    %274 = vector.shape_cast %273 : vector<1x96x96xf32> to vector<96x96xf32>
    %cst_292 = arith.constant dense<0.000000e+00> : vector<16x96xf32>
    %275 = tpu.matmul %272, %274, %cst_292 {dimension_numbers = #tpu.dot_dimension_numbers<[1], [0], [0], [1], [0, 0, 1, 1], [], []>} : vector<16x96xf32>, vector<96x96xf32>, vector<16x96xf32> -> vector<16x96xf32>
    %276 = arith.addf %269, %275 : vector<16x96xf32>
    %c2_293 = arith.constant 2 : index
    %c0_294 = arith.constant 0 : index
    %c0_295 = arith.constant 0 : index
    %277 = vector.load %arg11[%c2_293, %c0_294, %c0_295] : memref<9x16x16xf32, #tpu.memory_space<vmem>>, vector<1x16x16xf32>
    %278 = vector.shape_cast %277 : vector<1x16x16xf32> to vector<16x16xf32>
    %cst_296 = arith.constant dense<0.000000e+00> : vector<16x96xf32>
    %279 = tpu.matmul %278, %263, %cst_296 {dimension_numbers = #tpu.dot_dimension_numbers<[1], [0], [0], [1], [0, 0, 1, 1], [], []>} : vector<16x16xf32>, vector<16x96xf32>, vector<16x96xf32> -> vector<16x96xf32>
    %c2_297 = arith.constant 2 : index
    %c0_298 = arith.constant 0 : index
    %c0_299 = arith.constant 0 : index
    %280 = vector.load %arg14[%c2_297, %c0_298, %c0_299] : memref<9x96x96xf32, #tpu.memory_space<vmem>>, vector<1x96x96xf32>
    %281 = vector.shape_cast %280 : vector<1x96x96xf32> to vector<96x96xf32>
    %cst_300 = arith.constant dense<0.000000e+00> : vector<16x96xf32>
    %282 = tpu.matmul %279, %281, %cst_300 {dimension_numbers = #tpu.dot_dimension_numbers<[1], [0], [0], [1], [0, 0, 1, 1], [], []>} : vector<16x96xf32>, vector<96x96xf32>, vector<16x96xf32> -> vector<16x96xf32>
    %283 = arith.addf %276, %282 : vector<16x96xf32>
    %c3_301 = arith.constant 3 : index
    %c0_302 = arith.constant 0 : index
    %c0_303 = arith.constant 0 : index
    %284 = vector.load %arg11[%c3_301, %c0_302, %c0_303] : memref<9x16x16xf32, #tpu.memory_space<vmem>>, vector<1x16x16xf32>
    %285 = vector.shape_cast %284 : vector<1x16x16xf32> to vector<16x16xf32>
    %cst_304 = arith.constant dense<0.000000e+00> : vector<16x96xf32>
    %286 = tpu.matmul %285, %263, %cst_304 {dimension_numbers = #tpu.dot_dimension_numbers<[1], [0], [0], [1], [0, 0, 1, 1], [], []>} : vector<16x16xf32>, vector<16x96xf32>, vector<16x96xf32> -> vector<16x96xf32>
    %c3_305 = arith.constant 3 : index
    %c0_306 = arith.constant 0 : index
    %c0_307 = arith.constant 0 : index
    %287 = vector.load %arg14[%c3_305, %c0_306, %c0_307] : memref<9x96x96xf32, #tpu.memory_space<vmem>>, vector<1x96x96xf32>
    %288 = vector.shape_cast %287 : vector<1x96x96xf32> to vector<96x96xf32>
    %cst_308 = arith.constant dense<0.000000e+00> : vector<16x96xf32>
    %289 = tpu.matmul %286, %288, %cst_308 {dimension_numbers = #tpu.dot_dimension_numbers<[1], [0], [0], [1], [0, 0, 1, 1], [], []>} : vector<16x96xf32>, vector<96x96xf32>, vector<16x96xf32> -> vector<16x96xf32>
    %290 = arith.addf %283, %289 : vector<16x96xf32>
    %c4_309 = arith.constant 4 : index
    %c0_310 = arith.constant 0 : index
    %c0_311 = arith.constant 0 : index
    %291 = vector.load %arg11[%c4_309, %c0_310, %c0_311] : memref<9x16x16xf32, #tpu.memory_space<vmem>>, vector<1x16x16xf32>
    %292 = vector.shape_cast %291 : vector<1x16x16xf32> to vector<16x16xf32>
    %cst_312 = arith.constant dense<0.000000e+00> : vector<16x96xf32>
    %293 = tpu.matmul %292, %263, %cst_312 {dimension_numbers = #tpu.dot_dimension_numbers<[1], [0], [0], [1], [0, 0, 1, 1], [], []>} : vector<16x16xf32>, vector<16x96xf32>, vector<16x96xf32> -> vector<16x96xf32>
    %c4_313 = arith.constant 4 : index
    %c0_314 = arith.constant 0 : index
    %c0_315 = arith.constant 0 : index
    %294 = vector.load %arg14[%c4_313, %c0_314, %c0_315] : memref<9x96x96xf32, #tpu.memory_space<vmem>>, vector<1x96x96xf32>
    %295 = vector.shape_cast %294 : vector<1x96x96xf32> to vector<96x96xf32>
    %cst_316 = arith.constant dense<0.000000e+00> : vector<16x96xf32>
    %296 = tpu.matmul %293, %295, %cst_316 {dimension_numbers = #tpu.dot_dimension_numbers<[1], [0], [0], [1], [0, 0, 1, 1], [], []>} : vector<16x96xf32>, vector<96x96xf32>, vector<16x96xf32> -> vector<16x96xf32>
    %297 = arith.addf %290, %296 : vector<16x96xf32>
    %c5_317 = arith.constant 5 : index
    %c0_318 = arith.constant 0 : index
    %c0_319 = arith.constant 0 : index
    %298 = vector.load %arg11[%c5_317, %c0_318, %c0_319] : memref<9x16x16xf32, #tpu.memory_space<vmem>>, vector<1x16x16xf32>
    %299 = vector.shape_cast %298 : vector<1x16x16xf32> to vector<16x16xf32>
    %cst_320 = arith.constant dense<0.000000e+00> : vector<16x96xf32>
    %300 = tpu.matmul %299, %263, %cst_320 {dimension_numbers = #tpu.dot_dimension_numbers<[1], [0], [0], [1], [0, 0, 1, 1], [], []>} : vector<16x16xf32>, vector<16x96xf32>, vector<16x96xf32> -> vector<16x96xf32>
    %c5_321 = arith.constant 5 : index
    %c0_322 = arith.constant 0 : index
    %c0_323 = arith.constant 0 : index
    %301 = vector.load %arg14[%c5_321, %c0_322, %c0_323] : memref<9x96x96xf32, #tpu.memory_space<vmem>>, vector<1x96x96xf32>
    %302 = vector.shape_cast %301 : vector<1x96x96xf32> to vector<96x96xf32>
    %cst_324 = arith.constant dense<0.000000e+00> : vector<16x96xf32>
    %303 = tpu.matmul %300, %302, %cst_324 {dimension_numbers = #tpu.dot_dimension_numbers<[1], [0], [0], [1], [0, 0, 1, 1], [], []>} : vector<16x96xf32>, vector<96x96xf32>, vector<16x96xf32> -> vector<16x96xf32>
    %304 = arith.addf %297, %303 : vector<16x96xf32>
    %c6_325 = arith.constant 6 : index
    %c0_326 = arith.constant 0 : index
    %c0_327 = arith.constant 0 : index
    %305 = vector.load %arg11[%c6_325, %c0_326, %c0_327] : memref<9x16x16xf32, #tpu.memory_space<vmem>>, vector<1x16x16xf32>
    %306 = vector.shape_cast %305 : vector<1x16x16xf32> to vector<16x16xf32>
    %cst_328 = arith.constant dense<0.000000e+00> : vector<16x96xf32>
    %307 = tpu.matmul %306, %263, %cst_328 {dimension_numbers = #tpu.dot_dimension_numbers<[1], [0], [0], [1], [0, 0, 1, 1], [], []>} : vector<16x16xf32>, vector<16x96xf32>, vector<16x96xf32> -> vector<16x96xf32>
    %c6_329 = arith.constant 6 : index
    %c0_330 = arith.constant 0 : index
    %c0_331 = arith.constant 0 : index
    %308 = vector.load %arg14[%c6_329, %c0_330, %c0_331] : memref<9x96x96xf32, #tpu.memory_space<vmem>>, vector<1x96x96xf32>
    %309 = vector.shape_cast %308 : vector<1x96x96xf32> to vector<96x96xf32>
    %cst_332 = arith.constant dense<0.000000e+00> : vector<16x96xf32>
    %310 = tpu.matmul %307, %309, %cst_332 {dimension_numbers = #tpu.dot_dimension_numbers<[1], [0], [0], [1], [0, 0, 1, 1], [], []>} : vector<16x96xf32>, vector<96x96xf32>, vector<16x96xf32> -> vector<16x96xf32>
    %311 = arith.addf %304, %310 : vector<16x96xf32>
    %c7_333 = arith.constant 7 : index
    %c0_334 = arith.constant 0 : index
    %c0_335 = arith.constant 0 : index
    %312 = vector.load %arg11[%c7_333, %c0_334, %c0_335] : memref<9x16x16xf32, #tpu.memory_space<vmem>>, vector<1x16x16xf32>
    %313 = vector.shape_cast %312 : vector<1x16x16xf32> to vector<16x16xf32>
    %cst_336 = arith.constant dense<0.000000e+00> : vector<16x96xf32>
    %314 = tpu.matmul %313, %263, %cst_336 {dimension_numbers = #tpu.dot_dimension_numbers<[1], [0], [0], [1], [0, 0, 1, 1], [], []>} : vector<16x16xf32>, vector<16x96xf32>, vector<16x96xf32> -> vector<16x96xf32>
    %c7_337 = arith.constant 7 : index
    %c0_338 = arith.constant 0 : index
    %c0_339 = arith.constant 0 : index
    %315 = vector.load %arg14[%c7_337, %c0_338, %c0_339] : memref<9x96x96xf32, #tpu.memory_space<vmem>>, vector<1x96x96xf32>
    %316 = vector.shape_cast %315 : vector<1x96x96xf32> to vector<96x96xf32>
    %cst_340 = arith.constant dense<0.000000e+00> : vector<16x96xf32>
    %317 = tpu.matmul %314, %316, %cst_340 {dimension_numbers = #tpu.dot_dimension_numbers<[1], [0], [0], [1], [0, 0, 1, 1], [], []>} : vector<16x96xf32>, vector<96x96xf32>, vector<16x96xf32> -> vector<16x96xf32>
    %318 = arith.addf %311, %317 : vector<16x96xf32>
    %c8_341 = arith.constant 8 : index
    %c0_342 = arith.constant 0 : index
    %c0_343 = arith.constant 0 : index
    %319 = vector.load %arg11[%c8_341, %c0_342, %c0_343] : memref<9x16x16xf32, #tpu.memory_space<vmem>>, vector<1x16x16xf32>
    %320 = vector.shape_cast %319 : vector<1x16x16xf32> to vector<16x16xf32>
    %cst_344 = arith.constant dense<0.000000e+00> : vector<16x96xf32>
    %321 = tpu.matmul %320, %263, %cst_344 {dimension_numbers = #tpu.dot_dimension_numbers<[1], [0], [0], [1], [0, 0, 1, 1], [], []>} : vector<16x16xf32>, vector<16x96xf32>, vector<16x96xf32> -> vector<16x96xf32>
    %c8_345 = arith.constant 8 : index
    %c0_346 = arith.constant 0 : index
    %c0_347 = arith.constant 0 : index
    %322 = vector.load %arg14[%c8_345, %c0_346, %c0_347] : memref<9x96x96xf32, #tpu.memory_space<vmem>>, vector<1x96x96xf32>
    %323 = vector.shape_cast %322 : vector<1x96x96xf32> to vector<96x96xf32>
    %cst_348 = arith.constant dense<0.000000e+00> : vector<16x96xf32>
    %324 = tpu.matmul %321, %323, %cst_348 {dimension_numbers = #tpu.dot_dimension_numbers<[1], [0], [0], [1], [0, 0, 1, 1], [], []>} : vector<16x96xf32>, vector<96x96xf32>, vector<16x96xf32> -> vector<16x96xf32>
    %325 = arith.addf %318, %324 : vector<16x96xf32>
    %c0_349 = arith.constant 0 : index
    %c0_350 = arith.constant 0 : index
    %326 = vector.load %arg15[%c0_349, %c0_350] : memref<1x96xf32, #tpu.memory_space<vmem>>, vector<1x96xf32>
    %327 = vector.broadcast %326 : vector<1x96xf32> to vector<16x96xf32>
    %328 = arith.addf %325, %327 : vector<16x96xf32>
    %cst_351 = arith.constant 0.000000e+00 : f32
    %329 = vector.broadcast %cst_351 : f32 to vector<16x96xf32>
    %330 = arith.cmpf oge, %328, %329 : vector<16x96xf32>
    %cst_352 = arith.constant 0.00999999977 : f32
    %331 = vector.broadcast %cst_352 : f32 to vector<16x96xf32>
    %332 = arith.mulf %331, %328 : vector<16x96xf32>
    %333 = arith.select %330, %328, %332 : vector<16x96xi1>, vector<16x96xf32>
    %c0_353 = arith.constant 0 : index
    %c0_354 = arith.constant 0 : index
    %c0_355 = arith.constant 0 : index
    %334 = vector.load %arg16[%c0_353, %c0_354, %c0_355] : memref<1x16x96xf32, #tpu.memory_space<vmem>>, vector<1x16x96xf32>
    %335 = vector.shape_cast %334 : vector<1x16x96xf32> to vector<16x96xf32>
    %336 = vector.shape_cast %333 : vector<16x96xf32> to vector<1x16x96xf32>
    tpu.vector_store %arg16[%c0_353, %c0_354, %c0_355], %336 {strides = array<i32>} : memref<1x16x96xf32, #tpu.memory_space<vmem>>, vector<1x16x96xf32>,
    return
  }
  func.func @transform_0(%arg0: i32) -> (i32, i32, i32) {
    %c0_i32 = arith.constant 0 : i32
    %c0_i32_0 = arith.constant 0 : i32
    %c0_i32_1 = arith.constant 0 : i32
    return %arg0, %c0_i32, %c0_i32_0 : i32, i32, i32
  }
  func.func @transform_1(%arg0: i32) -> (i32, i32) {
    %c0_i32 = arith.constant 0 : i32
    %c0_i32_0 = arith.constant 0 : i32
    %c0_i32_1 = arith.constant 0 : i32
    return %c0_i32, %c0_i32_0 : i32, i32
  }
  func.func @transform_2(%arg0: i32) -> (i32, i32) {
    %c0_i32 = arith.constant 0 : i32
    %c0_i32_0 = arith.constant 0 : i32
    %c0_i32_1 = arith.constant 0 : i32
    return %c0_i32, %c0_i32_0 : i32, i32
  }
  func.func @transform_3(%arg0: i32) -> (i32, i32, i32) {
    %c0_i32 = arith.constant 0 : i32
    %c0_i32_0 = arith.constant 0 : i32
    %c0_i32_1 = arith.constant 0 : i32
    %c0_i32_2 = arith.constant 0 : i32
    return %c0_i32, %c0_i32_0, %c0_i32_1 : i32, i32, i32
  }
  func.func @transform_4(%arg0: i32) -> (i32, i32, i32) {
    %c0_i32 = arith.constant 0 : i32
    %c0_i32_0 = arith.constant 0 : i32
    %c0_i32_1 = arith.constant 0 : i32
    %c0_i32_2 = arith.constant 0 : i32
    return %c0_i32, %c0_i32_0, %c0_i32_1 : i32, i32, i32
  }
  func.func @transform_5(%arg0: i32) -> (i32, i32) {
    %c0_i32 = arith.constant 0 : i32
    %c0_i32_0 = arith.constant 0 : i32
    %c0_i32_1 = arith.constant 0 : i32
    return %c0_i32, %c0_i32_0 : i32, i32
  }
  func.func @transform_6(%arg0: i32) -> (i32, i32, i32) {
    %c0_i32 = arith.constant 0 : i32
    %c0_i32_0 = arith.constant 0 : i32
    %c0_i32_1 = arith.constant 0 : i32
    %c0_i32_2 = arith.constant 0 : i32
    return %c0_i32, %c0_i32_0, %c0_i32_1 : i32, i32, i32
  }
  func.func @transform_7(%arg0: i32) -> (i32, i32, i32) {
    %c0_i32 = arith.constant 0 : i32
    %c0_i32_0 = arith.constant 0 : i32
    %c0_i32_1 = arith.constant 0 : i32
    %c0_i32_2 = arith.constant 0 : i32
    return %c0_i32, %c0_i32_0, %c0_i32_1 : i32, i32, i32
  }
  func.func @transform_8(%arg0: i32) -> (i32, i32) {
    %c0_i32 = arith.constant 0 : i32
    %c0_i32_0 = arith.constant 0 : i32
    %c0_i32_1 = arith.constant 0 : i32
    return %c0_i32, %c0_i32_0 : i32, i32
  }
  func.func @transform_9(%arg0: i32) -> (i32, i32) {
    %c0_i32 = arith.constant 0 : i32
    %c0_i32_0 = arith.constant 0 : i32
    %c0_i32_1 = arith.constant 0 : i32
    return %c0_i32, %c0_i32_0 : i32, i32
  }
  func.func @transform_10(%arg0: i32) -> (i32, i32, i32) {
    %c0_i32 = arith.constant 0 : i32
    %c0_i32_0 = arith.constant 0 : i32
    %c0_i32_1 = arith.constant 0 : i32
    %c0_i32_2 = arith.constant 0 : i32
    return %c0_i32, %c0_i32_0, %c0_i32_1 : i32, i32, i32
  }
  func.func @transform_11(%arg0: i32) -> (i32, i32, i32) {
    %c0_i32 = arith.constant 0 : i32
    %c0_i32_0 = arith.constant 0 : i32
    %c0_i32_1 = arith.constant 0 : i32
    %c0_i32_2 = arith.constant 0 : i32
    return %c0_i32, %c0_i32_0, %c0_i32_1 : i32, i32, i32
  }
  func.func @transform_12(%arg0: i32) -> (i32, i32) {
    %c0_i32 = arith.constant 0 : i32
    %c0_i32_0 = arith.constant 0 : i32
    %c0_i32_1 = arith.constant 0 : i32
    return %c0_i32, %c0_i32_0 : i32, i32
  }
  func.func @transform_13(%arg0: i32) -> (i32, i32, i32) {
    %c0_i32 = arith.constant 0 : i32
    %c0_i32_0 = arith.constant 0 : i32
    %c0_i32_1 = arith.constant 0 : i32
    %c0_i32_2 = arith.constant 0 : i32
    return %c0_i32, %c0_i32_0, %c0_i32_1 : i32, i32, i32
  }
  func.func @transform_14(%arg0: i32) -> (i32, i32) {
    %c0_i32 = arith.constant 0 : i32
    %c0_i32_0 = arith.constant 0 : i32
    %c0_i32_1 = arith.constant 0 : i32
    return %c0_i32, %c0_i32_0 : i32, i32
  }
  func.func @transform_15(%arg0: i32) -> (i32, i32, i32) {
    %c0_i32 = arith.constant 0 : i32
    %c0_i32_0 = arith.constant 0 : i32
    %c0_i32_1 = arith.constant 0 : i32
    return %arg0, %c0_i32, %c0_i32_0 : i32, i32, i32
  }
}

</mosaic_0001>

<bundles_post_ra>
// kernel: small_nature_encoder3d.1
= control target key start
LH: loop header
LB: loop body
LE: loop exit
PB: predicated region body
PF: predicated region fallthrough
CT: control target
= control target key end

     0   :  { %s14091_s18 = smov 0   ;;  %s17420_s0 = inlined_call_operand.vmem [shape: f32[2,225,64], index: 0, kind: input, shape index: {}]   ;;  %s17421_s1 = inlined_call_operand.vmem [shape: f32[64,32], index: 1, kind: input, shape index: {}]   ;;  %s17422_s2 = inlined_call_operand.vmem [shape: f32[1,32], index: 2, kind: input, shape index: {}]   ;;  %s17423_s3 = inlined_call_operand.vmem [shape: f32[16,36,225], index: 3, kind: input, shape index: {}]   ;;  %s17424_s4 = inlined_call_operand.vmem [shape: f32[16,32,64], index: 4, kind: input, shape index: {}]   ;;  %s17425_s5 = inlined_call_operand.vmem [shape: f32[1,64], index: 5, kind: input, shape index: {}]   ;;  %s17426_s6 = inlined_call_operand.vmem [shape: f32[9,16,36], index: 6, kind: input, shape index: {}]   ;;  %s17427_s7 = inlined_call_operand.vmem [shape: f32[9,64,96], index: 7, kind: input, shape index: {}]   ;;  %s17428_s8 = inlined_call_operand.vmem [shape: f32[1,96], index: 8, kind: input, shape index: {}]   ;;  %s17429_s9 = inlined_call_operand.vmem [shape: f32[96,96], index: 9, kind: input, shape index: {}]   ;;  %s17430_s10 = inlined_call_operand.vmem [shape: f32[9,16,16], index: 10, kind: input, shape index: {}]   ;;  %s17431_s11 = inlined_call_operand.vmem [shape: f32[9,96,96], index: 11, kind: input, shape index: {}]   ;;  %s17432_s12 = inlined_call_operand.vmem [shape: f32[1,96], index: 12, kind: input, shape index: {}]   ;;  %s17433_s13 = inlined_call_operand.vmem [shape: f32[9,96,96], index: 13, kind: input, shape index: {}]   ;;  %s17434_s14 = inlined_call_operand.vmem [shape: f32[1,96], index: 14, kind: input, shape index: {}]   ;;  %s17435_s15 = inlined_call_operand.vmem [shape: f32[2,16,96], index: 15, kind: output, shape index: {}]  }
   0x1 LB: > { %s9497_s19 = sadd.s32 4294967295, %s14006_s18   ;;  %p9501_p0 = scmp.ge.s32.totalorder %s14006_s18, 1  ;;  %s14006_s18 = sphi %s14091_s18, %s25_s18  }
   0x2   : > { %p437_p1 = scmp.lt.s32.totalorder %s14006_s18, 3 }
   0x4   : > { %p438_p2 = pnand %p9501_p0, %p437_p1 }
   0x5   : > { %v524_v0 = vld [vmem:[%s17421_s1] sm:$0xff] (!%p438_p2)  ;;  %v525_v1 = vld [vmem:[%s17421_s1 + $0x8] sm:$0xff] (!%p438_p2)  ;;  %v526_v2 = vld [vmem:[%s17421_s1 + $0x10] sm:$0xff] (!%p438_p2)  ;;  %v14008_v3 = vmov (!%p438_p2), 0.0|0.0   ;;  %vm14009_vm0 = vmmov (!%p438_p2), 0   ;;  %v14010_v6 = vmov (!%p438_p2), 0.0  }
   0x6   : > { %441 = sbr.rel (%p438_p2) target bundleno = 7432 (0x1d08), region = 80  ;;  %12405 = vmatprep.subr.bf16.mxu0 (!%p438_p2), %v14008_v3  ;;  %v12406_v4 = vpack.c.bf16 (!%p438_p2), %v525_v1, %v524_v0  ;;  %v527_v5 = vld [vmem:[%s17421_s1 + $0x18] sm:$0xff] (!%p438_p2)  ;;  %11023 = vmatprep.mubr.msk.f32.mxu0 (!%p438_p2), %vm14009_vm0, %v14010_v6  ;;  %p485_p3 = scmp.lt.s32.totalorder (!%p438_p2), %s9497_s19, 1  ;;  %v528_v8 = vld [vmem:[%s17421_s1 + $0x20] sm:$0xff] (!%p438_p2)  ;;  %v529_v9 = vld [vmem:[%s17421_s1 + $0x28] sm:$0xff] (!%p438_p2)  ;;  %vm539_vm1 = vcmask (!%p438_p2), 523264  }
   0x7   : > { %13929 = vmatprep.subr.bf16.mxu1 (!%p438_p2), %v14008_v3  ;;  %11065 = vmatprep.mubr.msk.f32.mxu1 (!%p438_p2), %vm14009_vm0, %v14010_v6  ;;  %v12409_v7 = vpack.c.bf16 (!%p438_p2), %v527_v5, %v526_v2  ;;  %v12412_v10 = vpack.c.bf16 (!%p438_p2), %v529_v9, %v528_v8  ;;  %v530_v11 = vld [vmem:[%s17421_s1 + $0x30] sm:$0xff] (!%p438_p2)  ;;  %v531_v12 = vld [vmem:[%s17421_s1 + $0x38] sm:$0xff] (!%p438_p2)  ;;  %v867_v43 = vld [vmem:[%s17423_s3 + $0x8] sm:$0xff] (!%p438_p2)  ;;  %vm876_vm2 = vcmask (!%p438_p2), 793600   ;;  %vm892_vm3 = vcmask (!%p438_p2), 1040384  }
   0x8   : > { %12407 = vmatpush3.bf16.msra.mxu0 (!%p438_p2), %v12406_v4  ;;  %13933 = vmatpush3.bf16.msra.mxu1 (!%p438_p2), %v12406_v4  ;;  %v12415_v13 = vpack.c.bf16 (!%p438_p2), %v531_v12, %v530_v11  ;;  %v14266_v44 = vld [vmem:[%s17422_s2] ss:$0 sm:$0xff] (!%p438_p2)  ;;  %vm1111_vm4 = vcmask (!%p438_p2), 261120   ;;  %vm4575_vm5 = vcmask (!%p438_p2), 293888   ;;  %vm4582_vm6 = vcmask (!%p438_p2), 1043456  }
   0x9   : > { %12408 = vmatprep.subr.bf16.mxu0 (!%p438_p2), %v14008_v3  ;;  %13930 = vmatprep.subr.bf16.mxu1 (!%p438_p2), %v14008_v3  ;;  %vm6179_vm7 = vcmask (!%p438_p2), 785408   ;;  %vm6263_vm8 = vcmask (!%p438_p2), 130048  }
   0xc   : > { %12410 = vmatpush3.bf16.msra.mxu0 (!%p438_p2), %v12409_v7  ;;  %13934 = vmatpush3.bf16.msra.mxu1 (!%p438_p2), %v12409_v7 }
   0xd   : > { %s17437_s19 = smov (!%p485_p3, %s9497_s19), 1  ;;  %12411 = vmatprep.subr.bf16.mxu0 %v14008_v3  ;;  %13931 = vmatprep.subr.bf16.mxu1 %v14008_v3 }
   0xe   : > { %s13985_s23 = smul.u32 232, %s17437_s19  ;;  %s10334_s17 = sshll.u32 %s17437_s19, 4 }
   0xf   : > { %s494_s22 = scalar_lea.vmem %s17435_s15, %s10334_s17 }
  0x10   : > { %12413 = vmatpush3.bf16.msra.mxu0 %v12412_v10  ;;  %13935 = vmatpush3.bf16.msra.mxu1 %v12412_v10  ;;  %s14140_s26 = scalar_lea.vmem %s17420_s0, %s13985_s23 }
  0x11   : > { %12414 = vmatprep.subr.bf16.mxu0 %v14008_v3  ;;  %13932 = vmatprep.subr.bf16.mxu1 %v14008_v3  ;;  %v495_v14 = vld [vmem:[%s14140_s26] sm:$0xff]  ;;  %v509_v15 = vld [vmem:[%s14140_s26 + $0x70] sm:$0xff]  ;;  %v496_v16 = vld [vmem:[%s14140_s26 + $0x8] sm:$0xff] }
  0x12   : > { %v510_v17 = vld [vmem:[%s14140_s26 + $0x78] sm:$0xff]  ;;  %v497_v18 = vld [vmem:[%s14140_s26 + $0x10] sm:$0xff]  ;;  %v511_v19 = vld [vmem:[%s14140_s26 + $0x80] sm:$0xff] }
  0x13   : > { %v498_v20 = vld [vmem:[%s14140_s26 + $0x18] sm:$0xff]  ;;  %v512_v21 = vld [vmem:[%s14140_s26 + $0x88] sm:$0xff]  ;;  %v499_v22 = vld [vmem:[%s14140_s26 + $0x20] sm:$0xff] }
  0x14   : > { %12416 = vmatpush3.bf16.msra.mxu0 %v12415_v13  ;;  %13936 = vmatpush3.bf16.msra.mxu1 %v12415_v13  ;;  %v513_v23 = vld [vmem:[%s14140_s26 + $0x90] sm:$0xff]  ;;  %v500_v24 = vld [vmem:[%s14140_s26 + $0x28] sm:$0xff]  ;;  %v514_v25 = vld [vmem:[%s14140_s26 + $0x98] sm:$0xff] }
  0x15   : > { %12417 = vmatprep.subr.bf16.mxu1 %v14008_v3  ;;  %12501 = vmatprep.subr.bf16.mxu0 %v14008_v3  ;;  %v501_v26 = vld [vmem:[%s14140_s26 + $0x30] sm:$0xff]  ;;  %v515_v27 = vld [vmem:[%s14140_s26 + $0xa0] sm:$0xff]  ;;  %v502_v28 = vld [vmem:[%s14140_s26 + $0x38] sm:$0xff] }
  0x16   : > { %v516_v29 = vld [vmem:[%s14140_s26 + $0xa8] sm:$0xff]  ;;  %v503_v30 = vld [vmem:[%s14140_s26 + $0x40] sm:$0xff]  ;;  %v517_v31 = vld [vmem:[%s14140_s26 + $0xb0] sm:$0xff] }
  0x17   : > { %11024 = vmatmul.mubr.msk.f32.vlgmr.msra.gmra.mrb[0].mxu0 %vm539_vm1, %v495_v14  ;;  %11066 = vmatmul.mubr.msk.f32.vlgmr.msra.gmra.mrb[0].mxu1 %vm539_vm1, %v509_v15  ;;  %v504_v32 = vld [vmem:[%s14140_s26 + $0x48] sm:$0xff]  ;;  %v518_v33 = vld [vmem:[%s14140_s26 + $0xb8] sm:$0xff]  ;;  %v505_v34 = vld [vmem:[%s14140_s26 + $0x50] sm:$0xff] }
  0x18   : > { %11026 = vmatprep.mubr.msk.f32.mxu0 %vm14009_vm0, %v14010_v6  ;;  %11068 = vmatprep.mubr.msk.f32.mxu1 %vm14009_vm0, %v14010_v6  ;;  %v519_v35 = vld [vmem:[%s14140_s26 + $0xc0] sm:$0xff]  ;;  %v506_v36 = vld [vmem:[%s14140_s26 + $0x58] sm:$0xff]  ;;  %v520_v37 = vld [vmem:[%s14140_s26 + $0xc8] sm:$0xff] }
  0x19   : > { %v507_v38 = vld [vmem:[%s14140_s26 + $0x60] sm:$0xff]  ;;  %v521_v39 = vld [vmem:[%s14140_s26 + $0xd0] sm:$0xff]  ;;  %v508_v40 = vld [vmem:[%s14140_s26 + $0x68] sm:$0xff] }
  0x1a   : > { %v522_v41 = vld [vmem:[%s14140_s26 + $0xd8] sm:$0xff]  ;;  %v523_v42 = vld [vmem:[%s14140_s26 + $0xe0] sm:$0x1] }
  0x1b   : > { %11027 = vmatmul.mubr.msk.f32.gmra.mrb[2].mxu0 %vm539_vm1, %v496_v16  ;;  %11069 = vmatmul.mubr.msk.f32.gmra.mrb[2].mxu1 %vm539_vm1, %v510_v17 }
  0x1c   : > { %11029 = vmatprep.mubr.msk.f32.mxu0 %vm14009_vm0, %v14010_v6  ;;  %11071 = vmatprep.mubr.msk.f32.mxu1 %vm14009_vm0, %v14010_v6 }
  0x1f   : > { %11030 = vmatmul.mubr.msk.f32.gmra.mrb[4].mxu0 %vm539_vm1, %v497_v18  ;;  %11072 = vmatmul.mubr.msk.f32.gmra.mrb[4].mxu1 %vm539_vm1, %v511_v19 }
  0x20   : > { %11032 = vmatprep.mubr.msk.f32.mxu0 %vm14009_vm0, %v14010_v6  ;;  %11074 = vmatprep.mubr.msk.f32.mxu1 %vm14009_vm0, %v14010_v6 }
  0x23   : > { %11033 = vmatmul.mubr.msk.f32.gmra.mrb[6].mxu0 %vm539_vm1, %v498_v20  ;;  %11075 = vmatmul.mubr.msk.f32.gmra.mrb[6].mxu1 %vm539_vm1, %v512_v21 }
  0x24   : > { %11035 = vmatprep.mubr.msk.f32.mxu0 %vm14009_vm0, %v14010_v6  ;;  %11077 = vmatprep.mubr.msk.f32.mxu1 %vm14009_vm0, %v14010_v6 }
  0x27   : > { %11036 = vmatmul.mubr.msk.f32.gmra.mrb[8].mxu0 %vm539_vm1, %v499_v22  ;;  %11078 = vmatmul.mubr.msk.f32.gmra.mrb[8].mxu1 %vm539_vm1, %v513_v23 }
  0x28   : > { %11038 = vmatprep.mubr.msk.f32.mxu0 %vm14009_vm0, %v14010_v6  ;;  %11080 = vmatprep.mubr.msk.f32.mxu1 %vm14009_vm0, %v14010_v6 }
  0x2b   : > { %11039 = vmatmul.mubr.msk.f32.gmra.mrb[10].mxu0 %vm539_vm1, %v500_v24  ;;  %11081 = vmatmul.mubr.msk.f32.gmra.mrb[10].mxu1 %vm539_vm1, %v514_v25 }
  0x2c   : > { %11041 = vmatprep.mubr.msk.f32.mxu0 %vm14009_vm0, %v14010_v6  ;;  %11083 = vmatprep.mubr.msk.f32.mxu1 %vm14009_vm0, %v14010_v6 }
  0x2f   : > { %11042 = vmatmul.mubr.msk.f32.gmra.mrb[12].mxu0 %vm539_vm1, %v501_v26  ;;  %11084 = vmatmul.mubr.msk.f32.gmra.mrb[12].mxu1 %vm539_vm1, %v515_v27 }
  0x30   : > { %11044 = vmatprep.mubr.msk.f32.mxu0 %vm14009_vm0, %v14010_v6  ;;  %11086 = vmatprep.mubr.msk.f32.mxu1 %vm14009_vm0, %v14010_v6 }
  0x33   : > { %11045 = vmatmul.mubr.msk.f32.gmra.mrb[14].mxu0 %vm539_vm1, %v502_v28  ;;  %11087 = vmatmul.mubr.msk.f32.gmra.mrb[14].mxu1 %vm539_vm1, %v516_v29 }
  0x34   : > { %11047 = vmatprep.mubr.msk.f32.mxu0 %vm14009_vm0, %v14010_v6  ;;  %11089 = vmatprep.mubr.msk.f32.mxu1 %vm14009_vm0, %v14010_v6 }
  0x37   : > { %11048 = vmatmul.mubr.msk.f32.gmra.mrb[16].mxu0 %vm539_vm1, %v503_v30  ;;  %11090 = vmatmul.mubr.msk.f32.gmra.mrb[16].mxu1 %vm539_vm1, %v517_v31 }
  0x38   : > { %11050 = vmatprep.mubr.msk.f32.mxu0 %vm14009_vm0, %v14010_v6  ;;  %11092 = vmatprep.mubr.msk.f32.mxu1 %vm14009_vm0, %v14010_v6 }
  0x3b   : > { %11051 = vmatmul.mubr.msk.f32.gmra.mrb[18].mxu0 %vm539_vm1, %v504_v32  ;;  %11093 = vmatmul.mubr.msk.f32.gmra.mrb[18].mxu1 %vm539_vm1, %v518_v33 }
  0x3c   : > { %11053 = vmatprep.mubr.msk.f32.mxu0 %vm14009_vm0, %v14010_v6  ;;  %11095 = vmatprep.mubr.msk.f32.mxu1 %vm14009_vm0, %v14010_v6 }
  0x3f   : > { %11054 = vmatmul.mubr.msk.f32.gmra.mrb[20].mxu0 %vm539_vm1, %v505_v34  ;;  %11096 = vmatmul.mubr.msk.f32.gmra.mrb[20].mxu1 %vm539_vm1, %v519_v35 }
  0x40   : > { %11056 = vmatprep.mubr.msk.f32.mxu0 %vm14009_vm0, %v14010_v6  ;;  %11098 = vmatprep.mubr.msk.f32.mxu1 %vm14009_vm0, %v14010_v6 }
  0x43   : > { %11057 = vmatmul.mubr.msk.f32.gmra.mrb[22].mxu0 %vm539_vm1, %v506_v36  ;;  %11099 = vmatmul.mubr.msk.f32.gmra.mrb[22].mxu1 %vm539_vm1, %v520_v37 }
  0x44   : > { %11059 = vmatprep.mubr.msk.f32.mxu0 %vm14009_vm0, %v14010_v6  ;;  %11101 = vmatprep.mubr.msk.f32.mxu1 %vm14009_vm0, %v14010_v6 }
  0x47   : > { %11060 = vmatmul.mubr.msk.f32.gmra.mrb[24].mxu0 %vm539_vm1, %v507_v38  ;;  %11102 = vmatmul.mubr.msk.f32.gmra.mrb[24].mxu1 %vm539_vm1, %v521_v39 }
  0x48   : > { %11062 = vmatprep.mubr.msk.f32.mxu0 %vm14009_vm0, %v14010_v6  ;;  %11104 = vmatprep.mubr.msk.f32.mxu1 %vm14009_vm0, %v14010_v6 }
  0x4b   : > { %11063 = vmatmul.mubr.msk.f32.gmra.mrb[26].mxu0 %vm539_vm1, %v508_v40  ;;  %11105 = vmatmul.mubr.msk.f32.gmra.mrb[26].mxu1 %vm539_vm1, %v522_v41 }
  0x4c   : > { %11107 = vmatprep.mubr.msk.f32.mxu1 %vm14009_vm0, %v14010_v6  ;;  %11118 = vmatprep.mubr.msk.f32.mxu0 %vm14009_vm0, %v14010_v6 }
  0x4f   : > { %11108 = vmatmul.mubr.msk.f32.gmra.mrb[28].mxu1 %vm539_vm1, %v523_v42 }
  0x50   : > { %9536 = vmatprep.mubr.msk.f32.mxu1 %vm876_vm2, %v867_v43 }
  0xea   : > { %v693_v45 = vpop.f32.mrb[0].mxu0  ;;  %v763_v46 = vpop.f32.mrb[0].mxu1 }
  0xeb   : > { %v11025_v47 = vpop.f32.mrb[1].mxu0  ;;  %v764_v48 = vadd.f32 %v14266_v44, %v763_v46  ;;  %v11067_v49 = vpop.f32.mrb[1].mxu1  ;;  %v694_v50 = vadd.f32 %v14266_v44, %v693_v45 }
  0xed   : > { %v851_v55 = vmax.f32 %v764_v48, 0.0  ;;  %v837_v58 = vmax.f32 %v694_v50, 0.0 }
  0xee   : > { %v698_v51 = vpop.f32.mrb[2].mxu0  ;;  %v768_v52 = vpop.f32.mrb[2].mxu1 }
  0xef   : > { %v699_v53 = vadd.f32 %v14266_v44, %v698_v51  ;;  %v11028_v54 = vpop.f32.mrb[3].mxu0  ;;  %v769_v56 = vadd.f32 %v14266_v44, %v768_v52  ;;  %v11070_v57 = vpop.f32.mrb[3].mxu1 }
  0xf1   : > { %v838_v59 = vmax.f32 %v699_v53, 0.0  ;;  %v852_v60 = vmax.f32 %v769_v56, 0.0 }
  0xf2   : > { %v703_v61 = vpop.f32.mrb[4].mxu0  ;;  %v773_v62 = vpop.f32.mrb[4].mxu1 }
  0xf3   : > { %v14272_v63 = vpack.c.bf16 %v838_v59, %v837_v58  ;;  %v11031_v0 = vpop.f32.mrb[5].mxu0  ;;  %v14274_v1 = vpack.c.bf16 %v852_v60, %v851_v55  ;;  %v774_v2 = vadd.f32 %v14266_v44, %v773_v62  ;;  %v11073_v4 = vpop.f32.mrb[5].mxu1  ;;  %v704_v5 = vadd.f32 %v14266_v44, %v703_v61 }
  0xf5   : > { %12419 = vmatpush1.bf16.msra.mxu1 %v14272_v63  ;;  %v853_v11 = vmax.f32 %v774_v2, 0.0  ;;  %v839_v14 = vmax.f32 %v704_v5, 0.0 }
  0xf6   : > { %v708_v7 = vpop.f32.mrb[6].mxu0  ;;  %12420 = vmatprep.subr.bf16.mxu1 %v14008_v3  ;;  %v778_v8 = vpop.f32.mrb[6].mxu1 }
  0xf7   : > { %v709_v9 = vadd.f32 %v14266_v44, %v708_v7  ;;  %v11034_v10 = vpop.f32.mrb[7].mxu0  ;;  %v779_v12 = vadd.f32 %v14266_v44, %v778_v8  ;;  %v11076_v13 = vpop.f32.mrb[7].mxu1 }
  0xf9   : > { %v840_v15 = vmax.f32 %v709_v9, 0.0  ;;  %v854_v16 = vmax.f32 %v779_v12, 0.0 }
  0xfa   : > { %v713_v17 = vpop.f32.mrb[8].mxu0  ;;  %v783_v18 = vpop.f32.mrb[8].mxu1 }
  0xfb   : > { %v14282_v19 = vpack.c.bf16 %v840_v15, %v839_v14  ;;  %v11037_v20 = vpop.f32.mrb[9].mxu0  ;;  %v14284_v21 = vpack.c.bf16 %v854_v16, %v853_v11  ;;  %v784_v22 = vadd.f32 %v14266_v44, %v783_v18  ;;  %v11079_v23 = vpop.f32.mrb[9].mxu1  ;;  %v714_v24 = vadd.f32 %v14266_v44, %v713_v17 }
  0xfd   : > { %12422 = vmatpush1.bf16.msra.mxu1 %v14282_v19  ;;  %v855_v29 = vmax.f32 %v784_v22, 0.0  ;;  %v841_v32 = vmax.f32 %v714_v24, 0.0 }
  0xfe   : > { %v718_v25 = vpop.f32.mrb[10].mxu0  ;;  %12423 = vmatprep.subr.bf16.mxu1 %v14008_v3  ;;  %v788_v26 = vpop.f32.mrb[10].mxu1 }
  0xff   : > { %v719_v27 = vadd.f32 %v14266_v44, %v718_v25  ;;  %v11040_v28 = vpop.f32.mrb[11].mxu0  ;;  %v789_v30 = vadd.f32 %v14266_v44, %v788_v26  ;;  %v11082_v31 = vpop.f32.mrb[11].mxu1 }
 0x101   : > { %v842_v33 = vmax.f32 %v719_v27, 0.0  ;;  %v856_v34 = vmax.f32 %v789_v30, 0.0 }
 0x102   : > { %v723_v35 = vpop.f32.mrb[12].mxu0  ;;  %v793_v36 = vpop.f32.mrb[12].mxu1 }
 0x103   : > { %v14292_v37 = vpack.c.bf16 %v842_v33, %v841_v32  ;;  %v11043_v38 = vpop.f32.mrb[13].mxu0  ;;  %v14294_v39 = vpack.c.bf16 %v856_v34, %v855_v29  ;;  %v794_v40 = vadd.f32 %v14266_v44, %v793_v36  ;;  %v11085_v41 = vpop.f32.mrb[13].mxu1  ;;  %v724_v42 = vadd.f32 %v14266_v44, %v723_v35 }
 0x105   : > { %12425 = vmatpush1.bf16.msra.mxu1 %v14292_v37  ;;  %v857_v48 = vmax.f32 %v794_v40, 0.0  ;;  %v843_v51 = vmax.f32 %v724_v42, 0.0 }
 0x106   : > { %v728_v43 = vpop.f32.mrb[14].mxu0  ;;  %12426 = vmatprep.subr.bf16.mxu1 %v14008_v3  ;;  %v798_v45 = vpop.f32.mrb[14].mxu1 }
 0x107   : > { %v729_v46 = vadd.f32 %v14266_v44, %v728_v43  ;;  %v11046_v47 = vpop.f32.mrb[15].mxu0  ;;  %v799_v49 = vadd.f32 %v14266_v44, %v798_v45  ;;  %v11088_v50 = vpop.f32.mrb[15].mxu1 }
 0x109   : > { %v844_v52 = vmax.f32 %v729_v46, 0.0  ;;  %v858_v53 = vmax.f32 %v799_v49, 0.0 }
 0x10a   : > { %v733_v54 = vpop.f32.mrb[16].mxu0  ;;  %v803_v55 = vpop.f32.mrb[16].mxu1 }
 0x10b   : > { %v14302_v56 = vpack.c.bf16 %v844_v52, %v843_v51  ;;  %v11049_v57 = vpop.f32.mrb[17].mxu0  ;;  %v14304_v58 = vpack.c.bf16 %v858_v53, %v857_v48  ;;  %v804_v59 = vadd.f32 %v14266_v44, %v803_v55  ;;  %v11091_v60 = vpop.f32.mrb[17].mxu1  ;;  %v734_v61 = vadd.f32 %v14266_v44, %v733_v54 }
 0x10c   : > { %v866_v60 = vld [vmem:[%s17423_s3] sm:$0xff] }
 0x10d   : > { %12428 = vmatpush1.bf16.msra.mxu1 %v14302_v56  ;;  %v859_v5 = vmax.f32 %v804_v59, 0.0  ;;  %v845_v9 = vmax.f32 %v734_v61, 0.0  ;;  %v869_v61 = vld [vmem:[%s17423_s3 + $0x18] sm:$0xff] }
 0x10e   : > { %v738_v62 = vpop.f32.mrb[18].mxu0  ;;  %12429 = vmatprep.subr.bf16.mxu1 %v14008_v3  ;;  %v808_v0 = vpop.f32.mrb[18].mxu1 }
 0x10f   : > { %v739_v2 = vadd.f32 %v14266_v44, %v738_v62  ;;  %v11052_v4 = vpop.f32.mrb[19].mxu0  ;;  %v809_v7 = vadd.f32 %v14266_v44, %v808_v0  ;;  %v11094_v8 = vpop.f32.mrb[19].mxu1  ;;  %v868_v62 = vld [vmem:[%s17423_s3 + $0x10] sm:$0xff]  ;;  %v871_v0 = vld [vmem:[%s17423_s3 + $0x28] sm:$0xff] }
 0x110   : > { %v873_v4 = vld [vmem:[%s17423_s3 + $0x38] sm:$0xff]  ;;  %v874_v8 = vld [vmem:[%s17423_s3 + $0x40] sm:$0xf] }
 0x111   : > { %v846_v10 = vmax.f32 %v739_v2, 0.0  ;;  %v860_v11 = vmax.f32 %v809_v7, 0.0  ;;  %v870_v2 = vld [vmem:[%s17423_s3 + $0x20] sm:$0xff]  ;;  %v875_v7 = vld [vmem:[%s17423_s3 + $0x48] sm:$0xf] }
 0x112   : > { %v743_v12 = vpop.f32.mrb[20].mxu0  ;;  %v813_v13 = vpop.f32.mrb[20].mxu1 }
 0x113   : > { %v14312_v14 = vpack.c.bf16 %v846_v10, %v845_v9  ;;  %v11055_v15 = vpop.f32.mrb[21].mxu0  ;;  %v14314_v16 = vpack.c.bf16 %v860_v11, %v859_v5  ;;  %v814_v17 = vadd.f32 %v14266_v44, %v813_v13  ;;  %v11097_v18 = vpop.f32.mrb[21].mxu1  ;;  %v744_v20 = vadd.f32 %v14266_v44, %v743_v12  ;;  %v872_v5 = vld [vmem:[%s17423_s3 + $0x30] sm:$0xff]  ;;  %v9542_v9 = vld [vmem:[%s17423_s3 + $0x58] sm:$0xff]  ;;  %v986_v10 = vld [vmem:[%s17424_s4] sm:$0xff] }
 0x114   : > { %v987_v11 = vld [vmem:[%s17424_s4 + $0x8] sm:$0xff]  ;;  %v9541_v12 = vld [vmem:[%s17423_s3 + $0x50] sm:$0xff]  ;;  %v989_v18 = vld [vmem:[%s17424_s4 + $0x18] sm:$0xff] }
 0x115   : > { %12431 = vmatpush1.bf16.msra.mxu1 %v14312_v14  ;;  %v861_v26 = vmax.f32 %v814_v17, 0.0  ;;  %v847_v29 = vmax.f32 %v744_v20, 0.0  ;;  %v12508_v13 = vpack.c.bf16 %v987_v11, %v986_v10  ;;  %v9544_v15 = vld [vmem:[%s17423_s3 + $0x68] sm:$0xff]  ;;  %v988_v17 = vld [vmem:[%s17424_s4 + $0x10] sm:$0xff]  ;;  %v9543_v20 = vld [vmem:[%s17423_s3 + $0x60] sm:$0xff] }
 0x116   : > { %v748_v22 = vpop.f32.mrb[22].mxu0  ;;  %12432 = vmatprep.subr.bf16.mxu1 %v14008_v3  ;;  %v818_v23 = vpop.f32.mrb[22].mxu1  ;;  %v9578_v10 = vld [vmem:[%s17423_s3 + $0xd8] sm:$0xff]  ;;  %v9577_v11 = vld [vmem:[%s17423_s3 + $0xd0] sm:$0xff] }
 0x117   : > { %v749_v24 = vadd.f32 %v14266_v44, %v748_v22  ;;  %v11058_v25 = vpop.f32.mrb[23].mxu0  ;;  %v819_v27 = vadd.f32 %v14266_v44, %v818_v23  ;;  %v11100_v28 = vpop.f32.mrb[23].mxu1  ;;  %v12511_v22 = vpack.c.bf16 %v989_v18, %v988_v17  ;;  %v9546_v23 = vld [vmem:[%s17423_s3 + $0x78] sm:$0xff]  ;;  %v9588_v17 = vld [vmem:[%s17424_s4 + $0x48] sm:$0xff]  ;;  %v9589_v18 = vld [vmem:[%s17424_s4 + $0x50] sm:$0xff] }
 0x118   : > { %v9548_v25 = vld [vmem:[%s17423_s3 + $0x88] sm:$0xff]  ;;  %v9549_v28 = vld [vmem:[%s17423_s3 + $0x90] sm:$0xf] }
 0x119   : > { %v848_v30 = vmax.f32 %v749_v24, 0.0  ;;  %v862_v31 = vmax.f32 %v819_v27, 0.0  ;;  %v9545_v24 = vld [vmem:[%s17423_s3 + $0x70] sm:$0xff]  ;;  %v9550_v27 = vld [vmem:[%s17423_s3 + $0x98] sm:$0xf] }
 0x11a   : > { %v753_v32 = vpop.f32.mrb[24].mxu0  ;;  %v823_v33 = vpop.f32.mrb[24].mxu1 }
 0x11b   : > { %v14322_v34 = vpack.c.bf16 %v848_v30, %v847_v29  ;;  %v11061_v35 = vpop.f32.mrb[25].mxu0  ;;  %v14324_v36 = vpack.c.bf16 %v862_v31, %v861_v26  ;;  %v824_v38 = vadd.f32 %v14266_v44, %v823_v33  ;;  %v11103_v40 = vpop.f32.mrb[25].mxu1  ;;  %v754_v41 = vadd.f32 %v14266_v44, %v753_v32  ;;  %v9547_v26 = vld [vmem:[%s17423_s3 + $0x80] sm:$0xff]  ;;  %v9558_v30 = vld [vmem:[%s17424_s4 + $0x28] sm:$0xff]  ;;  %v9559_v31 = vld [vmem:[%s17424_s4 + $0x30] sm:$0xff] }
 0x11c   : > { %v9557_v29 = vld [vmem:[%s17424_s4 + $0x20] sm:$0xff]  ;;  %v9560_v33 = vld [vmem:[%s17424_s4 + $0x38] sm:$0xff] }
 0x11d   : > { %12434 = vmatpush1.bf16.msra.mxu1 %v14322_v34  ;;  %v863_v47 = vmax.f32 %v824_v38, 0.0  ;;  %v849_v50 = vmax.f32 %v754_v41, 0.0  ;;  %v12502_v32 = vpack.c.bf16 %v9558_v30, %v9557_v29  ;;  %v12505_v35 = vpack.c.bf16 %v9560_v33, %v9559_v31 }
 0x11e   : > { %v758_v42 = vpop.f32.mrb[26].mxu0  ;;  %12435 = vmatprep.subr.bf16.mxu1 %v14008_v3  ;;  %v828_v43 = vpop.f32.mrb[26].mxu1 }
 0x11f   : > { %v759_v45 = vadd.f32 %v14266_v44, %v758_v42  ;;  %v11064_v46 = vpop.f32.mrb[27].mxu0  ;;  %v829_v48 = vadd.f32 %v14266_v44, %v828_v43  ;;  %v11106_v49 = vpop.f32.mrb[27].mxu1  ;;  %12503 = vmatpush3.bf16.msra.mxu0 %v12502_v32 }
 0x120   : > { %12504 = vmatprep.subr.bf16.mxu0 %v14008_v3 }
 0x121   : > { %v850_v51 = vmax.f32 %v759_v45, 0.0  ;;  %v864_v52 = vmax.f32 %v829_v48, 0.0 }
 0x122   : > { %v833_v53 = vpop.f32.mrb[28].mxu1 }
 0x123   : > { %v14332_v54 = vpack.c.bf16 %v850_v51, %v849_v50  ;;  %v14334_v55 = vpack.c.bf16 %v864_v52, %v863_v47  ;;  %v834_v57 = vadd.f32 %v14266_v44, %v833_v53  ;;  %v11109_v59 = vpop.f32.mrb[29].mxu1  ;;  %12506 = vmatpush3.bf16.msra.mxu0 %v12505_v35 }
 0x124   : > { %12513 = vmatprep.subr.bf16.mxu0 %v14008_v3 }
 0x125   : > { %12437 = vmatpush1.bf16.msra.mxu1 %v14332_v54  ;;  %v14351_v44 = vmax.f32 %v834_v57, 0.0 }
 0x126   : > { %12438 = vmatprep.subr.bf16.mxu1 %v14008_v3 }
 0x129   : > { %12440 = vmatpush1.bf16.msra.mxu1 %v14274_v1 }
 0x12a   : > { %12441 = vmatprep.subr.bf16.mxu1 %v14008_v3 }
 0x12d   : > { %12443 = vmatpush1.bf16.msra.mxu1 %v14284_v21 }
 0x12e   : > { %12444 = vmatprep.subr.bf16.mxu1 %v14008_v3 }
 0x131   : > { %12446 = vmatpush1.bf16.msra.mxu1 %v14294_v39 }
 0x132   : > { %12447 = vmatprep.subr.bf16.mxu1 %v14008_v3 }
 0x135   : > { %12449 = vmatpush1.bf16.msra.mxu1 %v14304_v58 }
 0x136   : > { %12450 = vmatprep.subr.bf16.mxu1 %v14008_v3 }
 0x139   : > { %12452 = vmatpush1.bf16.msra.mxu1 %v14314_v16 }
 0x13a   : > { %12453 = vmatprep.subr.bf16.mxu1 %v14008_v3 }
 0x13d   : > { %12455 = vmatpush1.bf16.msra.mxu1 %v14324_v36 }
 0x13e   : > { %12456 = vmatprep.subr.bf16.mxu1 %v14008_v3 }
 0x141   : > { %12458 = vmatpush1.bf16.msra.mxu1 %v14334_v55 }
 0x142   : > { %952 = vmatprep.subr.mxu1 %v14010_v6 }
 0x145   : > { %9535 = vmatpush1.msk.msra.mxu1 %vm892_vm3, %v14351_v44 }
 0x146   : > { %961 = vmatmul.mubr.f32.vlgmr.msra.gmra.mrb[30].mxu1 %v866_v60  ;;  %12459 = vmatprep.subr.bf16.mxu1 %v14008_v3 }
 0x147   : > { %12461 = vmatpush1.bf16.msra.mxu1 %v14272_v63  ;;  %9537 = vmatprep.mubr.msk.f32.mxu1 %vm876_vm2, %v869_v61 }
 0x148   : > { %12462 = vmatprep.subr.bf16.mxu1 %v14008_v3 }
 0x14a   : > { %966 = vmatmul.mubr.f32.gmra.mrb[32].mxu1 %v868_v62  ;;  %v9572_v62 = vld [vmem:[%s17423_s3 + $0xa8] sm:$0xff] }
 0x14b   : > { %12464 = vmatpush1.bf16.msra.mxu1 %v14282_v19  ;;  %9538 = vmatprep.mubr.msk.f32.mxu1 %vm876_vm2, %v871_v0 }
 0x14c   : > { %12465 = vmatprep.subr.bf16.mxu1 %v14008_v3 }
 0x14e   : > { %971 = vmatmul.mubr.f32.gmra.mrb[34].mxu1 %v870_v2 }
 0x14f   : > { %12467 = vmatpush1.bf16.msra.mxu1 %v14292_v37  ;;  %9539 = vmatprep.mubr.msk.f32.mxu1 %vm876_vm2, %v873_v4  ;;  %v9571_v4 = vld [vmem:[%s17423_s3 + $0xa0] sm:$0xff] }
 0x150   : > { %12468 = vmatprep.subr.bf16.mxu1 %v14008_v3 }
 0x152   : > { %976 = vmatmul.mubr.f32.gmra.mrb[36].mxu1 %v872_v5  ;;  %v9574_v5 = vld [vmem:[%s17423_s3 + $0xb8] sm:$0xff] }
 0x153   : > { %12470 = vmatpush1.bf16.msra.mxu1 %v14302_v56  ;;  %9540 = vmatprep.mubr.msk.f32.mxu1 %vm876_vm2, %v875_v7  ;;  %v9573_v7 = vld [vmem:[%s17423_s3 + $0xb0] sm:$0xff] }
 0x154   : > { %12471 = vmatprep.subr.bf16.mxu1 %v14008_v3 }
 0x156   : > { %981 = vmatmul.mubr.f32.gmra.mrb[38].mxu1 %v874_v8  ;;  %v9576_v8 = vld [vmem:[%s17423_s3 + $0xc8] sm:$0xff] }
 0x157   : > { %12473 = vmatpush1.bf16.msra.mxu1 %v14312_v14  ;;  %9552 = vmatprep.mubr.msk.f32.mxu1 %vm876_vm2, %v9542_v9  ;;  %v9575_v9 = vld [vmem:[%s17423_s3 + $0xc0] sm:$0xff] }
 0x158   : > { %12474 = vmatprep.subr.bf16.mxu1 %v14008_v3 }
 0x15b   : > { %12476 = vmatpush1.bf16.msra.mxu1 %v14322_v34 }
 0x15c   : > { %12477 = vmatprep.subr.bf16.mxu1 %v14008_v3 }
 0x15f   : > { %12479 = vmatpush1.bf16.msra.mxu1 %v14332_v54 }
 0x160   : > { %12480 = vmatprep.subr.bf16.mxu1 %v14008_v3 }
 0x163   : > { %12482 = vmatpush1.bf16.msra.mxu1 %v14274_v1 }
 0x164   : > { %12483 = vmatprep.subr.bf16.mxu1 %v14008_v3 }
 0x167   : > { %12485 = vmatpush1.bf16.msra.mxu1 %v14284_v21 }
 0x168   : > { %12486 = vmatprep.subr.bf16.mxu1 %v14008_v3 }
 0x16b   : > { %12488 = vmatpush1.bf16.msra.mxu1 %v14294_v39 }
 0x16c   : > { %12489 = vmatprep.subr.bf16.mxu1 %v14008_v3 }
 0x16f   : > { %12491 = vmatpush1.bf16.msra.mxu1 %v14304_v58 }
 0x170   : > { %12492 = vmatprep.subr.bf16.mxu1 %v14008_v3 }
 0x173   : > { %12494 = vmatpush1.bf16.msra.mxu1 %v14314_v16 }
 0x174   : > { %12495 = vmatprep.subr.bf16.mxu1 %v14008_v3 }
 0x177   : > { %12497 = vmatpush1.bf16.msra.mxu1 %v14324_v36 }
 0x178   : > { %12498 = vmatprep.subr.bf16.mxu1 %v14008_v3 }
 0x17b   : > { %12500 = vmatpush1.bf16.msra.mxu1 %v14334_v55 }
 0x17c   : > { %1072 = vmatprep.subr.mxu1 %v14010_v6 }
 0x17f   : > { %9551 = vmatpush1.msk.msra.mxu1 %vm892_vm3, %v14351_v44 }
 0x180   : > { %1081 = vmatmul.mubr.f32.vlgmr.msra.gmra.mrb[40].mxu1 %v9541_v12  ;;  %12507 = vmatprep.subr.bf16.mxu1 %v14008_v3  ;;  %v9580_v12 = vld [vmem:[%s17423_s3 + $0xe8] sm:$0xf] }
 0x181   : > { %9553 = vmatprep.mubr.msk.f32.mxu1 %vm876_vm2, %v9544_v15  ;;  %12509 = vmatpush3.bf16.msra.mxu1 %v12508_v13  ;;  %v9579_v13 = vld [vmem:[%s17423_s3 + $0xe0] sm:$0xf] }
 0x182   : > { %12510 = vmatprep.subr.bf16.mxu1 %v14008_v3  ;;  %v9587_v15 = vld [vmem:[%s17424_s4 + $0x40] sm:$0xff] }
 0x184   : > { %1086 = vmatmul.mubr.f32.gmra.mrb[42].mxu1 %v9543_v20  ;;  %v12556_v20 = vpack.c.bf16 %v9588_v17, %v9587_v15  ;;  %v9603_v15 = vld [vmem:[%s17423_s3 + $0x128] sm:$0xff]  ;;  %v9602_v17 = vld [vmem:[%s17423_s3 + $0x120] sm:$0xff] }
 0x185   : > { %9554 = vmatprep.mubr.msk.f32.mxu1 %vm876_vm2, %v9546_v23  ;;  %12512 = vmatpush3.bf16.msra.mxu1 %v12511_v22  ;;  %v9590_v22 = vld [vmem:[%s17424_s4 + $0x58] sm:$0xff] }
 0x186   : > { %12555 = vmatprep.subr.bf16.mxu1 %v14008_v3  ;;  %v12559_v23 = vpack.c.bf16 %v9590_v22, %v9589_v18  ;;  %v9605_v18 = vld [vmem:[%s17423_s3 + $0x138] sm:$0xf]  ;;  %v9612_v22 = vld [vmem:[%s17424_s4 + $0x60] sm:$0xff] }
 0x188   : > { %1091 = vmatmul.mubr.f32.gmra.mrb[44].mxu1 %v9545_v24 }
 0x189   : > { %9555 = vmatprep.mubr.msk.f32.mxu1 %vm876_vm2, %v9548_v25 }
 0x18c   : > { %1096 = vmatmul.mubr.f32.gmra.mrb[46].mxu1 %v9547_v26 }
 0x18d   : > { %9556 = vmatprep.mubr.msk.f32.mxu1 %vm876_vm2, %v9550_v27 }
 0x190   : > { %1101 = vmatmul.mubr.f32.gmra.mrb[48].mxu1 %v9549_v28 }
 0x191   : > { %11141 = vmatprep.mubr.msk.f32.mxu1 %vm14009_vm0, %v14010_v6 }
 0x219   : > { %v962_v38 = vpop.f32.mrb[30].mxu1 }
 0x21a   : > { %v964_v40 = vpop.f32.mrb[31].mxu1  ;;  %11142 = vmatmul.mubr.msk.f32.vlgmr.msra.gmra.mrb[50].mxu1 %vm1111_vm4, %v962_v38 }
 0x21b   : > { %11144 = vmatprep.mubr.msk.f32.mxu1 %vm14009_vm0, %v14010_v6  ;;  %12557 = vmatpush3.bf16.msra.mxu1 %v12556_v20  ;;  %v9604_v20 = vld [vmem:[%s17423_s3 + $0x130] sm:$0xf] }
 0x21c   : > { %12558 = vmatprep.subr.bf16.mxu1 %v14008_v3 }
 0x21d   : > { %v967_v41 = vpop.f32.mrb[32].mxu1 }
 0x21e   : > { %v969_v42 = vpop.f32.mrb[33].mxu1  ;;  %11145 = vmatmul.mubr.msk.f32.gmra.mrb[52].mxu1 %vm1111_vm4, %v967_v41 }
 0x21f   : > { %11147 = vmatprep.mubr.msk.f32.mxu1 %vm14009_vm0, %v14010_v6  ;;  %12560 = vmatpush3.bf16.msra.mxu1 %v12559_v23  ;;  %v9613_v23 = vld [vmem:[%s17424_s4 + $0x68] sm:$0xff] }
 0x220   : > { %12561 = vmatprep.subr.bf16.mxu1 %v14008_v3 }
 0x221   : > { %v972_v43 = vpop.f32.mrb[34].mxu1 }
 0x222   : > { %v974_v45 = vpop.f32.mrb[35].mxu1  ;;  %11148 = vmatmul.mubr.msk.f32.gmra.mrb[54].mxu1 %vm1111_vm4, %v972_v43 }
 0x223   : > { %11150 = vmatprep.mubr.msk.f32.mxu1 %vm14009_vm0, %v14010_v6 }
 0x225   : > { %v977_v46 = vpop.f32.mrb[36].mxu1 }
 0x226   : > { %v979_v47 = vpop.f32.mrb[37].mxu1  ;;  %11151 = vmatmul.mubr.msk.f32.gmra.mrb[56].mxu1 %vm1111_vm4, %v977_v46 }
 0x227   : > { %11153 = vmatprep.mubr.msk.f32.mxu1 %vm14009_vm0, %v14010_v6 }
 0x229   : > { %v982_v48 = vpop.f32.mrb[38].mxu1 }
 0x22a   : > { %v984_v49 = vpop.f32.mrb[39].mxu1  ;;  %11154 = vmatmul.mubr.msk.f32.gmra.mrb[58].mxu1 %vm1111_vm4, %v982_v48 }
 0x22b   : > { %11164 = vmatprep.mubr.msk.f32.mxu1 %vm14009_vm0, %v14010_v6 }
 0x253   : > { %v1082_v50 = vpop.f32.mrb[40].mxu1 }
 0x254   : > { %v1084_v51 = vpop.f32.mrb[41].mxu1  ;;  %11119 = vmatmul.mubr.msk.f32.vlgmr.msra.gmra.mrb[28].mxu0 %vm1111_vm4, %v1082_v50 }
 0x255   : > { %12515 = vmatpush1.bf16.msra.mxu0 %v14272_v63  ;;  %11121 = vmatprep.mubr.msk.f32.mxu0 %vm14009_vm0, %v14010_v6 }
 0x256   : > { %12516 = vmatprep.subr.bf16.mxu0 %v14008_v3 }
 0x257   : > { %v1087_v52 = vpop.f32.mrb[42].mxu1 }
 0x258   : > { %11122 = vmatmul.mubr.msk.f32.gmra.mrb[30].mxu0 %vm1111_vm4, %v1087_v52  ;;  %v1089_v53 = vpop.f32.mrb[43].mxu1 }
 0x259   : > { %12518 = vmatpush1.bf16.msra.mxu0 %v14282_v19  ;;  %11124 = vmatprep.mubr.msk.f32.mxu0 %vm14009_vm0, %v14010_v6 }
 0x25a   : > { %12519 = vmatprep.subr.bf16.mxu0 %v14008_v3 }
 0x25b   : > { %v1092_v57 = vpop.f32.mrb[44].mxu1 }
 0x25c   : > { %11125 = vmatmul.mubr.msk.f32.gmra.mrb[32].mxu0 %vm1111_vm4, %v1092_v57  ;;  %v1094_v59 = vpop.f32.mrb[45].mxu1 }
 0x25d   : > { %12521 = vmatpush1.bf16.msra.mxu0 %v14292_v37  ;;  %11127 = vmatprep.mubr.msk.f32.mxu0 %vm14009_vm0, %v14010_v6 }
 0x25e   : > { %12522 = vmatprep.subr.bf16.mxu0 %v14008_v3 }
 0x25f   : > { %v1097_v60 = vpop.f32.mrb[46].mxu1 }
 0x260   : > { %11128 = vmatmul.mubr.msk.f32.gmra.mrb[34].mxu0 %vm1111_vm4, %v1097_v60  ;;  %v1099_v61 = vpop.f32.mrb[47].mxu1 }
 0x261   : > { %12524 = vmatpush1.bf16.msra.mxu0 %v14302_v56  ;;  %11130 = vmatprep.mubr.msk.f32.mxu0 %vm14009_vm0, %v14010_v6 }
 0x262   : > { %12525 = vmatprep.subr.bf16.mxu0 %v14008_v3 }
 0x263   : > { %v1102_v0 = vpop.f32.mrb[48].mxu1 }
 0x264   : > { %11131 = vmatmul.mubr.msk.f32.gmra.mrb[36].mxu0 %vm1111_vm4, %v1102_v0  ;;  %v1104_v2 = vpop.f32.mrb[49].mxu1 }
 0x265   : > { %12527 = vmatpush1.bf16.msra.mxu0 %v14312_v14  ;;  %9582 = vmatprep.mubr.msk.f32.mxu0 %vm876_vm2, %v9572_v62 }
 0x266   : > { %12528 = vmatprep.subr.bf16.mxu0 %v14008_v3 }
 0x269   : > { %12530 = vmatpush1.bf16.msra.mxu0 %v14322_v34 }
 0x26a   : > { %12531 = vmatprep.subr.bf16.mxu0 %v14008_v3 }
 0x26d   : > { %12533 = vmatpush1.bf16.msra.mxu0 %v14332_v54 }
 0x26e   : > { %12534 = vmatprep.subr.bf16.mxu0 %v14008_v3 }
 0x271   : > { %12536 = vmatpush1.bf16.msra.mxu0 %v14274_v1 }
 0x272   : > { %12537 = vmatprep.subr.bf16.mxu0 %v14008_v3 }
 0x275   : > { %12539 = vmatpush1.bf16.msra.mxu0 %v14284_v21 }
 0x276   : > { %12540 = vmatprep.subr.bf16.mxu0 %v14008_v3 }
 0x279   : > { %12542 = vmatpush1.bf16.msra.mxu0 %v14294_v39 }
 0x27a   : > { %12543 = vmatprep.subr.bf16.mxu0 %v14008_v3 }
 0x27d   : > { %12545 = vmatpush1.bf16.msra.mxu0 %v14304_v58 }
 0x27e   : > { %12546 = vmatprep.subr.bf16.mxu0 %v14008_v3 }
 0x281   : > { %12548 = vmatpush1.bf16.msra.mxu0 %v14314_v16 }
 0x282   : > { %12549 = vmatprep.subr.bf16.mxu0 %v14008_v3 }
 0x285   : > { %12551 = vmatpush1.bf16.msra.mxu0 %v14324_v36 }
 0x286   : > { %12552 = vmatprep.subr.bf16.mxu0 %v14008_v3 }
 0x289   : > { %12554 = vmatpush1.bf16.msra.mxu0 %v14334_v55 }
 0x28a   : > { %1404 = vmatprep.subr.mxu0 %v14010_v6 }
 0x28d   : > { %9581 = vmatpush1.msk.msra.mxu0 %vm892_vm3, %v14351_v44 }
 0x28e   : > { %1413 = vmatmul.mubr.f32.vlgmr.msra.gmra.mrb[38].mxu0 %v9571_v4  ;;  %12603 = vmatprep.subr.bf16.mxu0 %v14008_v3 }
 0x28f   : > { %9583 = vmatprep.mubr.msk.f32.mxu0 %vm876_vm2, %v9574_v5  ;;  %v9597_v5 = vld [vmem:[%s17423_s3 + $0xf8] sm:$0xff] }
 0x292   : > { %1418 = vmatmul.mubr.f32.gmra.mrb[40].mxu0 %v9573_v7 }
 0x293   : > { %9584 = vmatprep.mubr.msk.f32.mxu0 %vm876_vm2, %v9576_v8 }
 0x296   : > { %1423 = vmatmul.mubr.f32.gmra.mrb[42].mxu0 %v9575_v9  ;;  %v9596_v9 = vld [vmem:[%s17423_s3 + $0xf0] sm:$0xff] }
 0x297   : > { %9585 = vmatprep.mubr.msk.f32.mxu0 %vm876_vm2, %v9578_v10  ;;  %v9599_v10 = vld [vmem:[%s17423_s3 + $0x108] sm:$0xff] }
 0x29a   : > { %1428 = vmatmul.mubr.f32.gmra.mrb[44].mxu0 %v9577_v11  ;;  %v9598_v11 = vld [vmem:[%s17423_s3 + $0x100] sm:$0xff] }
 0x29b   : > { %9586 = vmatprep.mubr.msk.f32.mxu0 %vm876_vm2, %v9580_v12  ;;  %v9601_v12 = vld [vmem:[%s17423_s3 + $0x118] sm:$0xff] }
 0x29e   : > { %1433 = vmatmul.mubr.f32.gmra.mrb[46].mxu0 %v9579_v13  ;;  %v9600_v13 = vld [vmem:[%s17423_s3 + $0x110] sm:$0xff] }
 0x29f   : > { %11187 = vmatprep.mubr.msk.f32.mxu0 %vm14009_vm0, %v14010_v6 }
 0x2ed   : > { %v1298_v24 = vpop.f32.mrb[50].mxu1 }
 0x2ee   : > { %v11143_v25 = vpop.f32.mrb[51].mxu1 }
 0x2ef   : > { %v12604_v25 = vpack.c.bf16 %v9613_v23, %v9612_v22 }
 0x2f1   : > { %v1303_v26 = vpop.f32.mrb[52].mxu1  ;;  %12605 = vmatpush3.bf16.msra.mxu0 %v12604_v25 }
 0x2f2   : > { %v11146_v27 = vpop.f32.mrb[53].mxu1  ;;  %12606 = vmatprep.subr.bf16.mxu0 %v14008_v3 }
 0x2f5   : > { %v1308_v28 = vpop.f32.mrb[54].mxu1 }
 0x2f6   : > { %v11149_v29 = vpop.f32.mrb[55].mxu1 }
 0x2f9   : > { %v1313_v30 = vpop.f32.mrb[56].mxu1 }
 0x2fa   : > { %v11152_v31 = vpop.f32.mrb[57].mxu1 }
 0x2fd   : > { %v1318_v32 = vpop.f32.mrb[58].mxu1 }
 0x2fe   : > { %v11155_v33 = vpop.f32.mrb[59].mxu1 }
 0x327   : > { %v1193_v35 = vpop.f32.mrb[28].mxu0 }
 0x328   : > { %v14595_v38 = vadd.f32 %v1298_v24, %v1193_v35  ;;  %v11120_v40 = vpop.f32.mrb[29].mxu0  ;;  %v9614_v24 = vld [vmem:[%s17424_s4 + $0x70] sm:$0xff] }
 0x32b   : > { %v1198_v41 = vpop.f32.mrb[30].mxu0 }
 0x32c   : > { %v14597_v42 = vadd.f32 %v1303_v26, %v1198_v41  ;;  %v11123_v43 = vpop.f32.mrb[31].mxu0  ;;  %v9615_v26 = vld [vmem:[%s17424_s4 + $0x78] sm:$0xff] }
 0x32d   : > { %v12607_v27 = vpack.c.bf16 %v9615_v26, %v9614_v24 }
 0x32f   : > { %v1203_v45 = vpop.f32.mrb[32].mxu0  ;;  %12608 = vmatpush3.bf16.msra.mxu0 %v12607_v27 }
 0x330   : > { %v14599_v46 = vadd.f32 %v1308_v28, %v1203_v45  ;;  %v11126_v47 = vpop.f32.mrb[33].mxu0  ;;  %12609 = vmatprep.subr.bf16.mxu0 %v14008_v3 }
 0x333   : > { %v1208_v48 = vpop.f32.mrb[34].mxu0 }
 0x334   : > { %v14601_v49 = vadd.f32 %v1313_v30, %v1208_v48  ;;  %v11129_v50 = vpop.f32.mrb[35].mxu0 }
 0x337   : > { %v1213_v51 = vpop.f32.mrb[36].mxu0 }
 0x338   : > { %v14603_v52 = vadd.f32 %v1318_v32, %v1213_v51  ;;  %v11132_v53 = vpop.f32.mrb[37].mxu0 }
 0x361   : > { %v1414_v57 = vpop.f32.mrb[38].mxu0 }
 0x362   : > { %v1416_v59 = vpop.f32.mrb[39].mxu0  ;;  %11165 = vmatmul.mubr.msk.f32.vlgmr.msra.gmra.mrb[60].mxu1 %vm1111_vm4, %v1414_v57 }
 0x363   : > { %12563 = vmatpush1.bf16.msra.mxu1 %v14272_v63  ;;  %11167 = vmatprep.mubr.msk.f32.mxu1 %vm14009_vm0, %v14010_v6 }
 0x364   : > { %12564 = vmatprep.subr.bf16.mxu1 %v14008_v3 }
 0x365   : > { %v1419_v60 = vpop.f32.mrb[40].mxu0 }
 0x366   : > { %11168 = vmatmul.mubr.msk.f32.gmra.mrb[62].mxu1 %vm1111_vm4, %v1419_v60  ;;  %v1421_v61 = vpop.f32.mrb[41].mxu0  ;;  %v9622_v60 = vld [vmem:[%s17423_s3 + $0x148] sm:$0xff] }
 0x367   : > { %12566 = vmatpush1.bf16.msra.mxu1 %v14282_v19  ;;  %11170 = vmatprep.mubr.msk.f32.mxu1 %vm14009_vm0, %v14010_v6 }
 0x368   : > { %12567 = vmatprep.subr.bf16.mxu1 %v14008_v3 }
 0x369   : > { %v1424_v62 = vpop.f32.mrb[42].mxu0 }
 0x36a   : > { %11171 = vmatmul.mubr.msk.f32.gmra.mrb[64].mxu1 %vm1111_vm4, %v1424_v62  ;;  %v1426_v0 = vpop.f32.mrb[43].mxu0 }
 0x36b   : > { %12569 = vmatpush1.bf16.msra.mxu1 %v14292_v37  ;;  %11173 = vmatprep.mubr.msk.f32.mxu1 %vm14009_vm0, %v14010_v6  ;;  %v9621_v0 = vld [vmem:[%s17423_s3 + $0x140] sm:$0xff] }
 0x36c   : > { %12570 = vmatprep.subr.bf16.mxu1 %v14008_v3 }
 0x36d   : > { %v1429_v2 = vpop.f32.mrb[44].mxu0 }
 0x36e   : > { %11174 = vmatmul.mubr.msk.f32.gmra.mrb[66].mxu1 %vm1111_vm4, %v1429_v2  ;;  %v1431_v4 = vpop.f32.mrb[45].mxu0  ;;  %v9624_v2 = vld [vmem:[%s17423_s3 + $0x158] sm:$0xff] }
 0x36f   : > { %12572 = vmatpush1.bf16.msra.mxu1 %v14302_v56  ;;  %11176 = vmatprep.mubr.msk.f32.mxu1 %vm14009_vm0, %v14010_v6  ;;  %v9623_v4 = vld [vmem:[%s17423_s3 + $0x150] sm:$0xff] }
 0x370   : > { %12573 = vmatprep.subr.bf16.mxu1 %v14008_v3 }
 0x371   : > { %v1434_v7 = vpop.f32.mrb[46].mxu0 }
 0x372   : > { %11177 = vmatmul.mubr.msk.f32.gmra.mrb[68].mxu1 %vm1111_vm4, %v1434_v7  ;;  %v1436_v8 = vpop.f32.mrb[47].mxu0  ;;  %v9625_v7 = vld [vmem:[%s17423_s3 + $0x160] sm:$0xff] }
 0x373   : > { %12575 = vmatpush1.bf16.msra.mxu1 %v14312_v14  ;;  %9607 = vmatprep.mubr.msk.f32.mxu1 %vm876_vm2, %v9597_v5  ;;  %v9626_v5 = vld [vmem:[%s17423_s3 + $0x168] sm:$0xff]  ;;  %v9628_v8 = vld [vmem:[%s17423_s3 + $0x178] sm:$0xff] }
 0x374   : > { %12576 = vmatprep.subr.bf16.mxu1 %v14008_v3 }
 0x377   : > { %12578 = vmatpush1.bf16.msra.mxu1 %v14322_v34 }
 0x378   : > { %12579 = vmatprep.subr.bf16.mxu1 %v14008_v3 }
 0x37b   : > { %12581 = vmatpush1.bf16.msra.mxu1 %v14332_v54 }
 0x37c   : > { %12582 = vmatprep.subr.bf16.mxu1 %v14008_v3 }
 0x37f   : > { %12584 = vmatpush1.bf16.msra.mxu1 %v14274_v1 }
 0x380   : > { %12585 = vmatprep.subr.bf16.mxu1 %v14008_v3 }
 0x383   : > { %12587 = vmatpush1.bf16.msra.mxu1 %v14284_v21 }
 0x384   : > { %12588 = vmatprep.subr.bf16.mxu1 %v14008_v3 }
 0x387   : > { %12590 = vmatpush1.bf16.msra.mxu1 %v14294_v39 }
 0x388   : > { %12591 = vmatprep.subr.bf16.mxu1 %v14008_v3 }
 0x38b   : > { %12593 = vmatpush1.bf16.msra.mxu1 %v14304_v58 }
 0x38c   : > { %12594 = vmatprep.subr.bf16.mxu1 %v14008_v3 }
 0x38f   : > { %12596 = vmatpush1.bf16.msra.mxu1 %v14314_v16 }
 0x390   : > { %12597 = vmatprep.subr.bf16.mxu1 %v14008_v3 }
 0x393   : > { %12599 = vmatpush1.bf16.msra.mxu1 %v14324_v36 }
 0x394   : > { %12600 = vmatprep.subr.bf16.mxu1 %v14008_v3 }
 0x397   : > { %12602 = vmatpush1.bf16.msra.mxu1 %v14334_v55 }
 0x398   : > { %1635 = vmatprep.subr.mxu1 %v14010_v6 }
 0x39b   : > { %9606 = vmatpush1.msk.msra.mxu1 %vm892_vm3, %v14351_v44 }
 0x39c   : > { %1644 = vmatmul.mubr.f32.vlgmr.msra.gmra.mrb[70].mxu1 %v9596_v9  ;;  %12651 = vmatprep.subr.bf16.mxu1 %v14008_v3  ;;  %v9627_v9 = vld [vmem:[%s17423_s3 + $0x170] sm:$0xff] }
 0x39d   : > { %9608 = vmatprep.mubr.msk.f32.mxu1 %vm876_vm2, %v9599_v10  ;;  %v9630_v10 = vld [vmem:[%s17423_s3 + $0x188] sm:$0xf] }
 0x3a0   : > { %1649 = vmatmul.mubr.f32.gmra.mrb[72].mxu1 %v9598_v11  ;;  %v9629_v11 = vld [vmem:[%s17423_s3 + $0x180] sm:$0xf] }
 0x3a1   : > { %9609 = vmatprep.mubr.msk.f32.mxu1 %vm876_vm2, %v9601_v12  ;;  %v9637_v12 = vld [vmem:[%s17424_s4 + $0x80] sm:$0xff] }
 0x3a4   : > { %1654 = vmatmul.mubr.f32.gmra.mrb[74].mxu1 %v9600_v13  ;;  %v9638_v13 = vld [vmem:[%s17424_s4 + $0x88] sm:$0xff] }
 0x3a5   : > { %9610 = vmatprep.mubr.msk.f32.mxu1 %vm876_vm2, %v9603_v15  ;;  %v9639_v15 = vld [vmem:[%s17424_s4 + $0x90] sm:$0xff] }
 0x3a8   : > { %1659 = vmatmul.mubr.f32.gmra.mrb[76].mxu1 %v9602_v17  ;;  %v12652_v17 = vpack.c.bf16 %v9638_v13, %v9637_v12 }
 0x3a9   : > { %9611 = vmatprep.mubr.msk.f32.mxu1 %vm876_vm2, %v9605_v18  ;;  %v9640_v18 = vld [vmem:[%s17424_s4 + $0x98] sm:$0xff] }
 0x3aa   : > { %12653 = vmatpush3.bf16.msra.mxu1 %v12652_v17 }
 0x3ab   : > { %12654 = vmatprep.subr.bf16.mxu1 %v14008_v3 }
 0x3ac   : > { %1664 = vmatmul.mubr.f32.gmra.mrb[78].mxu1 %v9604_v20  ;;  %v12655_v20 = vpack.c.bf16 %v9640_v18, %v9639_v15 }
 0x3ad   : > { %11210 = vmatprep.mubr.msk.f32.mxu1 %vm14009_vm0, %v14010_v6 }
 0x3ae   : > { %12656 = vmatpush3.bf16.msra.mxu1 %v12655_v20 }
 0x3af   : > { %12657 = vmatprep.subr.bf16.mxu1 %v14008_v3 }
 0x435   : > { %v1524_v28 = vpop.f32.mrb[60].mxu1 }
 0x436   : > { %v14701_v29 = vadd.f32 %v1524_v28, %v14595_v38  ;;  %v11166_v30 = vpop.f32.mrb[61].mxu1 }
 0x439   : > { %v1529_v31 = vpop.f32.mrb[62].mxu1 }
 0x43a   : > { %v14704_v32 = vadd.f32 %v1529_v31, %v14597_v42  ;;  %v11169_v33 = vpop.f32.mrb[63].mxu1 }
 0x43d   : > { %v1534_v35 = vpop.f32.mrb[64].mxu1 }
 0x43e   : > { %v14707_v40 = vadd.f32 %v1534_v35, %v14599_v46  ;;  %v11172_v41 = vpop.f32.mrb[65].mxu1 }
 0x441   : > { %v1539_v43 = vpop.f32.mrb[66].mxu1 }
 0x442   : > { %v14710_v45 = vadd.f32 %v1539_v43, %v14601_v49  ;;  %v11175_v47 = vpop.f32.mrb[67].mxu1 }
 0x445   : > { %v1544_v48 = vpop.f32.mrb[68].mxu1 }
 0x446   : > { %v14713_v38 = vadd.f32 %v1544_v48, %v14603_v52  ;;  %v11178_v50 = vpop.f32.mrb[69].mxu1 }
 0x46f   : > { %v1645_v51 = vpop.f32.mrb[70].mxu1 }
 0x470   : > { %v1647_v53 = vpop.f32.mrb[71].mxu1  ;;  %11188 = vmatmul.mubr.msk.f32.vlgmr.msra.gmra.mrb[48].mxu0 %vm1111_vm4, %v1645_v51 }
 0x471   : > { %12611 = vmatpush1.bf16.msra.mxu0 %v14272_v63  ;;  %11190 = vmatprep.mubr.msk.f32.mxu0 %vm14009_vm0, %v14010_v6 }
 0x472   : > { %12612 = vmatprep.subr.bf16.mxu0 %v14008_v3 }
 0x473   : > { %v1650_v42 = vpop.f32.mrb[72].mxu1 }
 0x474   : > { %11191 = vmatmul.mubr.msk.f32.gmra.mrb[50].mxu0 %vm1111_vm4, %v1650_v42  ;;  %v1652_v46 = vpop.f32.mrb[73].mxu1  ;;  %v9647_v42 = vld [vmem:[%s17423_s3 + $0x198] sm:$0xff] }
 0x475   : > { %12614 = vmatpush1.bf16.msra.mxu0 %v14282_v19  ;;  %11193 = vmatprep.mubr.msk.f32.mxu0 %vm14009_vm0, %v14010_v6 }
 0x476   : > { %12615 = vmatprep.subr.bf16.mxu0 %v14008_v3 }
 0x477   : > { %v1655_v49 = vpop.f32.mrb[74].mxu1 }
 0x478   : > { %11194 = vmatmul.mubr.msk.f32.gmra.mrb[52].mxu0 %vm1111_vm4, %v1655_v49  ;;  %v1657_v52 = vpop.f32.mrb[75].mxu1 }
 0x479   : > { %12617 = vmatpush1.bf16.msra.mxu0 %v14292_v37  ;;  %11196 = vmatprep.mubr.msk.f32.mxu0 %vm14009_vm0, %v14010_v6  ;;  %v9646_v52 = vld [vmem:[%s17423_s3 + $0x190] sm:$0xff] }
 0x47a   : > { %12618 = vmatprep.subr.bf16.mxu0 %v14008_v3 }
 0x47b   : > { %v1660_v57 = vpop.f32.mrb[76].mxu1 }
 0x47c   : > { %11197 = vmatmul.mubr.msk.f32.gmra.mrb[54].mxu0 %vm1111_vm4, %v1660_v57  ;;  %v1662_v59 = vpop.f32.mrb[77].mxu1  ;;  %v9649_v57 = vld [vmem:[%s17423_s3 + $0x1a8] sm:$0xff] }
 0x47d   : > { %12620 = vmatpush1.bf16.msra.mxu0 %v14302_v56  ;;  %11199 = vmatprep.mubr.msk.f32.mxu0 %vm14009_vm0, %v14010_v6  ;;  %v9648_v59 = vld [vmem:[%s17423_s3 + $0x1a0] sm:$0xff] }
 0x47e   : > { %12621 = vmatprep.subr.bf16.mxu0 %v14008_v3 }
 0x47f   : > { %v1665_v61 = vpop.f32.mrb[78].mxu1 }
 0x480   : > { %11200 = vmatmul.mubr.msk.f32.gmra.mrb[56].mxu0 %vm1111_vm4, %v1665_v61  ;;  %v1667_v62 = vpop.f32.mrb[79].mxu1  ;;  %v9650_v61 = vld [vmem:[%s17423_s3 + $0x1b0] sm:$0xff] }
 0x481   : > { %12623 = vmatpush1.bf16.msra.mxu0 %v14312_v14  ;;  %9632 = vmatprep.mubr.msk.f32.mxu0 %vm876_vm2, %v9622_v60  ;;  %v9651_v60 = vld [vmem:[%s17423_s3 + $0x1b8] sm:$0xff]  ;;  %v9653_v62 = vld [vmem:[%s17423_s3 + $0x1c8] sm:$0xff] }
 0x482   : > { %12624 = vmatprep.subr.bf16.mxu0 %v14008_v3 }
 0x485   : > { %12626 = vmatpush1.bf16.msra.mxu0 %v14322_v34 }
 0x486   : > { %12627 = vmatprep.subr.bf16.mxu0 %v14008_v3 }
 0x489   : > { %12629 = vmatpush1.bf16.msra.mxu0 %v14332_v54 }
 0x48a   : > { %12630 = vmatprep.subr.bf16.mxu0 %v14008_v3 }
 0x48d   : > { %12632 = vmatpush1.bf16.msra.mxu0 %v14274_v1 }
 0x48e   : > { %12633 = vmatprep.subr.bf16.mxu0 %v14008_v3 }
 0x491   : > { %12635 = vmatpush1.bf16.msra.mxu0 %v14284_v21 }
 0x492   : > { %12636 = vmatprep.subr.bf16.mxu0 %v14008_v3 }
 0x495   : > { %12638 = vmatpush1.bf16.msra.mxu0 %v14294_v39 }
 0x496   : > { %12639 = vmatprep.subr.bf16.mxu0 %v14008_v3 }
 0x499   : > { %12641 = vmatpush1.bf16.msra.mxu0 %v14304_v58 }
 0x49a   : > { %12642 = vmatprep.subr.bf16.mxu0 %v14008_v3 }
 0x49d   : > { %12644 = vmatpush1.bf16.msra.mxu0 %v14314_v16 }
 0x49e   : > { %12645 = vmatprep.subr.bf16.mxu0 %v14008_v3 }
 0x4a1   : > { %12647 = vmatpush1.bf16.msra.mxu0 %v14324_v36 }
 0x4a2   : > { %12648 = vmatprep.subr.bf16.mxu0 %v14008_v3 }
 0x4a5   : > { %12650 = vmatpush1.bf16.msra.mxu0 %v14334_v55 }
 0x4a6   : > { %1866 = vmatprep.subr.mxu0 %v14010_v6 }
 0x4a9   : > { %9631 = vmatpush1.msk.msra.mxu0 %vm892_vm3, %v14351_v44 }
 0x4aa   : > { %1875 = vmatmul.mubr.f32.vlgmr.msra.gmra.mrb[58].mxu0 %v9621_v0  ;;  %12699 = vmatprep.subr.bf16.mxu0 %v14008_v3  ;;  %v9652_v0 = vld [vmem:[%s17423_s3 + $0x1c0] sm:$0xff] }
 0x4ab   : > { %9633 = vmatprep.mubr.msk.f32.mxu0 %vm876_vm2, %v9624_v2  ;;  %v9655_v2 = vld [vmem:[%s17423_s3 + $0x1d8] sm:$0xf] }
 0x4ae   : > { %1880 = vmatmul.mubr.f32.gmra.mrb[60].mxu0 %v9623_v4  ;;  %v9654_v4 = vld [vmem:[%s17423_s3 + $0x1d0] sm:$0xf] }
 0x4af   : > { %9634 = vmatprep.mubr.msk.f32.mxu0 %vm876_vm2, %v9626_v5  ;;  %v9662_v5 = vld [vmem:[%s17424_s4 + $0xa0] sm:$0xff] }
 0x4b2   : > { %1885 = vmatmul.mubr.f32.gmra.mrb[62].mxu0 %v9625_v7  ;;  %v9663_v7 = vld [vmem:[%s17424_s4 + $0xa8] sm:$0xff] }
 0x4b3   : > { %9635 = vmatprep.mubr.msk.f32.mxu0 %vm876_vm2, %v9628_v8  ;;  %v9664_v8 = vld [vmem:[%s17424_s4 + $0xb0] sm:$0xff] }
 0x4b6   : > { %1890 = vmatmul.mubr.f32.gmra.mrb[64].mxu0 %v9627_v9  ;;  %v12700_v9 = vpack.c.bf16 %v9663_v7, %v9662_v5 }
 0x4b7   : > { %9636 = vmatprep.mubr.msk.f32.mxu0 %vm876_vm2, %v9630_v10  ;;  %v9665_v10 = vld [vmem:[%s17424_s4 + $0xb8] sm:$0xff] }
 0x4b8   : > { %12701 = vmatpush3.bf16.msra.mxu0 %v12700_v9 }
 0x4b9   : > { %12702 = vmatprep.subr.bf16.mxu0 %v14008_v3 }
 0x4ba   : > { %1895 = vmatmul.mubr.f32.gmra.mrb[66].mxu0 %v9629_v11  ;;  %v12703_v11 = vpack.c.bf16 %v9665_v10, %v9664_v8 }
 0x4bb   : > { %11233 = vmatprep.mubr.msk.f32.mxu0 %vm14009_vm0, %v14010_v6 }
 0x4bc   : > { %12704 = vmatpush3.bf16.msra.mxu0 %v12703_v11 }
 0x4bd   : > { %12705 = vmatprep.subr.bf16.mxu0 %v14008_v3 }
 0x543   : > { %v1755_v22 = vpop.f32.mrb[48].mxu0 }
 0x544   : > { %v14811_v23 = vadd.f32 %v1755_v22, %v14701_v29  ;;  %v11189_v24 = vpop.f32.mrb[49].mxu0 }
 0x547   : > { %v1760_v25 = vpop.f32.mrb[50].mxu0 }
 0x548   : > { %v14814_v26 = vadd.f32 %v1760_v25, %v14704_v32  ;;  %v11192_v27 = vpop.f32.mrb[51].mxu0 }
 0x54b   : > { %v1765_v28 = vpop.f32.mrb[52].mxu0 }
 0x54c   : > { %v14817_v30 = vadd.f32 %v1765_v28, %v14707_v40  ;;  %v11195_v31 = vpop.f32.mrb[53].mxu0 }
 0x54f   : > { %v1770_v33 = vpop.f32.mrb[54].mxu0 }
 0x550   : > { %v14820_v35 = vadd.f32 %v1770_v33, %v14710_v45  ;;  %v11198_v41 = vpop.f32.mrb[55].mxu0 }
 0x553   : > { %v1775_v43 = vpop.f32.mrb[56].mxu0 }
 0x554   : > { %v14823_v29 = vadd.f32 %v1775_v43, %v14713_v38  ;;  %v11201_v47 = vpop.f32.mrb[57].mxu0 }
 0x57d   : > { %v1876_v48 = vpop.f32.mrb[58].mxu0 }
 0x57e   : > { %v1878_v50 = vpop.f32.mrb[59].mxu0  ;;  %11211 = vmatmul.mubr.msk.f32.vlgmr.msra.gmra.mrb[80].mxu1 %vm1111_vm4, %v1876_v48 }
 0x57f   : > { %12659 = vmatpush1.bf16.msra.mxu1 %v14272_v63  ;;  %11213 = vmatprep.mubr.msk.f32.mxu1 %vm14009_vm0, %v14010_v6 }
 0x580   : > { %12660 = vmatprep.subr.bf16.mxu1 %v14008_v3 }
 0x581   : > { %v1881_v32 = vpop.f32.mrb[60].mxu0 }
 0x582   : > { %11214 = vmatmul.mubr.msk.f32.gmra.mrb[82].mxu1 %vm1111_vm4, %v1881_v32  ;;  %v1883_v40 = vpop.f32.mrb[61].mxu0  ;;  %v9672_v32 = vld [vmem:[%s17423_s3 + $0x1e8] sm:$0xff] }
 0x583   : > { %12662 = vmatpush1.bf16.msra.mxu1 %v14282_v19  ;;  %11216 = vmatprep.mubr.msk.f32.mxu1 %vm14009_vm0, %v14010_v6 }
 0x584   : > { %12663 = vmatprep.subr.bf16.mxu1 %v14008_v3 }
 0x585   : > { %v1886_v45 = vpop.f32.mrb[62].mxu0 }
 0x586   : > { %11217 = vmatmul.mubr.msk.f32.gmra.mrb[84].mxu1 %vm1111_vm4, %v1886_v45  ;;  %v1888_v38 = vpop.f32.mrb[63].mxu0 }
 0x587   : > { %12665 = vmatpush1.bf16.msra.mxu1 %v14292_v37  ;;  %11219 = vmatprep.mubr.msk.f32.mxu1 %vm14009_vm0, %v14010_v6  ;;  %v9671_v38 = vld [vmem:[%s17423_s3 + $0x1e0] sm:$0xff] }
 0x588   : > { %12666 = vmatprep.subr.bf16.mxu1 %v14008_v3 }
 0x589   : > { %v1891_v51 = vpop.f32.mrb[64].mxu0 }
 0x58a   : > { %11220 = vmatmul.mubr.msk.f32.gmra.mrb[86].mxu1 %vm1111_vm4, %v1891_v51  ;;  %v1893_v53 = vpop.f32.mrb[65].mxu0  ;;  %v9674_v51 = vld [vmem:[%s17423_s3 + $0x1f8] sm:$0xff] }
 0x58b   : > { %12668 = vmatpush1.bf16.msra.mxu1 %v14302_v56  ;;  %11222 = vmatprep.mubr.msk.f32.mxu1 %vm14009_vm0, %v14010_v6  ;;  %v9673_v53 = vld [vmem:[%s17423_s3 + $0x1f0] sm:$0xff] }
 0x58c   : > { %12669 = vmatprep.subr.bf16.mxu1 %v14008_v3 }
 0x58d   : > { %v1896_v46 = vpop.f32.mrb[66].mxu0 }
 0x58e   : > { %11223 = vmatmul.mubr.msk.f32.gmra.mrb[88].mxu1 %vm1111_vm4, %v1896_v46  ;;  %v1898_v49 = vpop.f32.mrb[67].mxu0  ;;  %v9675_v46 = vld [vmem:[%s17423_s3 + $0x200] sm:$0xff] }
 0x58f   : > { %12671 = vmatpush1.bf16.msra.mxu1 %v14312_v14  ;;  %9657 = vmatprep.mubr.msk.f32.mxu1 %vm876_vm2, %v9647_v42  ;;  %v9676_v42 = vld [vmem:[%s17423_s3 + $0x208] sm:$0xff]  ;;  %v9678_v49 = vld [vmem:[%s17423_s3 + $0x218] sm:$0xff] }
 0x590   : > { %12672 = vmatprep.subr.bf16.mxu1 %v14008_v3 }
 0x593   : > { %12674 = vmatpush1.bf16.msra.mxu1 %v14322_v34 }
 0x594   : > { %12675 = vmatprep.subr.bf16.mxu1 %v14008_v3 }
 0x597   : > { %12677 = vmatpush1.bf16.msra.mxu1 %v14332_v54 }
 0x598   : > { %12678 = vmatprep.subr.bf16.mxu1 %v14008_v3 }
 0x59b   : > { %12680 = vmatpush1.bf16.msra.mxu1 %v14274_v1 }
 0x59c   : > { %12681 = vmatprep.subr.bf16.mxu1 %v14008_v3 }
 0x59f   : > { %12683 = vmatpush1.bf16.msra.mxu1 %v14284_v21 }
 0x5a0   : > { %12684 = vmatprep.subr.bf16.mxu1 %v14008_v3 }
 0x5a3   : > { %12686 = vmatpush1.bf16.msra.mxu1 %v14294_v39 }
 0x5a4   : > { %12687 = vmatprep.subr.bf16.mxu1 %v14008_v3 }
 0x5a7   : > { %12689 = vmatpush1.bf16.msra.mxu1 %v14304_v58 }
 0x5a8   : > { %12690 = vmatprep.subr.bf16.mxu1 %v14008_v3 }
 0x5ab   : > { %12692 = vmatpush1.bf16.msra.mxu1 %v14314_v16 }
 0x5ac   : > { %12693 = vmatprep.subr.bf16.mxu1 %v14008_v3 }
 0x5af   : > { %12695 = vmatpush1.bf16.msra.mxu1 %v14324_v36 }
 0x5b0   : > { %12696 = vmatprep.subr.bf16.mxu1 %v14008_v3 }
 0x5b3   : > { %12698 = vmatpush1.bf16.msra.mxu1 %v14334_v55 }
 0x5b4   : > { %2097 = vmatprep.subr.mxu1 %v14010_v6 }
 0x5b7   : > { %9656 = vmatpush1.msk.msra.mxu1 %vm892_vm3, %v14351_v44 }
 0x5b8   : > { %2106 = vmatmul.mubr.f32.vlgmr.msra.gmra.mrb[90].mxu1 %v9646_v52  ;;  %12747 = vmatprep.subr.bf16.mxu1 %v14008_v3  ;;  %v9677_v52 = vld [vmem:[%s17423_s3 + $0x210] sm:$0xff] }
 0x5b9   : > { %9658 = vmatprep.mubr.msk.f32.mxu1 %vm876_vm2, %v9649_v57  ;;  %v9680_v57 = vld [vmem:[%s17423_s3 + $0x228] sm:$0xf] }
 0x5bc   : > { %2111 = vmatmul.mubr.f32.gmra.mrb[92].mxu1 %v9648_v59  ;;  %v9679_v59 = vld [vmem:[%s17423_s3 + $0x220] sm:$0xf] }
 0x5bd   : > { %9659 = vmatprep.mubr.msk.f32.mxu1 %vm876_vm2, %v9651_v60  ;;  %v9687_v60 = vld [vmem:[%s17424_s4 + $0xc0] sm:$0xff] }
 0x5c0   : > { %2116 = vmatmul.mubr.f32.gmra.mrb[94].mxu1 %v9650_v61  ;;  %v9688_v61 = vld [vmem:[%s17424_s4 + $0xc8] sm:$0xff] }
 0x5c1   : > { %9660 = vmatprep.mubr.msk.f32.mxu1 %vm876_vm2, %v9653_v62  ;;  %v9689_v62 = vld [vmem:[%s17424_s4 + $0xd0] sm:$0xff] }
 0x5c4   : > { %2121 = vmatmul.mubr.f32.gmra.mrb[96].mxu1 %v9652_v0  ;;  %v12748_v0 = vpack.c.bf16 %v9688_v61, %v9687_v60 }
 0x5c5   : > { %9661 = vmatprep.mubr.msk.f32.mxu1 %vm876_vm2, %v9655_v2  ;;  %v9690_v2 = vld [vmem:[%s17424_s4 + $0xd8] sm:$0xff] }
 0x5c6   : > { %12749 = vmatpush3.bf16.msra.mxu1 %v12748_v0 }
 0x5c7   : > { %12750 = vmatprep.subr.bf16.mxu1 %v14008_v3 }
 0x5c8   : > { %2126 = vmatmul.mubr.f32.gmra.mrb[98].mxu1 %v9654_v4  ;;  %v12751_v4 = vpack.c.bf16 %v9690_v2, %v9689_v62 }
 0x5c9   : > { %11256 = vmatprep.mubr.msk.f32.mxu1 %vm14009_vm0, %v14010_v6 }
 0x5ca   : > { %12752 = vmatpush3.bf16.msra.mxu1 %v12751_v4 }
 0x5cb   : > { %12753 = vmatprep.subr.bf16.mxu1 %v14008_v3 }
 0x651   : > { %v1986_v12 = vpop.f32.mrb[80].mxu1 }
 0x652   : > { %v14921_v13 = vadd.f32 %v1986_v12, %v14811_v23  ;;  %v11212_v15 = vpop.f32.mrb[81].mxu1 }
 0x655   : > { %v1991_v17 = vpop.f32.mrb[82].mxu1 }
 0x656   : > { %v14924_v18 = vadd.f32 %v1991_v17, %v14814_v26  ;;  %v11215_v20 = vpop.f32.mrb[83].mxu1 }
 0x659   : > { %v1996_v22 = vpop.f32.mrb[84].mxu1 }
 0x65a   : > { %v14927_v24 = vadd.f32 %v1996_v22, %v14817_v30  ;;  %v11218_v25 = vpop.f32.mrb[85].mxu1 }
 0x65d   : > { %v2001_v27 = vpop.f32.mrb[86].mxu1 }
 0x65e   : > { %v14930_v28 = vadd.f32 %v2001_v27, %v14820_v35  ;;  %v11221_v31 = vpop.f32.mrb[87].mxu1 }
 0x661   : > { %v2006_v33 = vpop.f32.mrb[88].mxu1 }
 0x662   : > { %v14933_v23 = vadd.f32 %v2006_v33, %v14823_v29  ;;  %v11224_v41 = vpop.f32.mrb[89].mxu1 }
 0x68b   : > { %v2107_v43 = vpop.f32.mrb[90].mxu1 }
 0x68c   : > { %v2109_v47 = vpop.f32.mrb[91].mxu1  ;;  %11234 = vmatmul.mubr.msk.f32.vlgmr.msra.gmra.mrb[68].mxu0 %vm1111_vm4, %v2107_v43 }
 0x68d   : > { %12707 = vmatpush1.bf16.msra.mxu0 %v14272_v63  ;;  %11236 = vmatprep.mubr.msk.f32.mxu0 %vm14009_vm0, %v14010_v6 }
 0x68e   : > { %12708 = vmatprep.subr.bf16.mxu0 %v14008_v3 }
 0x68f   : > { %v2112_v26 = vpop.f32.mrb[92].mxu1 }
 0x690   : > { %11237 = vmatmul.mubr.msk.f32.gmra.mrb[70].mxu0 %vm1111_vm4, %v2112_v26  ;;  %v2114_v30 = vpop.f32.mrb[93].mxu1  ;;  %v9697_v26 = vld [vmem:[%s17423_s3 + $0x238] sm:$0xff] }
 0x691   : > { %12710 = vmatpush1.bf16.msra.mxu0 %v14282_v19  ;;  %11239 = vmatprep.mubr.msk.f32.mxu0 %vm14009_vm0, %v14010_v6 }
 0x692   : > { %12711 = vmatprep.subr.bf16.mxu0 %v14008_v3 }
 0x693   : > { %v2117_v35 = vpop.f32.mrb[94].mxu1 }
 0x694   : > { %11240 = vmatmul.mubr.msk.f32.gmra.mrb[72].mxu0 %vm1111_vm4, %v2117_v35  ;;  %v2119_v29 = vpop.f32.mrb[95].mxu1 }
 0x695   : > { %12713 = vmatpush1.bf16.msra.mxu0 %v14292_v37  ;;  %11242 = vmatprep.mubr.msk.f32.mxu0 %vm14009_vm0, %v14010_v6  ;;  %v9696_v29 = vld [vmem:[%s17423_s3 + $0x230] sm:$0xff] }
 0x696   : > { %12714 = vmatprep.subr.bf16.mxu0 %v14008_v3 }
 0x697   : > { %v2122_v48 = vpop.f32.mrb[96].mxu1 }
 0x698   : > { %11243 = vmatmul.mubr.msk.f32.gmra.mrb[74].mxu0 %vm1111_vm4, %v2122_v48  ;;  %v2124_v50 = vpop.f32.mrb[97].mxu1  ;;  %v9699_v48 = vld [vmem:[%s17423_s3 + $0x248] sm:$0xff] }
 0x699   : > { %12716 = vmatpush1.bf16.msra.mxu0 %v14302_v56  ;;  %11245 = vmatprep.mubr.msk.f32.mxu0 %vm14009_vm0, %v14010_v6  ;;  %v9698_v50 = vld [vmem:[%s17423_s3 + $0x240] sm:$0xff] }
 0x69a   : > { %12717 = vmatprep.subr.bf16.mxu0 %v14008_v3 }
 0x69b   : > { %v2127_v40 = vpop.f32.mrb[98].mxu1 }
 0x69c   : > { %11246 = vmatmul.mubr.msk.f32.gmra.mrb[76].mxu0 %vm1111_vm4, %v2127_v40  ;;  %v2129_v45 = vpop.f32.mrb[99].mxu1  ;;  %v9700_v40 = vld [vmem:[%s17423_s3 + $0x250] sm:$0xff] }
 0x69d   : > { %12719 = vmatpush1.bf16.msra.mxu0 %v14312_v14  ;;  %9682 = vmatprep.mubr.msk.f32.mxu0 %vm876_vm2, %v9672_v32  ;;  %v9701_v32 = vld [vmem:[%s17423_s3 + $0x258] sm:$0xff]  ;;  %v9703_v45 = vld [vmem:[%s17423_s3 + $0x268] sm:$0xff] }
 0x69e   : > { %12720 = vmatprep.subr.bf16.mxu0 %v14008_v3 }
 0x6a1   : > { %12722 = vmatpush1.bf16.msra.mxu0 %v14322_v34 }
 0x6a2   : > { %12723 = vmatprep.subr.bf16.mxu0 %v14008_v3 }
 0x6a5   : > { %12725 = vmatpush1.bf16.msra.mxu0 %v14332_v54 }
 0x6a6   : > { %12726 = vmatprep.subr.bf16.mxu0 %v14008_v3 }
 0x6a9   : > { %12728 = vmatpush1.bf16.msra.mxu0 %v14274_v1 }
 0x6aa   : > { %12729 = vmatprep.subr.bf16.mxu0 %v14008_v3 }
 0x6ad   : > { %12731 = vmatpush1.bf16.msra.mxu0 %v14284_v21 }
 0x6ae   : > { %12732 = vmatprep.subr.bf16.mxu0 %v14008_v3 }
 0x6b1   : > { %12734 = vmatpush1.bf16.msra.mxu0 %v14294_v39 }
 0x6b2   : > { %12735 = vmatprep.subr.bf16.mxu0 %v14008_v3 }
 0x6b5   : > { %12737 = vmatpush1.bf16.msra.mxu0 %v14304_v58 }
 0x6b6   : > { %12738 = vmatprep.subr.bf16.mxu0 %v14008_v3 }
 0x6b9   : > { %12740 = vmatpush1.bf16.msra.mxu0 %v14314_v16 }
 0x6ba   : > { %12741 = vmatprep.subr.bf16.mxu0 %v14008_v3 }
 0x6bd   : > { %12743 = vmatpush1.bf16.msra.mxu0 %v14324_v36 }
 0x6be   : > { %12744 = vmatprep.subr.bf16.mxu0 %v14008_v3 }
 0x6c1   : > { %12746 = vmatpush1.bf16.msra.mxu0 %v14334_v55 }
 0x6c2   : > { %2328 = vmatprep.subr.mxu0 %v14010_v6 }
 0x6c5   : > { %9681 = vmatpush1.msk.msra.mxu0 %vm892_vm3, %v14351_v44 }
 0x6c6   : > { %2337 = vmatmul.mubr.f32.vlgmr.msra.gmra.mrb[78].mxu0 %v9671_v38  ;;  %12795 = vmatprep.subr.bf16.mxu0 %v14008_v3  ;;  %v9702_v38 = vld [vmem:[%s17423_s3 + $0x260] sm:$0xff] }
 0x6c7   : > { %9683 = vmatprep.mubr.msk.f32.mxu0 %vm876_vm2, %v9674_v51  ;;  %v9705_v51 = vld [vmem:[%s17423_s3 + $0x278] sm:$0xf] }
 0x6ca   : > { %2342 = vmatmul.mubr.f32.gmra.mrb[80].mxu0 %v9673_v53  ;;  %v9704_v53 = vld [vmem:[%s17423_s3 + $0x270] sm:$0xf] }
 0x6cb   : > { %9684 = vmatprep.mubr.msk.f32.mxu0 %vm876_vm2, %v9676_v42  ;;  %v9712_v42 = vld [vmem:[%s17424_s4 + $0xe0] sm:$0xff] }
 0x6ce   : > { %2347 = vmatmul.mubr.f32.gmra.mrb[82].mxu0 %v9675_v46  ;;  %v9713_v46 = vld [vmem:[%s17424_s4 + $0xe8] sm:$0xff] }
 0x6cf   : > { %9685 = vmatprep.mubr.msk.f32.mxu0 %vm876_vm2, %v9678_v49  ;;  %v9714_v49 = vld [vmem:[%s17424_s4 + $0xf0] sm:$0xff] }
 0x6d2   : > { %2352 = vmatmul.mubr.f32.gmra.mrb[84].mxu0 %v9677_v52  ;;  %v12796_v52 = vpack.c.bf16 %v9713_v46, %v9712_v42 }
 0x6d3   : > { %9686 = vmatprep.mubr.msk.f32.mxu0 %vm876_vm2, %v9680_v57  ;;  %v9715_v57 = vld [vmem:[%s17424_s4 + $0xf8] sm:$0xff] }
 0x6d4   : > { %12797 = vmatpush3.bf16.msra.mxu0 %v12796_v52 }
 0x6d5   : > { %12798 = vmatprep.subr.bf16.mxu0 %v14008_v3 }
 0x6d6   : > { %2357 = vmatmul.mubr.f32.gmra.mrb[86].mxu0 %v9679_v59  ;;  %v12799_v59 = vpack.c.bf16 %v9715_v57, %v9714_v49 }
 0x6d7   : > { %11279 = vmatprep.mubr.msk.f32.mxu0 %vm14009_vm0, %v14010_v6 }
 0x6d8   : > { %12800 = vmatpush3.bf16.msra.mxu0 %v12799_v59 }
 0x6d9   : > { %12801 = vmatprep.subr.bf16.mxu0 %v14008_v3 }
 0x75f   : > { %v2217_v5 = vpop.f32.mrb[68].mxu0 }
 0x760   : > { %v15031_v7 = vadd.f32 %v2217_v5, %v14921_v13  ;;  %v11235_v8 = vpop.f32.mrb[69].mxu0 }
 0x763   : > { %v2222_v9 = vpop.f32.mrb[70].mxu0 }
 0x764   : > { %v15034_v10 = vadd.f32 %v2222_v9, %v14924_v18  ;;  %v11238_v11 = vpop.f32.mrb[71].mxu0 }
 0x767   : > { %v2227_v12 = vpop.f32.mrb[72].mxu0 }
 0x768   : > { %v15037_v15 = vadd.f32 %v2227_v12, %v14927_v24  ;;  %v11241_v17 = vpop.f32.mrb[73].mxu0 }
 0x76b   : > { %v2232_v20 = vpop.f32.mrb[74].mxu0 }
 0x76c   : > { %v15040_v22 = vadd.f32 %v2232_v20, %v14930_v28  ;;  %v11244_v25 = vpop.f32.mrb[75].mxu0 }
 0x76f   : > { %v2237_v27 = vpop.f32.mrb[76].mxu0 }
 0x770   : > { %v15043_v13 = vadd.f32 %v2237_v27, %v14933_v23  ;;  %v11247_v31 = vpop.f32.mrb[77].mxu0 }
 0x799   : > { %v2338_v33 = vpop.f32.mrb[78].mxu0 }
 0x79a   : > { %v2340_v41 = vpop.f32.mrb[79].mxu0  ;;  %11257 = vmatmul.mubr.msk.f32.vlgmr.msra.gmra.mrb[100].mxu1 %vm1111_vm4, %v2338_v33 }
 0x79b   : > { %12755 = vmatpush1.bf16.msra.mxu1 %v14272_v63  ;;  %11259 = vmatprep.mubr.msk.f32.mxu1 %vm14009_vm0, %v14010_v6 }
 0x79c   : > { %12756 = vmatprep.subr.bf16.mxu1 %v14008_v3 }
 0x79d   : > { %v2343_v18 = vpop.f32.mrb[80].mxu0 }
 0x79e   : > { %11260 = vmatmul.mubr.msk.f32.gmra.mrb[102].mxu1 %vm1111_vm4, %v2343_v18  ;;  %v2345_v24 = vpop.f32.mrb[81].mxu0  ;;  %v9722_v18 = vld [vmem:[%s17423_s3 + $0x288] sm:$0xff] }
 0x79f   : > { %12758 = vmatpush1.bf16.msra.mxu1 %v14282_v19  ;;  %11262 = vmatprep.mubr.msk.f32.mxu1 %vm14009_vm0, %v14010_v6 }
 0x7a0   : > { %12759 = vmatprep.subr.bf16.mxu1 %v14008_v3 }
 0x7a1   : > { %v2348_v28 = vpop.f32.mrb[82].mxu0 }
 0x7a2   : > { %11263 = vmatmul.mubr.msk.f32.gmra.mrb[104].mxu1 %vm1111_vm4, %v2348_v28  ;;  %v2350_v23 = vpop.f32.mrb[83].mxu0 }
 0x7a3   : > { %12761 = vmatpush1.bf16.msra.mxu1 %v14292_v37  ;;  %11265 = vmatprep.mubr.msk.f32.mxu1 %vm14009_vm0, %v14010_v6  ;;  %v9721_v23 = vld [vmem:[%s17423_s3 + $0x280] sm:$0xff] }
 0x7a4   : > { %12762 = vmatprep.subr.bf16.mxu1 %v14008_v3 }
 0x7a5   : > { %v2353_v43 = vpop.f32.mrb[84].mxu0 }
 0x7a6   : > { %11266 = vmatmul.mubr.msk.f32.gmra.mrb[106].mxu1 %vm1111_vm4, %v2353_v43  ;;  %v2355_v47 = vpop.f32.mrb[85].mxu0  ;;  %v9724_v43 = vld [vmem:[%s17423_s3 + $0x298] sm:$0xff] }
 0x7a7   : > { %12764 = vmatpush1.bf16.msra.mxu1 %v14302_v56  ;;  %11268 = vmatprep.mubr.msk.f32.mxu1 %vm14009_vm0, %v14010_v6  ;;  %v9723_v47 = vld [vmem:[%s17423_s3 + $0x290] sm:$0xff] }
 0x7a8   : > { %12765 = vmatprep.subr.bf16.mxu1 %v14008_v3 }
 0x7a9   : > { %v2358_v30 = vpop.f32.mrb[86].mxu0 }
 0x7aa   : > { %11269 = vmatmul.mubr.msk.f32.gmra.mrb[108].mxu1 %vm1111_vm4, %v2358_v30  ;;  %v2360_v35 = vpop.f32.mrb[87].mxu0  ;;  %v9725_v30 = vld [vmem:[%s17423_s3 + $0x2a0] sm:$0xff] }
 0x7ab   : > { %12767 = vmatpush1.bf16.msra.mxu1 %v14312_v14  ;;  %9707 = vmatprep.mubr.msk.f32.mxu1 %vm876_vm2, %v9697_v26  ;;  %v9726_v26 = vld [vmem:[%s17423_s3 + $0x2a8] sm:$0xff]  ;;  %v9728_v35 = vld [vmem:[%s17423_s3 + $0x2b8] sm:$0xff] }
 0x7ac   : > { %12768 = vmatprep.subr.bf16.mxu1 %v14008_v3 }
 0x7af   : > { %12770 = vmatpush1.bf16.msra.mxu1 %v14322_v34 }
 0x7b0   : > { %12771 = vmatprep.subr.bf16.mxu1 %v14008_v3 }
 0x7b3   : > { %12773 = vmatpush1.bf16.msra.mxu1 %v14332_v54 }
 0x7b4   : > { %12774 = vmatprep.subr.bf16.mxu1 %v14008_v3 }
 0x7b7   : > { %12776 = vmatpush1.bf16.msra.mxu1 %v14274_v1 }
 0x7b8   : > { %12777 = vmatprep.subr.bf16.mxu1 %v14008_v3 }
 0x7bb   : > { %12779 = vmatpush1.bf16.msra.mxu1 %v14284_v21 }
 0x7bc   : > { %12780 = vmatprep.subr.bf16.mxu1 %v14008_v3 }
 0x7bf   : > { %12782 = vmatpush1.bf16.msra.mxu1 %v14294_v39 }
 0x7c0   : > { %12783 = vmatprep.subr.bf16.mxu1 %v14008_v3 }
 0x7c3   : > { %12785 = vmatpush1.bf16.msra.mxu1 %v14304_v58 }
 0x7c4   : > { %12786 = vmatprep.subr.bf16.mxu1 %v14008_v3 }
 0x7c7   : > { %12788 = vmatpush1.bf16.msra.mxu1 %v14314_v16 }
 0x7c8   : > { %12789 = vmatprep.subr.bf16.mxu1 %v14008_v3 }
 0x7cb   : > { %12791 = vmatpush1.bf16.msra.mxu1 %v14324_v36 }
 0x7cc   : > { %12792 = vmatprep.subr.bf16.mxu1 %v14008_v3 }
 0x7cf   : > { %12794 = vmatpush1.bf16.msra.mxu1 %v14334_v55 }
 0x7d0   : > { %2559 = vmatprep.subr.mxu1 %v14010_v6 }
 0x7d3   : > { %9706 = vmatpush1.msk.msra.mxu1 %vm892_vm3, %v14351_v44 }
 0x7d4   : > { %2568 = vmatmul.mubr.f32.vlgmr.msra.gmra.mrb[110].mxu1 %v9696_v29  ;;  %12843 = vmatprep.subr.bf16.mxu1 %v14008_v3  ;;  %v9727_v29 = vld [vmem:[%s17423_s3 + $0x2b0] sm:$0xff] }
 0x7d5   : > { %9708 = vmatprep.mubr.msk.f32.mxu1 %vm876_vm2, %v9699_v48  ;;  %v9730_v48 = vld [vmem:[%s17423_s3 + $0x2c8] sm:$0xf] }
 0x7d8   : > { %2573 = vmatmul.mubr.f32.gmra.mrb[112].mxu1 %v9698_v50  ;;  %v9729_v50 = vld [vmem:[%s17423_s3 + $0x2c0] sm:$0xf] }
 0x7d9   : > { %9709 = vmatprep.mubr.msk.f32.mxu1 %vm876_vm2, %v9701_v32  ;;  %v9737_v32 = vld [vmem:[%s17424_s4 + $0x100] sm:$0xff] }
 0x7dc   : > { %2578 = vmatmul.mubr.f32.gmra.mrb[114].mxu1 %v9700_v40  ;;  %v9738_v40 = vld [vmem:[%s17424_s4 + $0x108] sm:$0xff] }
 0x7dd   : > { %9710 = vmatprep.mubr.msk.f32.mxu1 %vm876_vm2, %v9703_v45  ;;  %v9739_v45 = vld [vmem:[%s17424_s4 + $0x110] sm:$0xff] }
 0x7e0   : > { %2583 = vmatmul.mubr.f32.gmra.mrb[116].mxu1 %v9702_v38  ;;  %v12844_v38 = vpack.c.bf16 %v9738_v40, %v9737_v32 }
 0x7e1   : > { %9711 = vmatprep.mubr.msk.f32.mxu1 %vm876_vm2, %v9705_v51  ;;  %v9740_v51 = vld [vmem:[%s17424_s4 + $0x118] sm:$0xff] }
 0x7e2   : > { %12845 = vmatpush3.bf16.msra.mxu1 %v12844_v38 }
 0x7e3   : > { %12846 = vmatprep.subr.bf16.mxu1 %v14008_v3 }
 0x7e4   : > { %2588 = vmatmul.mubr.f32.gmra.mrb[118].mxu1 %v9704_v53  ;;  %v12847_v53 = vpack.c.bf16 %v9740_v51, %v9739_v45 }
 0x7e5   : > { %11302 = vmatprep.mubr.msk.f32.mxu1 %vm14009_vm0, %v14010_v6 }
 0x7e6   : > { %12848 = vmatpush3.bf16.msra.mxu1 %v12847_v53 }
 0x7e7   : > { %12849 = vmatprep.subr.bf16.mxu1 %v14008_v3 }
 0x86d   : > { %v2448_v60 = vpop.f32.mrb[100].mxu1 }
 0x86e   : > { %v15141_v61 = vadd.f32 %v2448_v60, %v15031_v7  ;;  %v11258_v62 = vpop.f32.mrb[101].mxu1 }
 0x871   : > { %v2453_v0 = vpop.f32.mrb[102].mxu1 }
 0x872   : > { %v15144_v2 = vadd.f32 %v2453_v0, %v15034_v10  ;;  %v11261_v4 = vpop.f32.mrb[103].mxu1 }
 0x875   : > { %v2458_v5 = vpop.f32.mrb[104].mxu1 }
 0x876   : > { %v15147_v8 = vadd.f32 %v2458_v5, %v15037_v15  ;;  %v11264_v9 = vpop.f32.mrb[105].mxu1 }
 0x879   : > { %v2463_v11 = vpop.f32.mrb[106].mxu1 }
 0x87a   : > { %v15150_v12 = vadd.f32 %v2463_v11, %v15040_v22  ;;  %v11267_v17 = vpop.f32.mrb[107].mxu1 }
 0x87d   : > { %v2468_v20 = vpop.f32.mrb[108].mxu1 }
 0x87e   : > { %v15153_v7 = vadd.f32 %v2468_v20, %v15043_v13  ;;  %v11270_v25 = vpop.f32.mrb[109].mxu1 }
 0x8a7   : > { %v2569_v27 = vpop.f32.mrb[110].mxu1 }
 0x8a8   : > { %v2571_v31 = vpop.f32.mrb[111].mxu1  ;;  %11280 = vmatmul.mubr.msk.f32.vlgmr.msra.gmra.mrb[88].mxu0 %vm1111_vm4, %v2569_v27 }
 0x8a9   : > { %12803 = vmatpush1.bf16.msra.mxu0 %v14272_v63  ;;  %11282 = vmatprep.mubr.msk.f32.mxu0 %vm14009_vm0, %v14010_v6 }
 0x8aa   : > { %12804 = vmatprep.subr.bf16.mxu0 %v14008_v3 }
 0x8ab   : > { %v2574_v10 = vpop.f32.mrb[112].mxu1 }
 0x8ac   : > { %11283 = vmatmul.mubr.msk.f32.gmra.mrb[90].mxu0 %vm1111_vm4, %v2574_v10  ;;  %v2576_v15 = vpop.f32.mrb[113].mxu1  ;;  %v9747_v10 = vld [vmem:[%s17423_s3 + $0x2d8] sm:$0xff] }
 0x8ad   : > { %12806 = vmatpush1.bf16.msra.mxu0 %v14282_v19  ;;  %11285 = vmatprep.mubr.msk.f32.mxu0 %vm14009_vm0, %v14010_v6 }
 0x8ae   : > { %12807 = vmatprep.subr.bf16.mxu0 %v14008_v3 }
 0x8af   : > { %v2579_v22 = vpop.f32.mrb[114].mxu1 }
 0x8b0   : > { %11286 = vmatmul.mubr.msk.f32.gmra.mrb[92].mxu0 %vm1111_vm4, %v2579_v22  ;;  %v2581_v13 = vpop.f32.mrb[115].mxu1 }
 0x8b1   : > { %12809 = vmatpush1.bf16.msra.mxu0 %v14292_v37  ;;  %11288 = vmatprep.mubr.msk.f32.mxu0 %vm14009_vm0, %v14010_v6  ;;  %v9746_v13 = vld [vmem:[%s17423_s3 + $0x2d0] sm:$0xff] }
 0x8b2   : > { %12810 = vmatprep.subr.bf16.mxu0 %v14008_v3 }
 0x8b3   : > { %v2584_v33 = vpop.f32.mrb[116].mxu1 }
 0x8b4   : > { %11289 = vmatmul.mubr.msk.f32.gmra.mrb[94].mxu0 %vm1111_vm4, %v2584_v33  ;;  %v2586_v41 = vpop.f32.mrb[117].mxu1  ;;  %v9749_v33 = vld [vmem:[%s17423_s3 + $0x2e8] sm:$0xff] }
 0x8b5   : > { %12812 = vmatpush1.bf16.msra.mxu0 %v14302_v56  ;;  %11291 = vmatprep.mubr.msk.f32.mxu0 %vm14009_vm0, %v14010_v6  ;;  %v9748_v41 = vld [vmem:[%s17423_s3 + $0x2e0] sm:$0xff] }
 0x8b6   : > { %12813 = vmatprep.subr.bf16.mxu0 %v14008_v3 }
 0x8b7   : > { %v2589_v24 = vpop.f32.mrb[118].mxu1 }
 0x8b8   : > { %11292 = vmatmul.mubr.msk.f32.gmra.mrb[96].mxu0 %vm1111_vm4, %v2589_v24  ;;  %v2591_v28 = vpop.f32.mrb[119].mxu1  ;;  %v9750_v24 = vld [vmem:[%s17423_s3 + $0x2f0] sm:$0xff] }
 0x8b9   : > { %12815 = vmatpush1.bf16.msra.mxu0 %v14312_v14  ;;  %9732 = vmatprep.mubr.msk.f32.mxu0 %vm876_vm2, %v9722_v18  ;;  %v9751_v18 = vld [vmem:[%s17423_s3 + $0x2f8] sm:$0xff]  ;;  %v9753_v28 = vld [vmem:[%s17423_s3 + $0x308] sm:$0xff] }
 0x8ba   : > { %12816 = vmatprep.subr.bf16.mxu0 %v14008_v3 }
 0x8bd   : > { %12818 = vmatpush1.bf16.msra.mxu0 %v14322_v34 }
 0x8be   : > { %12819 = vmatprep.subr.bf16.mxu0 %v14008_v3 }
 0x8c1   : > { %12821 = vmatpush1.bf16.msra.mxu0 %v14332_v54 }
 0x8c2   : > { %12822 = vmatprep.subr.bf16.mxu0 %v14008_v3 }
 0x8c5   : > { %12824 = vmatpush1.bf16.msra.mxu0 %v14274_v1 }
 0x8c6   : > { %12825 = vmatprep.subr.bf16.mxu0 %v14008_v3 }
 0x8c9   : > { %12827 = vmatpush1.bf16.msra.mxu0 %v14284_v21 }
 0x8ca   : > { %12828 = vmatprep.subr.bf16.mxu0 %v14008_v3 }
 0x8cd   : > { %12830 = vmatpush1.bf16.msra.mxu0 %v14294_v39 }
 0x8ce   : > { %12831 = vmatprep.subr.bf16.mxu0 %v14008_v3 }
 0x8d1   : > { %12833 = vmatpush1.bf16.msra.mxu0 %v14304_v58 }
 0x8d2   : > { %12834 = vmatprep.subr.bf16.mxu0 %v14008_v3 }
 0x8d5   : > { %12836 = vmatpush1.bf16.msra.mxu0 %v14314_v16 }
 0x8d6   : > { %12837 = vmatprep.subr.bf16.mxu0 %v14008_v3 }
 0x8d9   : > { %12839 = vmatpush1.bf16.msra.mxu0 %v14324_v36 }
 0x8da   : > { %12840 = vmatprep.subr.bf16.mxu0 %v14008_v3 }
 0x8dd   : > { %12842 = vmatpush1.bf16.msra.mxu0 %v14334_v55 }
 0x8de   : > { %2790 = vmatprep.subr.mxu0 %v14010_v6 }
 0x8e1   : > { %9731 = vmatpush1.msk.msra.mxu0 %vm892_vm3, %v14351_v44 }
 0x8e2   : > { %2799 = vmatmul.mubr.f32.vlgmr.msra.gmra.mrb[98].mxu0 %v9721_v23  ;;  %12891 = vmatprep.subr.bf16.mxu0 %v14008_v3  ;;  %v9752_v23 = vld [vmem:[%s17423_s3 + $0x300] sm:$0xff] }
 0x8e3   : > { %9733 = vmatprep.mubr.msk.f32.mxu0 %vm876_vm2, %v9724_v43  ;;  %v9755_v43 = vld [vmem:[%s17423_s3 + $0x318] sm:$0xf] }
 0x8e6   : > { %2804 = vmatmul.mubr.f32.gmra.mrb[100].mxu0 %v9723_v47  ;;  %v9754_v47 = vld [vmem:[%s17423_s3 + $0x310] sm:$0xf] }
 0x8e7   : > { %9734 = vmatprep.mubr.msk.f32.mxu0 %vm876_vm2, %v9726_v26  ;;  %v9762_v26 = vld [vmem:[%s17424_s4 + $0x120] sm:$0xff] }
 0x8ea   : > { %2809 = vmatmul.mubr.f32.gmra.mrb[102].mxu0 %v9725_v30  ;;  %v9763_v30 = vld [vmem:[%s17424_s4 + $0x128] sm:$0xff] }
 0x8eb   : > { %9735 = vmatprep.mubr.msk.f32.mxu0 %vm876_vm2, %v9728_v35  ;;  %v9764_v35 = vld [vmem:[%s17424_s4 + $0x130] sm:$0xff] }
 0x8ee   : > { %2814 = vmatmul.mubr.f32.gmra.mrb[104].mxu0 %v9727_v29  ;;  %v12892_v29 = vpack.c.bf16 %v9763_v30, %v9762_v26 }
 0x8ef   : > { %9736 = vmatprep.mubr.msk.f32.mxu0 %vm876_vm2, %v9730_v48  ;;  %v9765_v48 = vld [vmem:[%s17424_s4 + $0x138] sm:$0xff] }
 0x8f0   : > { %12893 = vmatpush3.bf16.msra.mxu0 %v12892_v29 }
 0x8f1   : > { %12894 = vmatprep.subr.bf16.mxu0 %v14008_v3 }
 0x8f2   : > { %2819 = vmatmul.mubr.f32.gmra.mrb[106].mxu0 %v9729_v50  ;;  %v12895_v50 = vpack.c.bf16 %v9765_v48, %v9764_v35 }
 0x8f3   : > { %11325 = vmatprep.mubr.msk.f32.mxu0 %vm14009_vm0, %v14010_v6 }
 0x8f4   : > { %12896 = vmatpush3.bf16.msra.mxu0 %v12895_v50 }
 0x8f5   : > { %12897 = vmatprep.subr.bf16.mxu0 %v14008_v3 }
 0x97b   : > { %v2679_v42 = vpop.f32.mrb[88].mxu0 }
 0x97c   : > { %v15251_v46 = vadd.f32 %v2679_v42, %v15141_v61  ;;  %v11281_v49 = vpop.f32.mrb[89].mxu0 }
 0x97f   : > { %v2684_v52 = vpop.f32.mrb[90].mxu0 }
 0x980   : > { %v15254_v57 = vadd.f32 %v2684_v52, %v15144_v2  ;;  %v11284_v59 = vpop.f32.mrb[91].mxu0 }
 0x983   : > { %v2689_v60 = vpop.f32.mrb[92].mxu0 }
 0x984   : > { %v15257_v62 = vadd.f32 %v2689_v60, %v15147_v8  ;;  %v11287_v0 = vpop.f32.mrb[93].mxu0 }
 0x987   : > { %v2694_v4 = vpop.f32.mrb[94].mxu0 }
 0x988   : > { %v15260_v5 = vadd.f32 %v2694_v4, %v15150_v12  ;;  %v11290_v9 = vpop.f32.mrb[95].mxu0 }
 0x98b   : > { %v2699_v11 = vpop.f32.mrb[96].mxu0 }
 0x98c   : > { %v15263_v61 = vadd.f32 %v2699_v11, %v15153_v7  ;;  %v11293_v17 = vpop.f32.mrb[97].mxu0 }
 0x9b5   : > { %v2800_v20 = vpop.f32.mrb[98].mxu0 }
 0x9b6   : > { %v2802_v25 = vpop.f32.mrb[99].mxu0  ;;  %11303 = vmatmul.mubr.msk.f32.vlgmr.msra.gmra.mrb[120].mxu1 %vm1111_vm4, %v2800_v20 }
 0x9b7   : > { %12851 = vmatpush1.bf16.msra.mxu1 %v14272_v63  ;;  %11305 = vmatprep.mubr.msk.f32.mxu1 %vm14009_vm0, %v14010_v6 }
 0x9b8   : > { %12852 = vmatprep.subr.bf16.mxu1 %v14008_v3 }
 0x9b9   : > { %v2805_v2 = vpop.f32.mrb[100].mxu0 }
 0x9ba   : > { %11306 = vmatmul.mubr.msk.f32.gmra.mrb[122].mxu1 %vm1111_vm4, %v2805_v2  ;;  %v2807_v8 = vpop.f32.mrb[101].mxu0  ;;  %v9772_v2 = vld [vmem:[%s17423_s3 + $0x328] sm:$0xff] }
 0x9bb   : > { %12854 = vmatpush1.bf16.msra.mxu1 %v14282_v19  ;;  %11308 = vmatprep.mubr.msk.f32.mxu1 %vm14009_vm0, %v14010_v6 }
 0x9bc   : > { %12855 = vmatprep.subr.bf16.mxu1 %v14008_v3 }
 0x9bd   : > { %v2810_v12 = vpop.f32.mrb[102].mxu0 }
 0x9be   : > { %11309 = vmatmul.mubr.msk.f32.gmra.mrb[124].mxu1 %vm1111_vm4, %v2810_v12  ;;  %v2812_v7 = vpop.f32.mrb[103].mxu0 }
 0x9bf   : > { %12857 = vmatpush1.bf16.msra.mxu1 %v14292_v37  ;;  %11311 = vmatprep.mubr.msk.f32.mxu1 %vm14009_vm0, %v14010_v6  ;;  %v9771_v7 = vld [vmem:[%s17423_s3 + $0x320] sm:$0xff] }
 0x9c0   : > { %12858 = vmatprep.subr.bf16.mxu1 %v14008_v3 }
 0x9c1   : > { %v2815_v27 = vpop.f32.mrb[104].mxu0 }
 0x9c2   : > { %11312 = vmatmul.mubr.msk.f32.gmra.mrb[126].mxu1 %vm1111_vm4, %v2815_v27  ;;  %v2817_v31 = vpop.f32.mrb[105].mxu0  ;;  %v9774_v27 = vld [vmem:[%s17423_s3 + $0x338] sm:$0xff] }
 0x9c3   : > { %12860 = vmatpush1.bf16.msra.mxu1 %v14302_v56  ;;  %11314 = vmatprep.mubr.msk.f32.mxu1 %vm14009_vm0, %v14010_v6  ;;  %v9773_v31 = vld [vmem:[%s17423_s3 + $0x330] sm:$0xff] }
 0x9c4   : > { %12861 = vmatprep.subr.bf16.mxu1 %v14008_v3 }
 0x9c5   : > { %v2820_v15 = vpop.f32.mrb[106].mxu0 }
 0x9c6   : > { %11315 = vmatmul.mubr.msk.f32.gmra.mrb[128].mxu1 %vm1111_vm4, %v2820_v15  ;;  %v2822_v22 = vpop.f32.mrb[107].mxu0  ;;  %v9775_v15 = vld [vmem:[%s17423_s3 + $0x340] sm:$0xff] }
 0x9c7   : > { %12863 = vmatpush1.bf16.msra.mxu1 %v14312_v14  ;;  %9757 = vmatprep.mubr.msk.f32.mxu1 %vm876_vm2, %v9747_v10  ;;  %v9776_v10 = vld [vmem:[%s17423_s3 + $0x348] sm:$0xff]  ;;  %v9778_v22 = vld [vmem:[%s17423_s3 + $0x358] sm:$0xff] }
 0x9c8   : > { %12864 = vmatprep.subr.bf16.mxu1 %v14008_v3 }
 0x9cb   : > { %12866 = vmatpush1.bf16.msra.mxu1 %v14322_v34 }
 0x9cc   : > { %12867 = vmatprep.subr.bf16.mxu1 %v14008_v3 }
 0x9cf   : > { %12869 = vmatpush1.bf16.msra.mxu1 %v14332_v54 }
 0x9d0   : > { %12870 = vmatprep.subr.bf16.mxu1 %v14008_v3 }
 0x9d3   : > { %12872 = vmatpush1.bf16.msra.mxu1 %v14274_v1 }
 0x9d4   : > { %12873 = vmatprep.subr.bf16.mxu1 %v14008_v3 }
 0x9d7   : > { %12875 = vmatpush1.bf16.msra.mxu1 %v14284_v21 }
 0x9d8   : > { %12876 = vmatprep.subr.bf16.mxu1 %v14008_v3 }
 0x9db   : > { %12878 = vmatpush1.bf16.msra.mxu1 %v14294_v39 }
 0x9dc   : > { %12879 = vmatprep.subr.bf16.mxu1 %v14008_v3 }
 0x9df   : > { %12881 = vmatpush1.bf16.msra.mxu1 %v14304_v58 }
 0x9e0   : > { %12882 = vmatprep.subr.bf16.mxu1 %v14008_v3 }
 0x9e3   : > { %12884 = vmatpush1.bf16.msra.mxu1 %v14314_v16 }
 0x9e4   : > { %12885 = vmatprep.subr.bf16.mxu1 %v14008_v3 }
 0x9e7   : > { %12887 = vmatpush1.bf16.msra.mxu1 %v14324_v36 }
 0x9e8   : > { %12888 = vmatprep.subr.bf16.mxu1 %v14008_v3 }
 0x9eb   : > { %12890 = vmatpush1.bf16.msra.mxu1 %v14334_v55 }
 0x9ec   : > { %3021 = vmatprep.subr.mxu1 %v14010_v6 }
 0x9ef   : > { %9756 = vmatpush1.msk.msra.mxu1 %vm892_vm3, %v14351_v44 }
 0x9f0   : > { %3030 = vmatmul.mubr.f32.vlgmr.msra.gmra.mrb[130].mxu1 %v9746_v13  ;;  %12939 = vmatprep.subr.bf16.mxu1 %v14008_v3  ;;  %v9777_v13 = vld [vmem:[%s17423_s3 + $0x350] sm:$0xff] }
 0x9f1   : > { %9758 = vmatprep.mubr.msk.f32.mxu1 %vm876_vm2, %v9749_v33  ;;  %v9780_v33 = vld [vmem:[%s17423_s3 + $0x368] sm:$0xf] }
 0x9f4   : > { %3035 = vmatmul.mubr.f32.gmra.mrb[132].mxu1 %v9748_v41  ;;  %v9779_v41 = vld [vmem:[%s17423_s3 + $0x360] sm:$0xf] }
 0x9f5   : > { %9759 = vmatprep.mubr.msk.f32.mxu1 %vm876_vm2, %v9751_v18  ;;  %v9787_v18 = vld [vmem:[%s17424_s4 + $0x140] sm:$0xff] }
 0x9f8   : > { %3040 = vmatmul.mubr.f32.gmra.mrb[134].mxu1 %v9750_v24  ;;  %v9788_v24 = vld [vmem:[%s17424_s4 + $0x148] sm:$0xff] }
 0x9f9   : > { %9760 = vmatprep.mubr.msk.f32.mxu1 %vm876_vm2, %v9753_v28  ;;  %v9789_v28 = vld [vmem:[%s17424_s4 + $0x150] sm:$0xff] }
 0x9fc   : > { %3045 = vmatmul.mubr.f32.gmra.mrb[136].mxu1 %v9752_v23  ;;  %v12940_v23 = vpack.c.bf16 %v9788_v24, %v9787_v18 }
 0x9fd   : > { %9761 = vmatprep.mubr.msk.f32.mxu1 %vm876_vm2, %v9755_v43  ;;  %v9790_v43 = vld [vmem:[%s17424_s4 + $0x158] sm:$0xff] }
 0x9fe   : > { %12941 = vmatpush3.bf16.msra.mxu1 %v12940_v23 }
 0x9ff   : > { %12942 = vmatprep.subr.bf16.mxu1 %v14008_v3 }
 0xa00   : > { %3050 = vmatmul.mubr.f32.gmra.mrb[138].mxu1 %v9754_v47  ;;  %v12943_v47 = vpack.c.bf16 %v9790_v43, %v9789_v28 }
 0xa01   : > { %11348 = vmatprep.mubr.msk.f32.mxu1 %vm14009_vm0, %v14010_v6 }
 0xa02   : > { %12944 = vmatpush3.bf16.msra.mxu1 %v12943_v47 }
 0xa03   : > { %12945 = vmatprep.subr.bf16.mxu1 %v14008_v3 }
 0xa89   : > { %v2910_v32 = vpop.f32.mrb[120].mxu1 }
 0xa8a   : > { %v15361_v40 = vadd.f32 %v2910_v32, %v15251_v46  ;;  %v11304_v45 = vpop.f32.mrb[121].mxu1 }
 0xa8d   : > { %v2915_v38 = vpop.f32.mrb[122].mxu1 }
 0xa8e   : > { %v15364_v51 = vadd.f32 %v2915_v38, %v15254_v57  ;;  %v11307_v53 = vpop.f32.mrb[123].mxu1 }
 0xa91   : > { %v2920_v42 = vpop.f32.mrb[124].mxu1 }
 0xa92   : > { %v15367_v49 = vadd.f32 %v2920_v42, %v15257_v62  ;;  %v11310_v52 = vpop.f32.mrb[125].mxu1 }
 0xa95   : > { %v2925_v59 = vpop.f32.mrb[126].mxu1 }
 0xa96   : > { %v15370_v60 = vadd.f32 %v2925_v59, %v15260_v5  ;;  %v11313_v0 = vpop.f32.mrb[127].mxu1 }
 0xa99   : > { %v2930_v4 = vpop.f32.mrb[128].mxu1 }
 0xa9a   : > { %v15373_v46 = vadd.f32 %v2930_v4, %v15263_v61  ;;  %v11316_v9 = vpop.f32.mrb[129].mxu1 }
 0xac3   : > { %v3031_v11 = vpop.f32.mrb[130].mxu1 }
 0xac4   : > { %v3033_v17 = vpop.f32.mrb[131].mxu1  ;;  %11326 = vmatmul.mubr.msk.f32.vlgmr.msra.gmra.mrb[108].mxu0 %vm1111_vm4, %v3031_v11 }
 0xac5   : > { %12899 = vmatpush1.bf16.msra.mxu0 %v14272_v63  ;;  %11328 = vmatprep.mubr.msk.f32.mxu0 %vm14009_vm0, %v14010_v6 }
 0xac6   : > { %12900 = vmatprep.subr.bf16.mxu0 %v14008_v3 }
 0xac7   : > { %v3036_v57 = vpop.f32.mrb[132].mxu1 }
 0xac8   : > { %11329 = vmatmul.mubr.msk.f32.gmra.mrb[110].mxu0 %vm1111_vm4, %v3036_v57  ;;  %v3038_v62 = vpop.f32.mrb[133].mxu1  ;;  %v9797_v57 = vld [vmem:[%s17423_s3 + $0x378] sm:$0xff] }
 0xac9   : > { %12902 = vmatpush1.bf16.msra.mxu0 %v14282_v19  ;;  %11331 = vmatprep.mubr.msk.f32.mxu0 %vm14009_vm0, %v14010_v6 }
 0xaca   : > { %12903 = vmatprep.subr.bf16.mxu0 %v14008_v3 }
 0xacb   : > { %v3041_v5 = vpop.f32.mrb[134].mxu1 }
 0xacc   : > { %11332 = vmatmul.mubr.msk.f32.gmra.mrb[112].mxu0 %vm1111_vm4, %v3041_v5  ;;  %v3043_v61 = vpop.f32.mrb[135].mxu1 }
 0xacd   : > { %12905 = vmatpush1.bf16.msra.mxu0 %v14292_v37  ;;  %11334 = vmatprep.mubr.msk.f32.mxu0 %vm14009_vm0, %v14010_v6  ;;  %v9796_v61 = vld [vmem:[%s17423_s3 + $0x370] sm:$0xff] }
 0xace   : > { %12906 = vmatprep.subr.bf16.mxu0 %v14008_v3 }
 0xacf   : > { %v3046_v20 = vpop.f32.mrb[136].mxu1 }
 0xad0   : > { %11335 = vmatmul.mubr.msk.f32.gmra.mrb[114].mxu0 %vm1111_vm4, %v3046_v20  ;;  %v3048_v25 = vpop.f32.mrb[137].mxu1  ;;  %v9799_v20 = vld [vmem:[%s17423_s3 + $0x388] sm:$0xff] }
 0xad1   : > { %12908 = vmatpush1.bf16.msra.mxu0 %v14302_v56  ;;  %11337 = vmatprep.mubr.msk.f32.mxu0 %vm14009_vm0, %v14010_v6  ;;  %v9798_v25 = vld [vmem:[%s17423_s3 + $0x380] sm:$0xff] }
 0xad2   : > { %12909 = vmatprep.subr.bf16.mxu0 %v14008_v3 }
 0xad3   : > { %v3051_v8 = vpop.f32.mrb[138].mxu1 }
 0xad4   : > { %11338 = vmatmul.mubr.msk.f32.gmra.mrb[116].mxu0 %vm1111_vm4, %v3051_v8  ;;  %v3053_v12 = vpop.f32.mrb[139].mxu1  ;;  %v9800_v8 = vld [vmem:[%s17423_s3 + $0x390] sm:$0xff] }
 0xad5   : > { %12911 = vmatpush1.bf16.msra.mxu0 %v14312_v14  ;;  %9782 = vmatprep.mubr.msk.f32.mxu0 %vm876_vm2, %v9772_v2  ;;  %v9801_v2 = vld [vmem:[%s17423_s3 + $0x398] sm:$0xff]  ;;  %v9803_v12 = vld [vmem:[%s17423_s3 + $0x3a8] sm:$0xff] }
 0xad6   : > { %12912 = vmatprep.subr.bf16.mxu0 %v14008_v3 }
 0xad9   : > { %12914 = vmatpush1.bf16.msra.mxu0 %v14322_v34 }
 0xada   : > { %12915 = vmatprep.subr.bf16.mxu0 %v14008_v3 }
 0xadd   : > { %12917 = vmatpush1.bf16.msra.mxu0 %v14332_v54 }
 0xade   : > { %12918 = vmatprep.subr.bf16.mxu0 %v14008_v3 }
 0xae1   : > { %12920 = vmatpush1.bf16.msra.mxu0 %v14274_v1 }
 0xae2   : > { %12921 = vmatprep.subr.bf16.mxu0 %v14008_v3 }
 0xae5   : > { %12923 = vmatpush1.bf16.msra.mxu0 %v14284_v21 }
 0xae6   : > { %12924 = vmatprep.subr.bf16.mxu0 %v14008_v3 }
 0xae9   : > { %12926 = vmatpush1.bf16.msra.mxu0 %v14294_v39 }
 0xaea   : > { %12927 = vmatprep.subr.bf16.mxu0 %v14008_v3 }
 0xaed   : > { %12929 = vmatpush1.bf16.msra.mxu0 %v14304_v58 }
 0xaee   : > { %12930 = vmatprep.subr.bf16.mxu0 %v14008_v3 }
 0xaf1   : > { %12932 = vmatpush1.bf16.msra.mxu0 %v14314_v16 }
 0xaf2   : > { %12933 = vmatprep.subr.bf16.mxu0 %v14008_v3 }
 0xaf5   : > { %12935 = vmatpush1.bf16.msra.mxu0 %v14324_v36 }
 0xaf6   : > { %12936 = vmatprep.subr.bf16.mxu0 %v14008_v3 }
 0xaf9   : > { %12938 = vmatpush1.bf16.msra.mxu0 %v14334_v55 }
 0xafa   : > { %3252 = vmatprep.subr.mxu0 %v14010_v6 }
 0xafd   : > { %9781 = vmatpush1.msk.msra.mxu0 %vm892_vm3, %v14351_v44 }
 0xafe   : > { %3261 = vmatmul.mubr.f32.vlgmr.msra.gmra.mrb[118].mxu0 %v9771_v7  ;;  %12987 = vmatprep.subr.bf16.mxu0 %v14008_v3  ;;  %v9802_v7 = vld [vmem:[%s17423_s3 + $0x3a0] sm:$0xff] }
 0xaff   : > { %9783 = vmatprep.mubr.msk.f32.mxu0 %vm876_vm2, %v9774_v27  ;;  %v9805_v27 = vld [vmem:[%s17423_s3 + $0x3b8] sm:$0xf] }
 0xb02   : > { %3266 = vmatmul.mubr.f32.gmra.mrb[120].mxu0 %v9773_v31  ;;  %v9804_v31 = vld [vmem:[%s17423_s3 + $0x3b0] sm:$0xf] }
 0xb03   : > { %9784 = vmatprep.mubr.msk.f32.mxu0 %vm876_vm2, %v9776_v10  ;;  %v9812_v10 = vld [vmem:[%s17424_s4 + $0x160] sm:$0xff] }
 0xb06   : > { %3271 = vmatmul.mubr.f32.gmra.mrb[122].mxu0 %v9775_v15  ;;  %v9813_v15 = vld [vmem:[%s17424_s4 + $0x168] sm:$0xff] }
 0xb07   : > { %9785 = vmatprep.mubr.msk.f32.mxu0 %vm876_vm2, %v9778_v22  ;;  %v9814_v22 = vld [vmem:[%s17424_s4 + $0x170] sm:$0xff] }
 0xb0a   : > { %3276 = vmatmul.mubr.f32.gmra.mrb[124].mxu0 %v9777_v13  ;;  %v12988_v13 = vpack.c.bf16 %v9813_v15, %v9812_v10 }
 0xb0b   : > { %9786 = vmatprep.mubr.msk.f32.mxu0 %vm876_vm2, %v9780_v33  ;;  %v9815_v33 = vld [vmem:[%s17424_s4 + $0x178] sm:$0xff] }
 0xb0c   : > { %12989 = vmatpush3.bf16.msra.mxu0 %v12988_v13 }
 0xb0d   : > { %12990 = vmatprep.subr.bf16.mxu0 %v14008_v3 }
 0xb0e   : > { %3281 = vmatmul.mubr.f32.gmra.mrb[126].mxu0 %v9779_v41  ;;  %v12991_v41 = vpack.c.bf16 %v9815_v33, %v9814_v22 }
 0xb0f   : > { %11371 = vmatprep.mubr.msk.f32.mxu0 %vm14009_vm0, %v14010_v6 }
 0xb10   : > { %12992 = vmatpush3.bf16.msra.mxu0 %v12991_v41 }
 0xb11   : > { %12993 = vmatprep.subr.bf16.mxu0 %v14008_v3 }
 0xb97   : > { %v3141_v26 = vpop.f32.mrb[108].mxu0 }
 0xb98   : > { %v15471_v30 = vadd.f32 %v3141_v26, %v15361_v40  ;;  %v11327_v35 = vpop.f32.mrb[109].mxu0 }
 0xb9b   : > { %v3146_v29 = vpop.f32.mrb[110].mxu0 }
 0xb9c   : > { %v15474_v48 = vadd.f32 %v3146_v29, %v15364_v51  ;;  %v11330_v50 = vpop.f32.mrb[111].mxu0 }
 0xb9f   : > { %v3151_v32 = vpop.f32.mrb[112].mxu0 }
 0xba0   : > { %v15477_v45 = vadd.f32 %v3151_v32, %v15367_v49  ;;  %v11333_v38 = vpop.f32.mrb[113].mxu0 }
 0xba3   : > { %v3156_v53 = vpop.f32.mrb[114].mxu0 }
 0xba4   : > { %v15480_v42 = vadd.f32 %v3156_v53, %v15370_v60  ;;  %v11336_v52 = vpop.f32.mrb[115].mxu0 }
 0xba7   : > { %v3161_v59 = vpop.f32.mrb[116].mxu0 }
 0xba8   : > { %v15483_v40 = vadd.f32 %v3161_v59, %v15373_v46  ;;  %v11339_v0 = vpop.f32.mrb[117].mxu0 }
 0xbd1   : > { %v3262_v4 = vpop.f32.mrb[118].mxu0 }
 0xbd2   : > { %v3264_v9 = vpop.f32.mrb[119].mxu0  ;;  %11349 = vmatmul.mubr.msk.f32.vlgmr.msra.gmra.mrb[140].mxu1 %vm1111_vm4, %v3262_v4 }
 0xbd3   : > { %12947 = vmatpush1.bf16.msra.mxu1 %v14272_v63  ;;  %11351 = vmatprep.mubr.msk.f32.mxu1 %vm14009_vm0, %v14010_v6 }
 0xbd4   : > { %12948 = vmatprep.subr.bf16.mxu1 %v14008_v3 }
 0xbd5   : > { %v3267_v51 = vpop.f32.mrb[120].mxu0 }
 0xbd6   : > { %11352 = vmatmul.mubr.msk.f32.gmra.mrb[142].mxu1 %vm1111_vm4, %v3267_v51  ;;  %v3269_v49 = vpop.f32.mrb[121].mxu0  ;;  %v9822_v51 = vld [vmem:[%s17423_s3 + $0x3c8] sm:$0xff] }
 0xbd7   : > { %12950 = vmatpush1.bf16.msra.mxu1 %v14282_v19  ;;  %11354 = vmatprep.mubr.msk.f32.mxu1 %vm14009_vm0, %v14010_v6 }
 0xbd8   : > { %12951 = vmatprep.subr.bf16.mxu1 %v14008_v3 }
 0xbd9   : > { %v3272_v60 = vpop.f32.mrb[122].mxu0 }
 0xbda   : > { %11355 = vmatmul.mubr.msk.f32.gmra.mrb[144].mxu1 %vm1111_vm4, %v3272_v60  ;;  %v3274_v46 = vpop.f32.mrb[123].mxu0 }
 0xbdb   : > { %12953 = vmatpush1.bf16.msra.mxu1 %v14292_v37  ;;  %11357 = vmatprep.mubr.msk.f32.mxu1 %vm14009_vm0, %v14010_v6  ;;  %v9821_v46 = vld [vmem:[%s17423_s3 + $0x3c0] sm:$0xff] }
 0xbdc   : > { %12954 = vmatprep.subr.bf16.mxu1 %v14008_v3 }
 0xbdd   : > { %v3277_v11 = vpop.f32.mrb[124].mxu0 }
 0xbde   : > { %11358 = vmatmul.mubr.msk.f32.gmra.mrb[146].mxu1 %vm1111_vm4, %v3277_v11  ;;  %v3279_v17 = vpop.f32.mrb[125].mxu0  ;;  %v9824_v11 = vld [vmem:[%s17423_s3 + $0x3d8] sm:$0xff] }
 0xbdf   : > { %12956 = vmatpush1.bf16.msra.mxu1 %v14302_v56  ;;  %11360 = vmatprep.mubr.msk.f32.mxu1 %vm14009_vm0, %v14010_v6  ;;  %v9823_v17 = vld [vmem:[%s17423_s3 + $0x3d0] sm:$0xff] }
 0xbe0   : > { %12957 = vmatprep.subr.bf16.mxu1 %v14008_v3 }
 0xbe1   : > { %v3282_v62 = vpop.f32.mrb[126].mxu0 }
 0xbe2   : > { %11361 = vmatmul.mubr.msk.f32.gmra.mrb[148].mxu1 %vm1111_vm4, %v3282_v62  ;;  %v3284_v5 = vpop.f32.mrb[127].mxu0  ;;  %v9825_v62 = vld [vmem:[%s17423_s3 + $0x3e0] sm:$0xff] }
 0xbe3   : > { %12959 = vmatpush1.bf16.msra.mxu1 %v14312_v14  ;;  %9807 = vmatprep.mubr.msk.f32.mxu1 %vm876_vm2, %v9797_v57  ;;  %v9826_v57 = vld [vmem:[%s17423_s3 + $0x3e8] sm:$0xff]  ;;  %v9828_v5 = vld [vmem:[%s17423_s3 + $0x3f8] sm:$0xff] }
 0xbe4   : > { %12960 = vmatprep.subr.bf16.mxu1 %v14008_v3 }
 0xbe7   : > { %12962 = vmatpush1.bf16.msra.mxu1 %v14322_v34 }
 0xbe8   : > { %12963 = vmatprep.subr.bf16.mxu1 %v14008_v3 }
 0xbeb   : > { %12965 = vmatpush1.bf16.msra.mxu1 %v14332_v54 }
 0xbec   : > { %12966 = vmatprep.subr.bf16.mxu1 %v14008_v3 }
 0xbef   : > { %12968 = vmatpush1.bf16.msra.mxu1 %v14274_v1 }
 0xbf0   : > { %12969 = vmatprep.subr.bf16.mxu1 %v14008_v3 }
 0xbf3   : > { %12971 = vmatpush1.bf16.msra.mxu1 %v14284_v21 }
 0xbf4   : > { %12972 = vmatprep.subr.bf16.mxu1 %v14008_v3 }
 0xbf7   : > { %12974 = vmatpush1.bf16.msra.mxu1 %v14294_v39 }
 0xbf8   : > { %12975 = vmatprep.subr.bf16.mxu1 %v14008_v3 }
 0xbfb   : > { %12977 = vmatpush1.bf16.msra.mxu1 %v14304_v58 }
 0xbfc   : > { %12978 = vmatprep.subr.bf16.mxu1 %v14008_v3 }
 0xbff   : > { %12980 = vmatpush1.bf16.msra.mxu1 %v14314_v16 }
 0xc00   : > { %12981 = vmatprep.subr.bf16.mxu1 %v14008_v3 }
 0xc03   : > { %12983 = vmatpush1.bf16.msra.mxu1 %v14324_v36 }
 0xc04   : > { %12984 = vmatprep.subr.bf16.mxu1 %v14008_v3 }
 0xc07   : > { %12986 = vmatpush1.bf16.msra.mxu1 %v14334_v55 }
 0xc08   : > { %3483 = vmatprep.subr.mxu1 %v14010_v6 }
 0xc0b   : > { %9806 = vmatpush1.msk.msra.mxu1 %vm892_vm3, %v14351_v44 }
 0xc0c   : > { %3492 = vmatmul.mubr.f32.vlgmr.msra.gmra.mrb[150].mxu1 %v9796_v61  ;;  %13035 = vmatprep.subr.bf16.mxu1 %v14008_v3  ;;  %v9827_v61 = vld [vmem:[%s17423_s3 + $0x3f0] sm:$0xff] }
 0xc0d   : > { %9808 = vmatprep.mubr.msk.f32.mxu1 %vm876_vm2, %v9799_v20  ;;  %v9830_v20 = vld [vmem:[%s17423_s3 + $0x408] sm:$0xf] }
 0xc10   : > { %3497 = vmatmul.mubr.f32.gmra.mrb[152].mxu1 %v9798_v25  ;;  %v9829_v25 = vld [vmem:[%s17423_s3 + $0x400] sm:$0xf] }
 0xc11   : > { %9809 = vmatprep.mubr.msk.f32.mxu1 %vm876_vm2, %v9801_v2  ;;  %v9837_v2 = vld [vmem:[%s17424_s4 + $0x180] sm:$0xff] }
 0xc14   : > { %3502 = vmatmul.mubr.f32.gmra.mrb[154].mxu1 %v9800_v8  ;;  %v9838_v8 = vld [vmem:[%s17424_s4 + $0x188] sm:$0xff] }
 0xc15   : > { %9810 = vmatprep.mubr.msk.f32.mxu1 %vm876_vm2, %v9803_v12  ;;  %v9839_v12 = vld [vmem:[%s17424_s4 + $0x190] sm:$0xff] }
 0xc18   : > { %3507 = vmatmul.mubr.f32.gmra.mrb[156].mxu1 %v9802_v7  ;;  %v13036_v7 = vpack.c.bf16 %v9838_v8, %v9837_v2 }
 0xc19   : > { %9811 = vmatprep.mubr.msk.f32.mxu1 %vm876_vm2, %v9805_v27  ;;  %v9840_v27 = vld [vmem:[%s17424_s4 + $0x198] sm:$0xff] }
 0xc1a   : > { %13037 = vmatpush3.bf16.msra.mxu1 %v13036_v7 }
 0xc1b   : > { %13038 = vmatprep.subr.bf16.mxu1 %v14008_v3 }
 0xc1c   : > { %3512 = vmatmul.mubr.f32.gmra.mrb[158].mxu1 %v9804_v31  ;;  %v13039_v31 = vpack.c.bf16 %v9840_v27, %v9839_v12 }
 0xc1d   : > { %11394 = vmatprep.mubr.msk.f32.mxu1 %vm14009_vm0, %v14010_v6 }
 0xc1e   : > { %13040 = vmatpush3.bf16.msra.mxu1 %v13039_v31 }
 0xc1f   : > { %13041 = vmatprep.subr.bf16.mxu1 %v14008_v3 }
 0xca5   : > { %v3372_v18 = vpop.f32.mrb[140].mxu1 }
 0xca6   : > { %v15581_v24 = vadd.f32 %v3372_v18, %v15471_v30  ;;  %v11350_v28 = vpop.f32.mrb[141].mxu1 }
 0xca9   : > { %v3377_v23 = vpop.f32.mrb[142].mxu1 }
 0xcaa   : > { %v15584_v43 = vadd.f32 %v3377_v23, %v15474_v48  ;;  %v11353_v47 = vpop.f32.mrb[143].mxu1 }
 0xcad   : > { %v3382_v26 = vpop.f32.mrb[144].mxu1 }
 0xcae   : > { %v15587_v35 = vadd.f32 %v3382_v26, %v15477_v45  ;;  %v11356_v29 = vpop.f32.mrb[145].mxu1 }
 0xcb1   : > { %v3387_v50 = vpop.f32.mrb[146].mxu1 }
 0xcb2   : > { %v15590_v32 = vadd.f32 %v3387_v50, %v15480_v42  ;;  %v11359_v38 = vpop.f32.mrb[147].mxu1 }
 0xcb5   : > { %v3392_v53 = vpop.f32.mrb[148].mxu1 }
 0xcb6   : > { %v15593_v30 = vadd.f32 %v3392_v53, %v15483_v40  ;;  %v11362_v52 = vpop.f32.mrb[149].mxu1 }
 0xcdf   : > { %v3493_v59 = vpop.f32.mrb[150].mxu1 }
 0xce0   : > { %v3495_v0 = vpop.f32.mrb[151].mxu1  ;;  %11372 = vmatmul.mubr.msk.f32.vlgmr.msra.gmra.mrb[128].mxu0 %vm1111_vm4, %v3493_v59 }
 0xce1   : > { %12995 = vmatpush1.bf16.msra.mxu0 %v14272_v63  ;;  %11374 = vmatprep.mubr.msk.f32.mxu0 %vm14009_vm0, %v14010_v6 }
 0xce2   : > { %12996 = vmatprep.subr.bf16.mxu0 %v14008_v3 }
 0xce3   : > { %v3498_v48 = vpop.f32.mrb[152].mxu1 }
 0xce4   : > { %11375 = vmatmul.mubr.msk.f32.gmra.mrb[130].mxu0 %vm1111_vm4, %v3498_v48  ;;  %v3500_v45 = vpop.f32.mrb[153].mxu1  ;;  %v9847_v48 = vld [vmem:[%s17423_s3 + $0x418] sm:$0xff] }
 0xce5   : > { %12998 = vmatpush1.bf16.msra.mxu0 %v14282_v19  ;;  %11377 = vmatprep.mubr.msk.f32.mxu0 %vm14009_vm0, %v14010_v6 }
 0xce6   : > { %12999 = vmatprep.subr.bf16.mxu0 %v14008_v3 }
 0xce7   : > { %v3503_v42 = vpop.f32.mrb[154].mxu1 }
 0xce8   : > { %11378 = vmatmul.mubr.msk.f32.gmra.mrb[132].mxu0 %vm1111_vm4, %v3503_v42  ;;  %v3505_v40 = vpop.f32.mrb[155].mxu1 }
 0xce9   : > { %13001 = vmatpush1.bf16.msra.mxu0 %v14292_v37  ;;  %11380 = vmatprep.mubr.msk.f32.mxu0 %vm14009_vm0, %v14010_v6  ;;  %v9846_v40 = vld [vmem:[%s17423_s3 + $0x410] sm:$0xff] }
 0xcea   : > { %13002 = vmatprep.subr.bf16.mxu0 %v14008_v3 }
 0xceb   : > { %v3508_v4 = vpop.f32.mrb[156].mxu1 }
 0xcec   : > { %11381 = vmatmul.mubr.msk.f32.gmra.mrb[134].mxu0 %vm1111_vm4, %v3508_v4  ;;  %v3510_v9 = vpop.f32.mrb[157].mxu1  ;;  %v9849_v4 = vld [vmem:[%s17423_s3 + $0x428] sm:$0xff] }
 0xced   : > { %13004 = vmatpush1.bf16.msra.mxu0 %v14302_v56  ;;  %11383 = vmatprep.mubr.msk.f32.mxu0 %vm14009_vm0, %v14010_v6  ;;  %v9848_v9 = vld [vmem:[%s17423_s3 + $0x420] sm:$0xff] }
 0xcee   : > { %13005 = vmatprep.subr.bf16.mxu0 %v14008_v3 }
 0xcef   : > { %v3513_v49 = vpop.f32.mrb[158].mxu1 }
 0xcf0   : > { %11384 = vmatmul.mubr.msk.f32.gmra.mrb[136].mxu0 %vm1111_vm4, %v3513_v49  ;;  %v3515_v60 = vpop.f32.mrb[159].mxu1  ;;  %v9850_v49 = vld [vmem:[%s17423_s3 + $0x430] sm:$0xff] }
 0xcf1   : > { %13007 = vmatpush1.bf16.msra.mxu0 %v14312_v14  ;;  %9832 = vmatprep.mubr.msk.f32.mxu0 %vm876_vm2, %v9822_v51  ;;  %v9851_v51 = vld [vmem:[%s17423_s3 + $0x438] sm:$0xff]  ;;  %v9853_v60 = vld [vmem:[%s17423_s3 + $0x448] sm:$0xff] }
 0xcf2   : > { %13008 = vmatprep.subr.bf16.mxu0 %v14008_v3 }
 0xcf5   : > { %13010 = vmatpush1.bf16.msra.mxu0 %v14322_v34 }
 0xcf6   : > { %13011 = vmatprep.subr.bf16.mxu0 %v14008_v3 }
 0xcf9   : > { %13013 = vmatpush1.bf16.msra.mxu0 %v14332_v54 }
 0xcfa   : > { %13014 = vmatprep.subr.bf16.mxu0 %v14008_v3 }
 0xcfd   : > { %13016 = vmatpush1.bf16.msra.mxu0 %v14274_v1 }
 0xcfe   : > { %13017 = vmatprep.subr.bf16.mxu0 %v14008_v3 }
 0xd01   : > { %13019 = vmatpush1.bf16.msra.mxu0 %v14284_v21 }
 0xd02   : > { %13020 = vmatprep.subr.bf16.mxu0 %v14008_v3 }
 0xd05   : > { %13022 = vmatpush1.bf16.msra.mxu0 %v14294_v39 }
 0xd06   : > { %13023 = vmatprep.subr.bf16.mxu0 %v14008_v3 }
 0xd09   : > { %13025 = vmatpush1.bf16.msra.mxu0 %v14304_v58 }
 0xd0a   : > { %13026 = vmatprep.subr.bf16.mxu0 %v14008_v3 }
 0xd0d   : > { %13028 = vmatpush1.bf16.msra.mxu0 %v14314_v16 }
 0xd0e   : > { %13029 = vmatprep.subr.bf16.mxu0 %v14008_v3 }
 0xd11   : > { %13031 = vmatpush1.bf16.msra.mxu0 %v14324_v36 }
 0xd12   : > { %13032 = vmatprep.subr.bf16.mxu0 %v14008_v3 }
 0xd15   : > { %13034 = vmatpush1.bf16.msra.mxu0 %v14334_v55 }
 0xd16   : > { %3714 = vmatprep.subr.mxu0 %v14010_v6 }
 0xd19   : > { %9831 = vmatpush1.msk.msra.mxu0 %vm892_vm3, %v14351_v44 }
 0xd1a   : > { %3723 = vmatmul.mubr.f32.vlgmr.msra.gmra.mrb[138].mxu0 %v9821_v46  ;;  %13083 = vmatprep.subr.bf16.mxu0 %v14008_v3  ;;  %v9852_v46 = vld [vmem:[%s17423_s3 + $0x440] sm:$0xff] }
 0xd1b   : > { %9833 = vmatprep.mubr.msk.f32.mxu0 %vm876_vm2, %v9824_v11  ;;  %v9855_v11 = vld [vmem:[%s17423_s3 + $0x458] sm:$0xf] }
 0xd1e   : > { %3728 = vmatmul.mubr.f32.gmra.mrb[140].mxu0 %v9823_v17  ;;  %v9854_v17 = vld [vmem:[%s17423_s3 + $0x450] sm:$0xf] }
 0xd1f   : > { %9834 = vmatprep.mubr.msk.f32.mxu0 %vm876_vm2, %v9826_v57  ;;  %v9862_v57 = vld [vmem:[%s17424_s4 + $0x1a0] sm:$0xff] }
 0xd22   : > { %3733 = vmatmul.mubr.f32.gmra.mrb[142].mxu0 %v9825_v62  ;;  %v9863_v62 = vld [vmem:[%s17424_s4 + $0x1a8] sm:$0xff] }
 0xd23   : > { %9835 = vmatprep.mubr.msk.f32.mxu0 %vm876_vm2, %v9828_v5  ;;  %v9864_v5 = vld [vmem:[%s17424_s4 + $0x1b0] sm:$0xff] }
 0xd26   : > { %3738 = vmatmul.mubr.f32.gmra.mrb[144].mxu0 %v9827_v61  ;;  %v13084_v61 = vpack.c.bf16 %v9863_v62, %v9862_v57 }
 0xd27   : > { %9836 = vmatprep.mubr.msk.f32.mxu0 %vm876_vm2, %v9830_v20  ;;  %v9865_v20 = vld [vmem:[%s17424_s4 + $0x1b8] sm:$0xff] }
 0xd28   : > { %13085 = vmatpush3.bf16.msra.mxu0 %v13084_v61 }
 0xd29   : > { %13086 = vmatprep.subr.bf16.mxu0 %v14008_v3 }
 0xd2a   : > { %3743 = vmatmul.mubr.f32.gmra.mrb[146].mxu0 %v9829_v25  ;;  %v13087_v25 = vpack.c.bf16 %v9865_v20, %v9864_v5 }
 0xd2b   : > { %11417 = vmatprep.mubr.msk.f32.mxu0 %vm14009_vm0, %v14010_v6 }
 0xd2c   : > { %13088 = vmatpush3.bf16.msra.mxu0 %v13087_v25 }
 0xd2d   : > { %13089 = vmatprep.subr.bf16.mxu0 %v14008_v3 }
 0xdb3   : > { %v3603_v10 = vpop.f32.mrb[128].mxu0 }
 0xdb4   : > { %v15691_v15 = vadd.f32 %v3603_v10, %v15581_v24  ;;  %v11373_v22 = vpop.f32.mrb[129].mxu0 }
 0xdb7   : > { %v3608_v13 = vpop.f32.mrb[130].mxu0 }
 0xdb8   : > { %v15694_v33 = vadd.f32 %v3608_v13, %v15584_v43  ;;  %v11376_v41 = vpop.f32.mrb[131].mxu0 }
 0xdbb   : > { %v3613_v18 = vpop.f32.mrb[132].mxu0 }
 0xdbc   : > { %v15697_v28 = vadd.f32 %v3613_v18, %v15587_v35  ;;  %v11379_v23 = vpop.f32.mrb[133].mxu0 }
 0xdbf   : > { %v3618_v47 = vpop.f32.mrb[134].mxu0 }
 0xdc0   : > { %v15700_v26 = vadd.f32 %v3618_v47, %v15590_v32  ;;  %v11382_v29 = vpop.f32.mrb[135].mxu0 }
 0xdc3   : > { %v3623_v50 = vpop.f32.mrb[136].mxu0 }
 0xdc4   : > { %v15703_v24 = vadd.f32 %v3623_v50, %v15593_v30  ;;  %v11385_v38 = vpop.f32.mrb[137].mxu0 }
 0xded   : > { %v3724_v53 = vpop.f32.mrb[138].mxu0 }
 0xdee   : > { %v3726_v52 = vpop.f32.mrb[139].mxu0  ;;  %11395 = vmatmul.mubr.msk.f32.vlgmr.msra.gmra.mrb[160].mxu1 %vm1111_vm4, %v3724_v53 }
 0xdef   : > { %13043 = vmatpush1.bf16.msra.mxu1 %v14272_v63  ;;  %11397 = vmatprep.mubr.msk.f32.mxu1 %vm14009_vm0, %v14010_v6 }
 0xdf0   : > { %13044 = vmatprep.subr.bf16.mxu1 %v14008_v3 }
 0xdf1   : > { %v3729_v43 = vpop.f32.mrb[140].mxu0 }
 0xdf2   : > { %11398 = vmatmul.mubr.msk.f32.gmra.mrb[162].mxu1 %vm1111_vm4, %v3729_v43  ;;  %v3731_v35 = vpop.f32.mrb[141].mxu0  ;;  %v9872_v43 = vld [vmem:[%s17423_s3 + $0x468] sm:$0xff] }
 0xdf3   : > { %13046 = vmatpush1.bf16.msra.mxu1 %v14282_v19  ;;  %11400 = vmatprep.mubr.msk.f32.mxu1 %vm14009_vm0, %v14010_v6 }
 0xdf4   : > { %13047 = vmatprep.subr.bf16.mxu1 %v14008_v3 }
 0xdf5   : > { %v3734_v32 = vpop.f32.mrb[142].mxu0 }
 0xdf6   : > { %11401 = vmatmul.mubr.msk.f32.gmra.mrb[164].mxu1 %vm1111_vm4, %v3734_v32  ;;  %v3736_v30 = vpop.f32.mrb[143].mxu0 }
 0xdf7   : > { %13049 = vmatpush1.bf16.msra.mxu1 %v14292_v37  ;;  %11403 = vmatprep.mubr.msk.f32.mxu1 %vm14009_vm0, %v14010_v6  ;;  %v9871_v30 = vld [vmem:[%s17423_s3 + $0x460] sm:$0xff] }
 0xdf8   : > { %13050 = vmatprep.subr.bf16.mxu1 %v14008_v3 }
 0xdf9   : > { %v3739_v59 = vpop.f32.mrb[144].mxu0 }
 0xdfa   : > { %11404 = vmatmul.mubr.msk.f32.gmra.mrb[166].mxu1 %vm1111_vm4, %v3739_v59  ;;  %v3741_v0 = vpop.f32.mrb[145].mxu0  ;;  %v9874_v59 = vld [vmem:[%s17423_s3 + $0x478] sm:$0xff] }
 0xdfb   : > { %13052 = vmatpush1.bf16.msra.mxu1 %v14302_v56  ;;  %11406 = vmatprep.mubr.msk.f32.mxu1 %vm14009_vm0, %v14010_v6  ;;  %v9873_v0 = vld [vmem:[%s17423_s3 + $0x470] sm:$0xff] }
 0xdfc   : > { %13053 = vmatprep.subr.bf16.mxu1 %v14008_v3 }
 0xdfd   : > { %v3744_v45 = vpop.f32.mrb[146].mxu0 }
 0xdfe   : > { %11407 = vmatmul.mubr.msk.f32.gmra.mrb[168].mxu1 %vm1111_vm4, %v3744_v45  ;;  %v3746_v42 = vpop.f32.mrb[147].mxu0  ;;  %v9875_v45 = vld [vmem:[%s17423_s3 + $0x480] sm:$0xff] }
 0xdff   : > { %13055 = vmatpush1.bf16.msra.mxu1 %v14312_v14  ;;  %9857 = vmatprep.mubr.msk.f32.mxu1 %vm876_vm2, %v9847_v48  ;;  %v9876_v48 = vld [vmem:[%s17423_s3 + $0x488] sm:$0xff]  ;;  %v9878_v42 = vld [vmem:[%s17423_s3 + $0x498] sm:$0xff] }
 0xe00   : > { %13056 = vmatprep.subr.bf16.mxu1 %v14008_v3 }
 0xe03   : > { %13058 = vmatpush1.bf16.msra.mxu1 %v14322_v34 }
 0xe04   : > { %13059 = vmatprep.subr.bf16.mxu1 %v14008_v3 }
 0xe07   : > { %13061 = vmatpush1.bf16.msra.mxu1 %v14332_v54 }
 0xe08   : > { %13062 = vmatprep.subr.bf16.mxu1 %v14008_v3 }
 0xe0b   : > { %13064 = vmatpush1.bf16.msra.mxu1 %v14274_v1 }
 0xe0c   : > { %13065 = vmatprep.subr.bf16.mxu1 %v14008_v3 }
 0xe0f   : > { %13067 = vmatpush1.bf16.msra.mxu1 %v14284_v21 }
 0xe10   : > { %13068 = vmatprep.subr.bf16.mxu1 %v14008_v3 }
 0xe13   : > { %13070 = vmatpush1.bf16.msra.mxu1 %v14294_v39 }
 0xe14   : > { %13071 = vmatprep.subr.bf16.mxu1 %v14008_v3 }
 0xe17   : > { %13073 = vmatpush1.bf16.msra.mxu1 %v14304_v58 }
 0xe18   : > { %13074 = vmatprep.subr.bf16.mxu1 %v14008_v3 }
 0xe1b   : > { %13076 = vmatpush1.bf16.msra.mxu1 %v14314_v16 }
 0xe1c   : > { %13077 = vmatprep.subr.bf16.mxu1 %v14008_v3 }
 0xe1f   : > { %13079 = vmatpush1.bf16.msra.mxu1 %v14324_v36 }
 0xe20   : > { %13080 = vmatprep.subr.bf16.mxu1 %v14008_v3 }
 0xe23   : > { %13082 = vmatpush1.bf16.msra.mxu1 %v14334_v55 }
 0xe24   : > { %3945 = vmatprep.subr.mxu1 %v14010_v6 }
 0xe27   : > { %9856 = vmatpush1.msk.msra.mxu1 %vm892_vm3, %v14351_v44 }
 0xe28   : > { %3954 = vmatmul.mubr.f32.vlgmr.msra.gmra.mrb[170].mxu1 %v9846_v40  ;;  %13131 = vmatprep.subr.bf16.mxu1 %v14008_v3  ;;  %v9877_v40 = vld [vmem:[%s17423_s3 + $0x490] sm:$0xff] }
 0xe29   : > { %9858 = vmatprep.mubr.msk.f32.mxu1 %vm876_vm2, %v9849_v4  ;;  %v9880_v4 = vld [vmem:[%s17423_s3 + $0x4a8] sm:$0xf] }
 0xe2c   : > { %3959 = vmatmul.mubr.f32.gmra.mrb[172].mxu1 %v9848_v9  ;;  %v9879_v9 = vld [vmem:[%s17423_s3 + $0x4a0] sm:$0xf] }
 0xe2d   : > { %9859 = vmatprep.mubr.msk.f32.mxu1 %vm876_vm2, %v9851_v51  ;;  %v9887_v51 = vld [vmem:[%s17424_s4 + $0x1c0] sm:$0xff] }
 0xe30   : > { %3964 = vmatmul.mubr.f32.gmra.mrb[174].mxu1 %v9850_v49  ;;  %v9888_v49 = vld [vmem:[%s17424_s4 + $0x1c8] sm:$0xff] }
 0xe31   : > { %9860 = vmatprep.mubr.msk.f32.mxu1 %vm876_vm2, %v9853_v60  ;;  %v9889_v60 = vld [vmem:[%s17424_s4 + $0x1d0] sm:$0xff] }
 0xe34   : > { %3969 = vmatmul.mubr.f32.gmra.mrb[176].mxu1 %v9852_v46  ;;  %v13132_v46 = vpack.c.bf16 %v9888_v49, %v9887_v51 }
 0xe35   : > { %9861 = vmatprep.mubr.msk.f32.mxu1 %vm876_vm2, %v9855_v11  ;;  %v9890_v11 = vld [vmem:[%s17424_s4 + $0x1d8] sm:$0xff] }
 0xe36   : > { %13133 = vmatpush3.bf16.msra.mxu1 %v13132_v46 }
 0xe37   : > { %13134 = vmatprep.subr.bf16.mxu1 %v14008_v3 }
 0xe38   : > { %3974 = vmatmul.mubr.f32.gmra.mrb[178].mxu1 %v9854_v17  ;;  %v13135_v17 = vpack.c.bf16 %v9890_v11, %v9889_v60 }
 0xe39   : > { %11440 = vmatprep.mubr.msk.f32.mxu1 %vm14009_vm0, %v14010_v6 }
 0xe3a   : > { %13136 = vmatpush3.bf16.msra.mxu1 %v13135_v17 }
 0xe3b   : > { %13137 = vmatprep.subr.bf16.mxu1 %v14008_v3 }
 0xec1   : > { %v3834_v2 = vpop.f32.mrb[160].mxu1 }
 0xec2   : > { %v15801_v8 = vadd.f32 %v3834_v2, %v15691_v15  ;;  %v11396_v12 = vpop.f32.mrb[161].mxu1 }
 0xec5   : > { %v3839_v7 = vpop.f32.mrb[162].mxu1 }
 0xec6   : > { %v15804_v27 = vadd.f32 %v3839_v7, %v15694_v33  ;;  %v11399_v31 = vpop.f32.mrb[163].mxu1 }
 0xec9   : > { %v3844_v10 = vpop.f32.mrb[164].mxu1 }
 0xeca   : > { %v15807_v22 = vadd.f32 %v3844_v10, %v15697_v28  ;;  %v11402_v13 = vpop.f32.mrb[165].mxu1 }
 0xecd   : > { %v3849_v41 = vpop.f32.mrb[166].mxu1 }
 0xece   : > { %v15810_v18 = vadd.f32 %v3849_v41, %v15700_v26  ;;  %v11405_v23 = vpop.f32.mrb[167].mxu1 }
 0xed1   : > { %v3854_v47 = vpop.f32.mrb[168].mxu1 }
 0xed2   : > { %v15813_v15 = vadd.f32 %v3854_v47, %v15703_v24  ;;  %v11408_v29 = vpop.f32.mrb[169].mxu1 }
 0xefb   : > { %v3955_v50 = vpop.f32.mrb[170].mxu1 }
 0xefc   : > { %v3957_v38 = vpop.f32.mrb[171].mxu1  ;;  %11418 = vmatmul.mubr.msk.f32.vlgmr.msra.gmra.mrb[148].mxu0 %vm1111_vm4, %v3955_v50 }
 0xefd   : > { %13091 = vmatpush1.bf16.msra.mxu0 %v14272_v63  ;;  %11420 = vmatprep.mubr.msk.f32.mxu0 %vm14009_vm0, %v14010_v6 }
 0xefe   : > { %13092 = vmatprep.subr.bf16.mxu0 %v14008_v3 }
 0xeff   : > { %v3960_v33 = vpop.f32.mrb[172].mxu1 }
 0xf00   : > { %11421 = vmatmul.mubr.msk.f32.gmra.mrb[150].mxu0 %vm1111_vm4, %v3960_v33  ;;  %v3962_v28 = vpop.f32.mrb[173].mxu1 }
 0xf01   : > { %13094 = vmatpush1.bf16.msra.mxu0 %v14282_v19  ;;  %11423 = vmatprep.mubr.msk.f32.mxu0 %vm14009_vm0, %v14010_v6  ;;  %v9915_v28 = vld [vmem:[%s17424_s4 + $0x1f8] sm:$0xff] }
 0xf02   : > { %13095 = vmatprep.subr.bf16.mxu0 %v14008_v3 }
 0xf03   : > { %v3965_v26 = vpop.f32.mrb[174].mxu1 }
 0xf04   : > { %11424 = vmatmul.mubr.msk.f32.gmra.mrb[152].mxu0 %vm1111_vm4, %v3965_v26  ;;  %v3967_v24 = vpop.f32.mrb[175].mxu1 }
 0xf05   : > { %13097 = vmatpush1.bf16.msra.mxu0 %v14292_v37  ;;  %11426 = vmatprep.mubr.msk.f32.mxu0 %vm14009_vm0, %v14010_v6 }
 0xf06   : > { %13098 = vmatprep.subr.bf16.mxu0 %v14008_v3 }
 0xf07   : > { %v3970_v53 = vpop.f32.mrb[176].mxu1 }
 0xf08   : > { %11427 = vmatmul.mubr.msk.f32.gmra.mrb[154].mxu0 %vm1111_vm4, %v3970_v53  ;;  %v3972_v52 = vpop.f32.mrb[177].mxu1 }
 0xf09   : > { %13100 = vmatpush1.bf16.msra.mxu0 %v14302_v56  ;;  %11429 = vmatprep.mubr.msk.f32.mxu0 %vm14009_vm0, %v14010_v6 }
 0xf0a   : > { %13101 = vmatprep.subr.bf16.mxu0 %v14008_v3 }
 0xf0b   : > { %v3975_v35 = vpop.f32.mrb[178].mxu1 }
 0xf0c   : > { %11430 = vmatmul.mubr.msk.f32.gmra.mrb[156].mxu0 %vm1111_vm4, %v3975_v35  ;;  %v3977_v32 = vpop.f32.mrb[179].mxu1 }
 0xf0d   : > { %13103 = vmatpush1.bf16.msra.mxu0 %v14312_v14  ;;  %9882 = vmatprep.mubr.msk.f32.mxu0 %vm876_vm2, %v9872_v43 }
 0xf0e   : > { %13104 = vmatprep.subr.bf16.mxu0 %v14008_v3 }
 0xf11   : > { %13106 = vmatpush1.bf16.msra.mxu0 %v14322_v34 }
 0xf12   : > { %13107 = vmatprep.subr.bf16.mxu0 %v14008_v3 }
 0xf15   : > { %13109 = vmatpush1.bf16.msra.mxu0 %v14332_v54 }
 0xf16   : > { %13110 = vmatprep.subr.bf16.mxu0 %v14008_v3 }
 0xf19   : > { %13112 = vmatpush1.bf16.msra.mxu0 %v14274_v1 }
 0xf1a   : > { %13113 = vmatprep.subr.bf16.mxu0 %v14008_v3 }
 0xf1d   : > { %13115 = vmatpush1.bf16.msra.mxu0 %v14284_v21 }
 0xf1e   : > { %13116 = vmatprep.subr.bf16.mxu0 %v14008_v3 }
 0xf21   : > { %13118 = vmatpush1.bf16.msra.mxu0 %v14294_v39 }
 0xf22   : > { %13119 = vmatprep.subr.bf16.mxu0 %v14008_v3 }
 0xf25   : > { %13121 = vmatpush1.bf16.msra.mxu0 %v14304_v58 }
 0xf26   : > { %13122 = vmatprep.subr.bf16.mxu0 %v14008_v3 }
 0xf29   : > { %13124 = vmatpush1.bf16.msra.mxu0 %v14314_v16 }
 0xf2a   : > { %13125 = vmatprep.subr.bf16.mxu0 %v14008_v3 }
 0xf2d   : > { %13127 = vmatpush1.bf16.msra.mxu0 %v14324_v36 }
 0xf2e   : > { %13128 = vmatprep.subr.bf16.mxu0 %v14008_v3 }
 0xf31   : > { %13130 = vmatpush1.bf16.msra.mxu0 %v14334_v55 }
 0xf32   : > { %4176 = vmatprep.subr.mxu0 %v14010_v6 }
 0xf35   : > { %9881 = vmatpush1.msk.msra.mxu0 %vm892_vm3, %v14351_v44 }
 0xf36   : > { %4185 = vmatmul.mubr.f32.vlgmr.msra.gmra.mrb[158].mxu0 %v9871_v30  ;;  %13179 = vmatprep.subr.bf16.mxu0 %v14008_v3 }
 0xf37   : > { %9883 = vmatprep.mubr.msk.f32.mxu0 %vm876_vm2, %v9874_v59 }
 0xf3a   : > { %4190 = vmatmul.mubr.f32.gmra.mrb[160].mxu0 %v9873_v0 }
 0xf3b   : > { %9884 = vmatprep.mubr.msk.f32.mxu0 %vm876_vm2, %v9876_v48 }
 0xf3e   : > { %4195 = vmatmul.mubr.f32.gmra.mrb[162].mxu0 %v9875_v45 }
 0xf3f   : > { %9885 = vmatprep.mubr.msk.f32.mxu0 %vm876_vm2, %v9878_v42 }
 0xf42   : > { %4200 = vmatmul.mubr.f32.gmra.mrb[164].mxu0 %v9877_v40 }
 0xf43   : > { %9886 = vmatprep.mubr.msk.f32.mxu0 %vm876_vm2, %v9880_v4 }
 0xf46   : > { %4205 = vmatmul.mubr.f32.gmra.mrb[166].mxu0 %v9879_v9 }
 0xf47   : > { %11463 = vmatprep.mubr.msk.f32.mxu0 %vm14009_vm0, %v14010_v6 }
 0xfcf   : > { %v4065_v57 = vpop.f32.mrb[148].mxu0 }
 0xfd0   : > { %v15911_v62 = vadd.f32 %v4065_v57, %v15801_v8  ;;  %v11419_v5 = vpop.f32.mrb[149].mxu0 }
 0xfd3   : > { %v4070_v61 = vpop.f32.mrb[150].mxu0 }
 0xfd4   : > { %v15914_v20 = vadd.f32 %v4070_v61, %v15804_v27  ;;  %v11422_v25 = vpop.f32.mrb[151].mxu0  ;;  %v9925_v61 = vld [vmem:[%s17426_s6 + $0x10] sm:$0xff] }
 0xfd7   : > { %v4075_v2 = vpop.f32.mrb[152].mxu0 }
 0xfd8   : > { %v15917_v12 = vadd.f32 %v4075_v2, %v15807_v22  ;;  %v11425_v7 = vpop.f32.mrb[153].mxu0 }
 0xfdb   : > { %v4080_v31 = vpop.f32.mrb[154].mxu0 }
 0xfdc   : > { %v15920_v10 = vadd.f32 %v4080_v31, %v15810_v18  ;;  %v11428_v13 = vpop.f32.mrb[155].mxu0 }
 0xfdf   : > { %v4085_v41 = vpop.f32.mrb[156].mxu0 }
 0xfe0   : > { %v15923_v8 = vadd.f32 %v4085_v41, %v15813_v15  ;;  %v11431_v23 = vpop.f32.mrb[157].mxu0 }
0x1009   : > { %v4186_v47 = vpop.f32.mrb[158].mxu0 }
0x100a   : > { %v4188_v29 = vpop.f32.mrb[159].mxu0  ;;  %11441 = vmatmul.mubr.msk.f32.vlgmr.msra.gmra.mrb[180].mxu1 %vm1111_vm4, %v4186_v47 }
0x100b   : > { %13139 = vmatpush1.bf16.msra.mxu1 %v14272_v63  ;;  %11443 = vmatprep.mubr.msk.f32.mxu1 %vm14009_vm0, %v14010_v6 }
0x100c   : > { %13140 = vmatprep.subr.bf16.mxu1 %v14008_v3 }
0x100d   : > { %v4191_v27 = vpop.f32.mrb[160].mxu0 }
0x100e   : > { %11444 = vmatmul.mubr.msk.f32.gmra.mrb[182].mxu1 %vm1111_vm4, %v4191_v27  ;;  %v4193_v22 = vpop.f32.mrb[161].mxu0 }
0x100f   : > { %13142 = vmatpush1.bf16.msra.mxu1 %v14282_v19  ;;  %11446 = vmatprep.mubr.msk.f32.mxu1 %vm14009_vm0, %v14010_v6 }
0x1010   : > { %13143 = vmatprep.subr.bf16.mxu1 %v14008_v3 }
0x1011   : > { %v4196_v18 = vpop.f32.mrb[162].mxu0 }
0x1012   : > { %11447 = vmatmul.mubr.msk.f32.gmra.mrb[184].mxu1 %vm1111_vm4, %v4196_v18  ;;  %v4198_v63 = vpop.f32.mrb[163].mxu0 }
0x1013   : > { %13145 = vmatpush1.bf16.msra.mxu1 %v14292_v37  ;;  %11449 = vmatprep.mubr.msk.f32.mxu1 %vm14009_vm0, %v14010_v6  ;;  %v9897_v37 = vld [vmem:[%s17423_s3 + $0x4b8] sm:$0xff] }
0x1014   : > { %13146 = vmatprep.subr.bf16.mxu1 %v14008_v3 }
0x1015   : > { %v4201_v15 = vpop.f32.mrb[164].mxu0 }
0x1016   : > { %11450 = vmatmul.mubr.msk.f32.gmra.mrb[186].mxu1 %vm1111_vm4, %v4201_v15  ;;  %v4203_v19 = vpop.f32.mrb[165].mxu0 }
0x1017   : > { %13148 = vmatpush1.bf16.msra.mxu1 %v14302_v56  ;;  %11452 = vmatprep.mubr.msk.f32.mxu1 %vm14009_vm0, %v14010_v6  ;;  %v9901_v56 = vld [vmem:[%s17423_s3 + $0x4d8] sm:$0xff] }
0x1018   : > { %13149 = vmatprep.subr.bf16.mxu1 %v14008_v3 }
0x1019   : > { %v4206_v50 = vpop.f32.mrb[166].mxu0 }
0x101a   : > { %11453 = vmatmul.mubr.msk.f32.gmra.mrb[188].mxu1 %vm1111_vm4, %v4206_v50  ;;  %v4208_v38 = vpop.f32.mrb[167].mxu0 }
0x101b   : > { %13151 = vmatpush1.bf16.msra.mxu1 %v14312_v14  ;;  %9907 = vmatprep.mubr.msk.f32.mxu1 %vm876_vm2, %v9897_v37  ;;  %v9903_v14 = vld [vmem:[%s17423_s3 + $0x4e8] sm:$0xff] }
0x101c   : > { %13152 = vmatprep.subr.bf16.mxu1 %v14008_v3 }
0x101f   : > { %13154 = vmatpush1.bf16.msra.mxu1 %v14322_v34  ;;  %v9905_v34 = vld [vmem:[%s17423_s3 + $0x4f8] sm:$0xf] }
0x1020   : > { %13155 = vmatprep.subr.bf16.mxu1 %v14008_v3 }
0x1023   : > { %13157 = vmatpush1.bf16.msra.mxu1 %v14332_v54  ;;  %v9912_v54 = vld [vmem:[%s17424_s4 + $0x1e0] sm:$0xff] }
0x1024   : > { %13158 = vmatprep.subr.bf16.mxu1 %v14008_v3 }
0x1027   : > { %13160 = vmatpush1.bf16.msra.mxu1 %v14274_v1  ;;  %v9896_v1 = vld [vmem:[%s17423_s3 + $0x4b0] sm:$0xff] }
0x1028   : > { %13161 = vmatprep.subr.bf16.mxu1 %v14008_v3 }
0x102b   : > { %13163 = vmatpush1.bf16.msra.mxu1 %v14284_v21  ;;  %v9899_v21 = vld [vmem:[%s17423_s3 + $0x4c8] sm:$0xff] }
0x102c   : > { %13164 = vmatprep.subr.bf16.mxu1 %v14008_v3 }
0x102f   : > { %13166 = vmatpush1.bf16.msra.mxu1 %v14294_v39  ;;  %v9898_v39 = vld [vmem:[%s17423_s3 + $0x4c0] sm:$0xff] }
0x1030   : > { %13167 = vmatprep.subr.bf16.mxu1 %v14008_v3 }
0x1033   : > { %13169 = vmatpush1.bf16.msra.mxu1 %v14304_v58  ;;  %v9900_v58 = vld [vmem:[%s17423_s3 + $0x4d0] sm:$0xff] }
0x1034   : > { %13170 = vmatprep.subr.bf16.mxu1 %v14008_v3 }
0x1037   : > { %13172 = vmatpush1.bf16.msra.mxu1 %v14314_v16  ;;  %v9902_v16 = vld [vmem:[%s17423_s3 + $0x4e0] sm:$0xff] }
0x1038   : > { %13173 = vmatprep.subr.bf16.mxu1 %v14008_v3 }
0x103b   : > { %13175 = vmatpush1.bf16.msra.mxu1 %v14324_v36  ;;  %v9904_v36 = vld [vmem:[%s17423_s3 + $0x4f0] sm:$0xf] }
0x103c   : > { %13176 = vmatprep.subr.bf16.mxu1 %v14008_v3 }
0x103f   : > { %13178 = vmatpush1.bf16.msra.mxu1 %v14334_v55  ;;  %v9913_v55 = vld [vmem:[%s17424_s4 + $0x1e8] sm:$0xff] }
0x1040   : > { %4407 = vmatprep.subr.mxu1 %v14010_v6  ;;  %v13180_v33 = vpack.c.bf16 %v9913_v55, %v9912_v54  ;;  %v9942_v54 = vld [vmem:[%s17426_s6 + $0x20] sm:$0xff]  ;;  %v9932_v55 = vld [vmem:[%s17427_s7 + $0x50] sm:$0xff] }
0x1042   : > { %13181 = vmatpush3.bf16.msra.mxu0 %v13180_v33  ;;  %v4574_v33 = vld [vmem:[%s17426_s6 + $0x8] sm:$0xff] }
0x1043   : > { %9906 = vmatpush1.msk.msra.mxu1 %vm892_vm3, %v14351_v44  ;;  %v9914_v44 = vld [vmem:[%s17424_s4 + $0x1f0] sm:$0xff]  ;;  %13182 = vmatprep.subr.bf16.mxu0 %v14008_v3 }
0x1044   : > { %4416 = vmatmul.mubr.f32.vlgmr.msra.gmra.mrb[190].mxu1 %v9896_v1  ;;  %v13183_v26 = vpack.c.bf16 %v9915_v28, %v9914_v44  ;;  %v9933_v44 = vld [vmem:[%s17427_s7 + $0x58] sm:$0xff] }
0x1045   : > { %9908 = vmatprep.mubr.msk.f32.mxu1 %vm876_vm2, %v9899_v21 }
0x1046   : > { %13184 = vmatpush3.bf16.msra.mxu0 %v13183_v26  ;;  %v13205_v26 = vpack.c.bf16 %v9933_v44, %v9932_v55  ;;  %v9952_v55 = vld [vmem:[%s17427_s7 + $0xa8] sm:$0xff] }
0x1048   : > { %4421 = vmatmul.mubr.f32.gmra.mrb[192].mxu1 %v9898_v39 }
0x1049   : > { %9909 = vmatprep.mubr.msk.f32.mxu1 %vm876_vm2, %v9901_v56 }
0x104c   : > { %4426 = vmatmul.mubr.f32.gmra.mrb[194].mxu1 %v9900_v58 }
0x104d   : > { %9910 = vmatprep.mubr.msk.f32.mxu1 %vm876_vm2, %v9903_v14 }
0x1050   : > { %4431 = vmatmul.mubr.f32.gmra.mrb[196].mxu1 %v9902_v16  ;;  %v9930_v16 = vld [vmem:[%s17427_s7 + $0x40] sm:$0xff] }
0x1051   : > { %9911 = vmatprep.mubr.msk.f32.mxu1 %vm876_vm2, %v9905_v34  ;;  %v9931_v34 = vld [vmem:[%s17427_s7 + $0x48] sm:$0xff] }
0x1052   : > { %v13201_v28 = vpack.c.bf16 %v9931_v34, %v9930_v16  ;;  %v6176_v16 = vld [vmem:[%s17429_s9 + $0x48] sm:$0xff] }
0x1054   : > { %4436 = vmatmul.mubr.f32.gmra.mrb[198].mxu1 %v9904_v36  ;;  %v9926_v36 = vld [vmem:[%s17426_s6 + $0x18] sm:$0xff] }
0x1055   : > { %11501 = vmatprep.mubr.msk.f32.mxu1 %vm4575_vm5, %v9925_v61 }
0x10dd   : > { %v4296_v24 = vpop.f32.mrb[180].mxu1 }
0x10de   : > { %v4320_v53 = vadd.f32 %v4296_v24, %v15911_v62  ;;  %v11442_v52 = vpop.f32.mrb[181].mxu1  ;;  %v9934_v24 = vld [vmem:[%s17427_s7 + $0x60] sm:$0xff] }
0x10e1   : > { %v4301_v43 = vpop.f32.mrb[182].mxu1 }
0x10e2   : > { %v4321_v35 = vadd.f32 %v4301_v43, %v15914_v20  ;;  %v11445_v32 = vpop.f32.mrb[183].mxu1  ;;  %v4573_v20 = vld [vmem:[%s17426_s6] sm:$0xff]  ;;  %v9936_v43 = vld [vmem:[%s17427_s7 + $0x70] sm:$0xff] }
0x10e3   : > { %v9943_v32 = vld [vmem:[%s17426_s6 + $0x28] sm:$0xff] }
0x10e5   : > { %v4306_v30 = vpop.f32.mrb[184].mxu1 }
0x10e6   : > { %v4322_v59 = vadd.f32 %v4306_v30, %v15917_v12  ;;  %v11448_v0 = vpop.f32.mrb[185].mxu1  ;;  %v9921_v12 = vld [vmem:[%s17425_s5] ss:$0 sm:$0xff]  ;;  %v9957_v30 = vld [vmem:[%s17426_s6 + $0x30] sm:$0xff] }
0x10e7   : > { %v9958_v0 = vld [vmem:[%s17426_s6 + $0x38] sm:$0xff] }
0x10e9   : > { %v4311_v48 = vpop.f32.mrb[186].mxu1 }
0x10ea   : > { %v4323_v45 = vadd.f32 %v4311_v48, %v15920_v10  ;;  %v11451_v42 = vpop.f32.mrb[187].mxu1  ;;  %v9972_v48 = vld [vmem:[%s17426_s6 + $0x40] sm:$0xff] }
0x10eb   : > { %v9987_v42 = vld [vmem:[%s17426_s6 + $0x50] sm:$0xff] }
0x10ed   : > { %v4316_v40 = vpop.f32.mrb[188].mxu1 }
0x10ee   : > { %v4324_v3 = vadd.f32 %v4316_v40, %v15923_v8  ;;  %v11454_v4 = vpop.f32.mrb[189].mxu1  ;;  %v9988_v40 = vld [vmem:[%s17426_s6 + $0x58] sm:$0xff] }
0x10ef   : > { %v10003_v4 = vld [vmem:[%s17426_s6 + $0x68] sm:$0xff] }
0x1117   : > { %v4417_v9 = vpop.f32.mrb[190].mxu1 }
0x1118   : > { %v4419_v51 = vpop.f32.mrb[191].mxu1  ;;  %11464 = vmatmul.mubr.msk.f32.vlgmr.msra.gmra.mrb[168].mxu0 %vm1111_vm4, %v4417_v9  ;;  %v10017_v9 = vld [vmem:[%s17426_s6 + $0x70] sm:$0xff] }
0x1119   : > { %11466 = vmatprep.mubr.msk.f32.mxu0 %vm14009_vm0, %v14010_v6  ;;  %v10018_v51 = vld [vmem:[%s17426_s6 + $0x78] sm:$0xff] }
0x111b   : > { %v4422_v49 = vpop.f32.mrb[192].mxu1 }
0x111c   : > { %v4424_v60 = vpop.f32.mrb[193].mxu1  ;;  %11467 = vmatmul.mubr.msk.f32.gmra.mrb[170].mxu0 %vm1111_vm4, %v4422_v49  ;;  %v10032_v49 = vld [vmem:[%s17426_s6 + $0x80] sm:$0xff] }
0x111d   : > { %11469 = vmatprep.mubr.msk.f32.mxu0 %vm14009_vm0, %v14010_v6  ;;  %v10033_v60 = vld [vmem:[%s17426_s6 + $0x88] sm:$0xff] }
0x111f   : > { %v4427_v46 = vpop.f32.mrb[194].mxu1 }
0x1120   : > { %v4429_v11 = vpop.f32.mrb[195].mxu1  ;;  %11470 = vmatmul.mubr.msk.f32.gmra.mrb[172].mxu0 %vm1111_vm4, %v4427_v46  ;;  %v4661_v46 = vld [vmem:[%s17427_s7] sm:$0xff] }
0x1121   : > { %11472 = vmatprep.mubr.msk.f32.mxu0 %vm14009_vm0, %v14010_v6  ;;  %v4662_v11 = vld [vmem:[%s17427_s7 + $0x8] sm:$0xff] }
0x1123   : > { %v4432_v17 = vpop.f32.mrb[196].mxu1 }
0x1124   : > { %v4434_v57 = vpop.f32.mrb[197].mxu1  ;;  %11473 = vmatmul.mubr.msk.f32.gmra.mrb[174].mxu0 %vm1111_vm4, %v4432_v17  ;;  %v13217_v17 = vpack.c.bf16 %v4662_v11, %v4661_v46  ;;  %v9978_v46 = vld [vmem:[%s17427_s7 + $0x108] sm:$0xff] }
0x1125   : > { %11475 = vmatprep.mubr.msk.f32.mxu0 %vm14009_vm0, %v14010_v6  ;;  %v4663_v57 = vld [vmem:[%s17427_s7 + $0x10] sm:$0xff] }
0x1127   : > { %v4437_v62 = vpop.f32.mrb[198].mxu1 }
0x1128   : > { %11476 = vmatmul.mubr.msk.f32.gmra.mrb[176].mxu0 %vm1111_vm4, %v4437_v62  ;;  %v4439_v5 = vpop.f32.mrb[199].mxu1  ;;  %v4664_v62 = vld [vmem:[%s17427_s7 + $0x18] sm:$0xff] }
0x1129   : > { %11488 = vmatprep.mubr.msk.f32.mxu0 %vm4575_vm5, %v4573_v20  ;;  %v13221_v20 = vpack.c.bf16 %v4664_v62, %v4663_v57  ;;  %v9980_v57 = vld [vmem:[%s17427_s7 + $0x118] sm:$0xff] }
0x11eb   : > { %v4527_v25 = vpop.f32.mrb[168].mxu0 }
0x11ec   : > { %v4551_v2 = vadd.f32 %v4527_v25, %v4320_v53  ;;  %v11465_v6 = vpop.f32.mrb[169].mxu0  ;;  %v9935_v53 = vld [vmem:[%s17427_s7 + $0x68] sm:$0xff]  ;;  %v4665_v25 = vld [vmem:[%s17427_s7 + $0x20] sm:$0xff] }
0x11ed   : > { %v13209_v52 = vpack.c.bf16 %v9935_v53, %v9934_v24  ;;  %v9954_v24 = vld [vmem:[%s17427_s7 + $0xb8] sm:$0xff] }
0x11ee   : > { %v4563_v31 = vadd.f32 %v9921_v12, %v4551_v2  ;;  %v4666_v2 = vld [vmem:[%s17427_s7 + $0x28] sm:$0xff] }
0x11ef   : > { %v4532_v7 = vpop.f32.mrb[170].mxu0 }
0x11f0   : > { %v4552_v10 = vadd.f32 %v4532_v7, %v4321_v35  ;;  %v11468_v13 = vpop.f32.mrb[171].mxu0  ;;  %v4568_v23 = vmax.f32 %v4563_v31, 0.0  ;;  %v9937_v35 = vld [vmem:[%s17427_s7 + $0x78] sm:$0xff]  ;;  %v6167_v7 = vld [vmem:[%s17429_s9] sm:$0xff]  ;;  %v6168_v31 = vld [vmem:[%s17429_s9 + $0x8] sm:$0xff] }
0x11f1   : > { %v13401_v13 = vpack.c.bf16 %v6168_v31, %v6167_v7  ;;  %v9992_v31 = vld [vmem:[%s17427_s7 + $0x140] sm:$0xff] }
0x11f2   : > { %v4564_v41 = vadd.f32 %v9921_v12, %v4552_v10  ;;  %v6169_v10 = vld [vmem:[%s17429_s9 + $0x10] sm:$0xff] }
0x11f3   : > { %v4537_v8 = vpop.f32.mrb[172].mxu0 }
0x11f4   : > { %v4569_v47 = vmax.f32 %v4564_v41, 0.0  ;;  %v4553_v29 = vadd.f32 %v4537_v8, %v4322_v59  ;;  %v11471_v27 = vpop.f32.mrb[173].mxu0  ;;  %v13213_v59 = vpack.c.bf16 %v9937_v35, %v9936_v43  ;;  %v6170_v41 = vld [vmem:[%s17429_s9 + $0x18] sm:$0xff]  ;;  %v13225_v8 = vpack.c.bf16 %v4666_v2, %v4665_v25  ;;  %v9963_v43 = vld [vmem:[%s17427_s7 + $0xc8] sm:$0xff] }
0x11f5   : > { %v4667_v27 = vld [vmem:[%s17427_s7 + $0x30] sm:$0xff] }
0x11f6   : > { %v16045_v22 = vpack.c.bf16 %v4569_v47, %v4568_v23  ;;  %v4565_v63 = vadd.f32 %v9921_v12, %v4553_v29  ;;  %v13405_v23 = vpack.c.bf16 %v6170_v41, %v6169_v10  ;;  %v6171_v47 = vld [vmem:[%s17429_s9 + $0x20] sm:$0xff]  ;;  %v6172_v29 = vld [vmem:[%s17429_s9 + $0x28] sm:$0xff] }
0x11f7   : > { %v4542_v18 = vpop.f32.mrb[174].mxu0  ;;  %v9993_v10 = vld [vmem:[%s17427_s7 + $0x148] sm:$0xff] }
0x11f8   : > { %v4554_v15 = vadd.f32 %v4542_v18, %v4323_v45  ;;  %v11474_v19 = vpop.f32.mrb[175].mxu0  ;;  %13186 = vmatprep.subr.bf16.mxu0 %v16045_v22  ;;  %13194 = vmatprep.subr.bf16.mxu1 %v16045_v22  ;;  %v4570_v38 = vmax.f32 %v4565_v63, 0.0  ;;  %v9973_v45 = vld [vmem:[%s17426_s6 + $0x48] sm:$0xff]  ;;  %v13409_v18 = vpack.c.bf16 %v6172_v29, %v6171_v47  ;;  %v13313_v41 = vpack.c.bf16 %v9993_v10, %v9992_v31  ;;  %v9995_v47 = vld [vmem:[%s17427_s7 + $0x158] sm:$0xff] }
0x11f9   : > { %13188 = vmatpush3.bf16.msra.mxu0 %v16045_v22  ;;  %13196 = vmatpush3.bf16.msra.mxu1 %v16045_v22  ;;  %v6174_v19 = vld [vmem:[%s17429_s9 + $0x38] sm:$0xff] }
0x11fa   : > { %v4566_v37 = vadd.f32 %v9921_v12, %v4554_v15  ;;  %v6173_v15 = vld [vmem:[%s17429_s9 + $0x30] sm:$0xff] }
0x11fb   : > { %v4547_v50 = vpop.f32.mrb[176].mxu0 }
0x11fc   : > { %v4571_v1 = vmax.f32 %v4566_v37, 0.0  ;;  %v4555_v21 = vadd.f32 %v4547_v50, %v4324_v3  ;;  %v11477_v39 = vpop.f32.mrb[177].mxu0  ;;  %v10002_v3 = vld [vmem:[%s17426_s6 + $0x60] sm:$0xff]  ;;  %v9948_v50 = vld [vmem:[%s17427_s7 + $0x88] sm:$0xff] }
0x11fd   : > { %v9947_v37 = vld [vmem:[%s17427_s7 + $0x80] sm:$0xff] }
0x11fe   : > { %v16051_v56 = vpack.c.bf16 %v4571_v1, %v4570_v38  ;;  %v4567_v58 = vadd.f32 %v9921_v12, %v4555_v21  ;;  %v13413_v21 = vpack.c.bf16 %v6174_v19, %v6173_v15  ;;  %v13241_v39 = vpack.c.bf16 %v9948_v50, %v9947_v37  ;;  %v9999_v15 = vld [vmem:[%s17427_s7 + $0x178] sm:$0xff] }
0x1200   : > { %v16053_v14 = vmax.f32 %v4567_v58, 0.0  ;;  %13190 = vmatprep.subr.bf16.mxu0 %v16051_v56  ;;  %13198 = vmatprep.subr.bf16.mxu1 %v16051_v56  ;;  %v9950_v58 = vld [vmem:[%s17427_s7 + $0x98] sm:$0xff] }
0x1201   : > { %13192 = vmatpush3.bf16.msra.mxu0 %v16051_v56  ;;  %13200 = vmatpush3.bf16.msra.mxu1 %v16051_v56 }
0x1202   : > { %11486 = vmatprep.subr.msk.mxu0 %vm4582_vm6, %v16053_v14  ;;  %11499 = vmatprep.subr.msk.mxu1 %vm4582_vm6, %v16053_v14 }
0x1205   : > { %11487 = vmatpush3.msk.msra.mxu0 %vm4582_vm6, %v16053_v14  ;;  %11500 = vmatpush3.msk.msra.mxu1 %vm4582_vm6, %v16053_v14 }
0x1206   : > { %11502 = vmatmul.mubr.msk.f32.vlgmr.msra.gmra.mrb[200].mxu1 %vm4575_vm5, %v9926_v36  ;;  %13234 = vmatprep.subr.bf16.mxu1 %v16045_v22 }
0x1207   : > { %13236 = vmatpush3.bf16.msra.mxu1 %v16045_v22  ;;  %11552 = vmatprep.mubr.msk.f32.mxu1 %vm4575_vm5, %v9942_v54  ;;  %v9951_v54 = vld [vmem:[%s17427_s7 + $0xa0] sm:$0xff] }
0x1208   : > { %13238 = vmatprep.subr.bf16.mxu1 %v16051_v56  ;;  %11489 = vmatmul.mubr.msk.f32.vlgmr.msra.gmra.mrb[178].mxu0 %vm4575_vm5, %v4574_v33  ;;  %v13249_v33 = vpack.c.bf16 %v9952_v55, %v9951_v54  ;;  %v10014_v54 = vld [vmem:[%s17427_s7 + $0x1b8] sm:$0xff] }
0x1209   : > { %13202 = vmatprep.subr.bf16.mxu0 %v13201_v28 }
0x120a   : > { %13204 = vmatpush3.bf16.msra.mxu0 %v13201_v28 }
0x120b   : > { %13240 = vmatpush3.bf16.msra.mxu1 %v16051_v56  ;;  %13206 = vmatprep.subr.bf16.mxu0 %v13205_v26 }
0x120c   : > { %11550 = vmatprep.subr.msk.mxu1 %vm4582_vm6, %v16053_v14 }
0x120e   : > { %13208 = vmatpush3.bf16.msra.mxu0 %v13205_v26  ;;  %v9953_v26 = vld [vmem:[%s17427_s7 + $0xb0] sm:$0xff] }
0x120f   : > { %11551 = vmatpush3.msk.msra.mxu1 %vm4582_vm6, %v16053_v14  ;;  %13210 = vmatprep.subr.bf16.mxu0 %v13209_v52  ;;  %v13253_v53 = vpack.c.bf16 %v9954_v24, %v9953_v26  ;;  %v10024_v26 = vld [vmem:[%s17427_s7 + $0x1d0] sm:$0xff]  ;;  %v10025_v24 = vld [vmem:[%s17427_s7 + $0x1d8] sm:$0xff] }
0x1210   : > { %13258 = vmatprep.subr.bf16.mxu1 %v16045_v22  ;;  %11553 = vmatmul.mubr.msk.f32.vlgmr.msra.gmra.mrb[202].mxu1 %vm4575_vm5, %v9943_v32  ;;  %v9964_v32 = vld [vmem:[%s17427_s7 + $0xd0] sm:$0xff] }
0x1211   : > { %13260 = vmatpush3.bf16.msra.mxu1 %v16045_v22  ;;  %11584 = vmatprep.mubr.msk.f32.mxu1 %vm4575_vm5, %v9957_v30  ;;  %v9965_v30 = vld [vmem:[%s17427_s7 + $0xd8] sm:$0xff] }
0x1212   : > { %13262 = vmatprep.subr.bf16.mxu1 %v16051_v56  ;;  %13212 = vmatpush3.bf16.msra.mxu0 %v13209_v52  ;;  %v9962_v52 = vld [vmem:[%s17427_s7 + $0xc0] sm:$0xff] }
0x1213   : > { %13214 = vmatprep.subr.bf16.mxu0 %v13213_v59  ;;  %v13265_v35 = vpack.c.bf16 %v9963_v43, %v9962_v52  ;;  %v10026_v52 = vld [vmem:[%s17427_s7 + $0x1e0] sm:$0xff]  ;;  %v10027_v43 = vld [vmem:[%s17427_s7 + $0x1e8] sm:$0xff] }
0x1215   : > { %13264 = vmatpush3.bf16.msra.mxu1 %v16051_v56 }
0x1216   : > { %11582 = vmatprep.subr.msk.mxu1 %vm4582_vm6, %v16053_v14  ;;  %13216 = vmatpush3.bf16.msra.mxu0 %v13213_v59 }
0x1217   : > { %13218 = vmatprep.subr.bf16.mxu0 %v13217_v17 }
0x1219   : > { %11583 = vmatpush3.msk.msra.mxu1 %vm4582_vm6, %v16053_v14 }
0x121a   : > { %13282 = vmatprep.subr.bf16.mxu1 %v16045_v22  ;;  %11585 = vmatmul.mubr.msk.f32.vlgmr.msra.gmra.mrb[204].mxu1 %vm4575_vm5, %v9958_v0 }
0x121b   : > { %13284 = vmatpush3.bf16.msra.mxu1 %v16045_v22  ;;  %11616 = vmatprep.mubr.msk.f32.mxu1 %vm4575_vm5, %v9972_v48  ;;  %v13269_v48 = vpack.c.bf16 %v9965_v30, %v9964_v32  ;;  %v10028_v32 = vld [vmem:[%s17427_s7 + $0x1f0] sm:$0xff]  ;;  %v10029_v30 = vld [vmem:[%s17427_s7 + $0x1f8] sm:$0xff] }
0x121c   : > { %13286 = vmatprep.subr.bf16.mxu1 %v16051_v56 }
0x121f   : > { %13288 = vmatpush3.bf16.msra.mxu1 %v16051_v56 }
0x1220   : > { %11614 = vmatprep.subr.msk.mxu1 %vm4582_vm6, %v16053_v14 }
0x1223   : > { %11615 = vmatpush3.msk.msra.mxu1 %vm4582_vm6, %v16053_v14 }
0x1224   : > { %13306 = vmatprep.subr.bf16.mxu1 %v16045_v22  ;;  %11617 = vmatmul.mubr.msk.f32.vlgmr.msra.gmra.mrb[206].mxu1 %vm4575_vm5, %v9973_v45  ;;  %v9966_v45 = vld [vmem:[%s17427_s7 + $0xe0] sm:$0xff] }
0x1225   : > { %13308 = vmatpush3.bf16.msra.mxu1 %v16045_v22  ;;  %11648 = vmatprep.mubr.msk.f32.mxu1 %vm4575_vm5, %v9987_v42  ;;  %v9967_v42 = vld [vmem:[%s17427_s7 + $0xe8] sm:$0xff] }
0x1226   : > { %13310 = vmatprep.subr.bf16.mxu1 %v16051_v56 }
0x1229   : > { %13312 = vmatpush3.bf16.msra.mxu1 %v16051_v56 }
0x122a   : > { %11646 = vmatprep.subr.msk.mxu1 %vm4582_vm6, %v16053_v14 }
0x122d   : > { %11647 = vmatpush3.msk.msra.mxu1 %vm4582_vm6, %v16053_v14 }
0x122e   : > { %13330 = vmatprep.subr.bf16.mxu1 %v16045_v22  ;;  %11649 = vmatmul.mubr.msk.f32.vlgmr.msra.gmra.mrb[208].mxu1 %vm4575_vm5, %v9988_v40  ;;  %v13273_v40 = vpack.c.bf16 %v9967_v42, %v9966_v45  ;;  %v10039_v42 = vld [vmem:[%s17427_s7 + $0x210] sm:$0xff] }
0x122f   : > { %13332 = vmatpush3.bf16.msra.mxu1 %v16045_v22  ;;  %11680 = vmatprep.mubr.msk.f32.mxu1 %vm4575_vm5, %v10002_v3  ;;  %v9968_v3 = vld [vmem:[%s17427_s7 + $0xf0] sm:$0xff] }
0x1230   : > { %13334 = vmatprep.subr.bf16.mxu1 %v16051_v56 }
0x1233   : > { %13336 = vmatpush3.bf16.msra.mxu1 %v16051_v56 }
0x1234   : > { %11678 = vmatprep.subr.msk.mxu1 %vm4582_vm6, %v16053_v14 }
0x1237   : > { %11679 = vmatpush3.msk.msra.mxu1 %vm4582_vm6, %v16053_v14 }
0x1238   : > { %13354 = vmatprep.subr.bf16.mxu1 %v16045_v22  ;;  %11681 = vmatmul.mubr.msk.f32.vlgmr.msra.gmra.mrb[210].mxu1 %vm4575_vm5, %v10003_v4  ;;  %v9969_v4 = vld [vmem:[%s17427_s7 + $0xf8] sm:$0xff] }
0x1239   : > { %13356 = vmatpush3.bf16.msra.mxu1 %v16045_v22  ;;  %11712 = vmatprep.mubr.msk.f32.mxu1 %vm4575_vm5, %v10017_v9 }
0x123a   : > { %13358 = vmatprep.subr.bf16.mxu1 %v16051_v56 }
0x123d   : > { %13360 = vmatpush3.bf16.msra.mxu1 %v16051_v56 }
0x123e   : > { %11710 = vmatprep.subr.msk.mxu1 %vm4582_vm6, %v16053_v14 }
0x1241   : > { %11711 = vmatpush3.msk.msra.mxu1 %vm4582_vm6, %v16053_v14 }
0x1242   : > { %13378 = vmatprep.subr.bf16.mxu1 %v16045_v22  ;;  %11713 = vmatmul.mubr.msk.f32.vlgmr.msra.gmra.mrb[212].mxu1 %vm4575_vm5, %v10018_v51  ;;  %v13277_v51 = vpack.c.bf16 %v9969_v4, %v9968_v3  ;;  %v10041_v4 = vld [vmem:[%s17427_s7 + $0x220] sm:$0xff] }
0x1243   : > { %13380 = vmatpush3.bf16.msra.mxu1 %v16045_v22  ;;  %11744 = vmatprep.mubr.msk.f32.mxu1 %vm4575_vm5, %v10032_v49  ;;  %v4668_v22 = vld [vmem:[%s17427_s7 + $0x38] sm:$0xff] }
0x1244   : > { %13382 = vmatprep.subr.bf16.mxu1 %v16051_v56  ;;  %v13229_v63 = vpack.c.bf16 %v4668_v22, %v4667_v27  ;;  %v9996_v27 = vld [vmem:[%s17427_s7 + $0x160] sm:$0xff]  ;;  %v9997_v22 = vld [vmem:[%s17427_s7 + $0x168] sm:$0xff] }
0x1247   : > { %13384 = vmatpush3.bf16.msra.mxu1 %v16051_v56  ;;  %v9949_v56 = vld [vmem:[%s17427_s7 + $0x90] sm:$0xff] }
0x1248   : > { %11742 = vmatprep.subr.msk.mxu1 %vm4582_vm6, %v16053_v14  ;;  %v13245_v34 = vpack.c.bf16 %v9950_v58, %v9949_v56  ;;  %v10010_v56 = vld [vmem:[%s17427_s7 + $0x198] sm:$0xff] }
0x124b   : > { %11743 = vmatpush3.msk.msra.mxu1 %vm4582_vm6, %v16053_v14  ;;  %v6175_v14 = vld [vmem:[%s17429_s9 + $0x40] sm:$0xff] }
0x124c   : > { %11745 = vmatmul.mubr.msk.f32.vlgmr.msra.gmra.mrb[214].mxu1 %vm4575_vm5, %v10033_v60  ;;  %13402 = vmatprep.subr.bf16.mxu1 %v13401_v13  ;;  %v13417_v36 = vpack.c.bf16 %v6176_v16, %v6175_v14  ;;  %v9977_v60 = vld [vmem:[%s17427_s7 + $0x100] sm:$0xff]  ;;  %v10012_v16 = vld [vmem:[%s17427_s7 + $0x1a8] sm:$0xff] }
0x124d   : > { %13404 = vmatpush3.bf16.msra.mxu1 %v13401_v13  ;;  %v13289_v11 = vpack.c.bf16 %v9978_v46, %v9977_v60  ;;  %v10011_v14 = vld [vmem:[%s17427_s7 + $0x1a0] sm:$0xff]  ;;  %v10044_v60 = vld [vmem:[%s17427_s7 + $0x238] sm:$0xff] }
0x124e   : > { %13406 = vmatprep.subr.bf16.mxu1 %v13405_v23 }
0x1251   : > { %13408 = vmatpush3.bf16.msra.mxu1 %v13405_v23  ;;  %v9994_v23 = vld [vmem:[%s17427_s7 + $0x150] sm:$0xff] }
0x1252   : > { %13410 = vmatprep.subr.bf16.mxu1 %v13409_v18  ;;  %v13317_v29 = vpack.c.bf16 %v9995_v47, %v9994_v23  ;;  %v16503_v23 = vld [vmem:[%s17430_s10 + $0x8] sm:$0xff] }
0x1253   : > { %v16508_v47 = vld [vmem:[%s17430_s10 + $0x28] sm:$0xff] }
0x1255   : > { %13412 = vmatpush3.bf16.msra.mxu1 %v13409_v18  ;;  %v13321_v18 = vpack.c.bf16 %v9997_v22, %v9996_v27  ;;  %v16524_v22 = vld [vmem:[%s17430_s10 + $0x30] sm:$0xff] }
0x1256   : > { %13414 = vmatprep.subr.bf16.mxu1 %v13413_v21 }
0x1259   : > { %13416 = vmatpush3.bf16.msra.mxu1 %v13413_v21 }
0x125a   : > { %13418 = vmatprep.subr.bf16.mxu1 %v13417_v36 }
0x125d   : > { %13420 = vmatpush3.bf16.msra.mxu1 %v13417_v36  ;;  %v10013_v36 = vld [vmem:[%s17427_s7 + $0x1b0] sm:$0xff] }
0x125e   : > { %v13349_v55 = vpack.c.bf16 %v10014_v54, %v10013_v36  ;;  %v10064_v54 = vld [vmem:[%s17431_s11 + $0xa0] sm:$0xff] }
0x12d9   : > { %v11503_v5 = vpop.f32.mrb[200].mxu1 }
0x12da   : > { %v4744_v61 = vpop.f32.mrb[201].mxu1 }
0x12db   : > { %11520 = vmatprep.mubr.msk.f32.mxu0 %vm539_vm1, %v4744_v61  ;;  %v11490_v6 = vpop.f32.mrb[178].mxu0  ;;  %v9982_v61 = vld [vmem:[%s17427_s7 + $0x128] sm:$0xff] }
0x12dc   : > { %11521 = vmatmul.mubr.msk.f32.vlgmr.msra.gmra.mrb[180].mxu0 %vm539_vm1, %v11503_v5  ;;  %v4652_v12 = vpop.f32.mrb[179].mxu0  ;;  %v9981_v5 = vld [vmem:[%s17427_s7 + $0x120] sm:$0xff] }
0x12dd   : > { %13220 = vmatpush3.bf16.msra.mxu0 %v13217_v17  ;;  %11539 = vmatprep.mubr.msk.f32.mxu0 %vm539_vm1, %v4652_v12  ;;  %v9979_v17 = vld [vmem:[%s17427_s7 + $0x110] sm:$0xff]  ;;  %v13297_v2 = vpack.c.bf16 %v9982_v61, %v9981_v5  ;;  %v9984_v12 = vld [vmem:[%s17427_s7 + $0x138] sm:$0xff] }
0x12de   : > { %13222 = vmatprep.subr.bf16.mxu0 %v13221_v20  ;;  %v13293_v62 = vpack.c.bf16 %v9980_v57, %v9979_v17  ;;  %v6178_v17 = vld [vmem:[%s17429_s9 + $0x58] sm:$0xff] }
0x12e1   : > { %13224 = vmatpush3.bf16.msra.mxu0 %v13221_v20 }
0x12e2   : > { %13226 = vmatprep.subr.bf16.mxu0 %v13225_v8 }
0x12e3   : > { %v11554_v38 = vpop.f32.mrb[202].mxu1 }
0x12e4   : > { %v4999_v1 = vpop.f32.mrb[203].mxu1 }
0x12e5   : > { %13228 = vmatpush3.bf16.msra.mxu0 %v13225_v8 }
0x12e6   : > { %13230 = vmatprep.subr.bf16.mxu0 %v13229_v63 }
0x12e9   : > { %13232 = vmatpush3.bf16.msra.mxu0 %v13229_v63  ;;  %v9998_v63 = vld [vmem:[%s17427_s7 + $0x170] sm:$0xff] }
0x12ea   : > { %13242 = vmatprep.subr.bf16.mxu0 %v13241_v39  ;;  %v13325_v50 = vpack.c.bf16 %v9999_v15, %v9998_v63  ;;  %v10059_v63 = vld [vmem:[%s17431_s11 + $0x78] sm:$0xff] }
0x12eb   : > { %v16537_v15 = vld [vmem:[%s17430_s10 + $0x18] sm:$0xff] }
0x12ec   : > { %11540 = vmatmul.mubr.msk.f32.vlgmr.msra.gmra.mrb[180].mxu0 %vm539_vm1, %v11490_v6  ;;  %v9983_v6 = vld [vmem:[%s17427_s7 + $0x130] sm:$0xff] }
0x12ed   : > { %13244 = vmatpush3.bf16.msra.mxu0 %v13241_v39  ;;  %11571 = vmatprep.mubr.msk.f32.mxu0 %vm539_vm1, %v4999_v1  ;;  %v11586_v44 = vpop.f32.mrb[204].mxu1  ;;  %v13301_v7 = vpack.c.bf16 %v9984_v12, %v9983_v6  ;;  %v10008_v1 = vld [vmem:[%s17427_s7 + $0x188] sm:$0xff]  ;;  %v10009_v39 = vld [vmem:[%s17427_s7 + $0x190] sm:$0xff]  ;;  %v16477_v12 = vld [vmem:[%s17430_s10] sm:$0xff] }
0x12ee   : > { %13246 = vmatprep.subr.bf16.mxu0 %v13245_v34  ;;  %v5175_v28 = vpop.f32.mrb[205].mxu1  ;;  %v13341_v58 = vpack.c.bf16 %v10010_v56, %v10009_v39  ;;  %v10126_v39 = vld [vmem:[%s17430_s10 + $0x50] sm:$0xff] }
0x12f1   : > { %13248 = vmatpush3.bf16.msra.mxu0 %v13245_v34  ;;  %v13345_v34 = vpack.c.bf16 %v10012_v16, %v10011_v14  ;;  %v10063_v14 = vld [vmem:[%s17431_s11 + $0x98] sm:$0xff] }
0x12f2   : > { %13250 = vmatprep.subr.bf16.mxu0 %v13249_v33  ;;  %v10127_v16 = vld [vmem:[%s17430_s10 + $0x58] sm:$0xff] }
0x12f5   : > { %13252 = vmatpush3.bf16.msra.mxu0 %v13249_v33  ;;  %v10023_v33 = vld [vmem:[%s17427_s7 + $0x1c8] sm:$0xff] }
0x12f6   : > { %13254 = vmatprep.subr.bf16.mxu0 %v13253_v53 }
0x12f7   : > { %v11618_v59 = vpop.f32.mrb[206].mxu1 }
0x12f8   : > { %v5351_v0 = vpop.f32.mrb[207].mxu1 }
0x12f9   : > { %13256 = vmatpush3.bf16.msra.mxu0 %v13253_v53  ;;  %v13365_v53 = vpack.c.bf16 %v10025_v24, %v10024_v26  ;;  %v16621_v26 = vld [vmem:[%s17430_s10 + $0x78] sm:$0xff]  ;;  %v16627_v24 = vld [vmem:[%s17430_s10 + $0x80] sm:$0xff] }
0x12fa   : > { %13266 = vmatprep.subr.bf16.mxu0 %v13265_v35 }
0x12fc   : > { %11572 = vmatmul.mubr.msk.f32.vlgmr.msra.gmra.mrb[180].mxu0 %vm539_vm1, %v11554_v38  ;;  %v10007_v38 = vld [vmem:[%s17427_s7 + $0x180] sm:$0xff] }
0x12fd   : > { %13268 = vmatpush3.bf16.msra.mxu0 %v13265_v35  ;;  %11603 = vmatprep.mubr.msk.f32.mxu0 %vm539_vm1, %v5175_v28  ;;  %v13337_v21 = vpack.c.bf16 %v10008_v1, %v10007_v38  ;;  %v13369_v35 = vpack.c.bf16 %v10027_v43, %v10026_v52  ;;  %v10060_v38 = vld [vmem:[%s17431_s11 + $0x80] sm:$0xff]  ;;  %v10061_v1 = vld [vmem:[%s17431_s11 + $0x88] sm:$0xff]  ;;  %v10066_v52 = vld [vmem:[%s17431_s11 + $0xb0] sm:$0xff] }
0x12fe   : > { %13270 = vmatprep.subr.bf16.mxu0 %v13269_v48  ;;  %v13441_v56 = vpack.c.bf16 %v10061_v1, %v10060_v38  ;;  %v10067_v43 = vld [vmem:[%s17431_s11 + $0xb8] sm:$0xff] }
0x12ff   : > { %v10079_v38 = vld [vmem:[%s17431_s11 + $0xd8] sm:$0xff] }
0x1301   : > { %13272 = vmatpush3.bf16.msra.mxu0 %v13269_v48  ;;  %v16320_v9 = vpop.f32.mrb[208].mxu1  ;;  %v10038_v48 = vld [vmem:[%s17427_s7 + $0x208] sm:$0xff] }
0x1302   : > { %13274 = vmatprep.subr.bf16.mxu0 %v13273_v40  ;;  %v5527_v49 = vpop.f32.mrb[209].mxu1 }
0x1305   : > { %13276 = vmatpush3.bf16.msra.mxu0 %v13273_v40  ;;  %v10040_v40 = vld [vmem:[%s17427_s7 + $0x218] sm:$0xff] }
0x1306   : > { %13278 = vmatprep.subr.bf16.mxu0 %v13277_v51  ;;  %v13389_v3 = vpack.c.bf16 %v10040_v40, %v10039_v42  ;;  %v6347_v40 = vld [vmem:[%s17431_s11 + $0x10] sm:$0xff] }
0x1309   : > { %13280 = vmatpush3.bf16.msra.mxu0 %v13277_v51 }
0x130a   : > { %13290 = vmatprep.subr.bf16.mxu0 %v13289_v11 }
0x130b   : > { %v16340_v20 = vpop.f32.mrb[210].mxu1 }
0x130c   : > { %11604 = vmatmul.mubr.msk.f32.vlgmr.msra.gmra.mrb[180].mxu0 %vm539_vm1, %v11586_v44  ;;  %v5703_v25 = vpop.f32.mrb[211].mxu1  ;;  %v10022_v44 = vld [vmem:[%s17427_s7 + $0x1c0] sm:$0xff] }
0x130d   : > { %13292 = vmatpush3.bf16.msra.mxu0 %v13289_v11  ;;  %11635 = vmatprep.mubr.msk.f32.mxu0 %vm539_vm1, %v5351_v0  ;;  %v13361_v28 = vpack.c.bf16 %v10023_v33, %v10022_v44  ;;  %v10037_v0 = vld [vmem:[%s17427_s7 + $0x200] sm:$0xff]  ;;  %v6177_v11 = vld [vmem:[%s17429_s9 + $0x50] sm:$0xff]  ;;  %v16605_v44 = vld [vmem:[%s17430_s10 + $0x68] sm:$0xff] }
0x130e   : > { %13294 = vmatprep.subr.bf16.mxu0 %v13293_v62  ;;  %v13385_v45 = vpack.c.bf16 %v10038_v48, %v10037_v0  ;;  %v13421_v57 = vpack.c.bf16 %v6178_v17, %v6177_v11  ;;  %v16611_v33 = vld [vmem:[%s17430_s10 + $0x70] sm:$0xff]  ;;  %v6350_v11 = vld [vmem:[%s17431_s11 + $0x28] sm:$0xff] }
0x1310   : > { %13422 = vmatprep.subr.bf16.mxu1 %v13421_v57 }
0x1311   : > { %13296 = vmatpush3.bf16.msra.mxu0 %v13293_v62  ;;  %13424 = vmatpush3.bf16.msra.mxu1 %v13421_v57  ;;  %v10047_v62 = vld [vmem:[%s17428_s8] ss:$0 sm:$0xff] }
0x1312   : > { %13298 = vmatprep.subr.bf16.mxu0 %v13297_v2 }
0x1315   : > { %13300 = vmatpush3.bf16.msra.mxu0 %v13297_v2  ;;  %v16356_v13 = vpop.f32.mrb[212].mxu1 }
0x1316   : > { %13302 = vmatprep.subr.bf16.mxu0 %v13301_v7  ;;  %v5879_v8 = vpop.f32.mrb[213].mxu1 }
0x1319   : > { %13304 = vmatpush3.bf16.msra.mxu0 %v13301_v7  ;;  %v16484_v7 = vld [vmem:[%s17430_s10 + $0x20] sm:$0xff] }
0x131a   : > { %13314 = vmatprep.subr.bf16.mxu0 %v13313_v41 }
0x131c   : > { %11636 = vmatmul.mubr.msk.f32.vlgmr.msra.gmra.mrb[180].mxu0 %vm539_vm1, %v11618_v59  ;;  %v13373_v59 = vpack.c.bf16 %v10029_v30, %v10028_v32  ;;  %v6345_v32 = vld [vmem:[%s17431_s11] sm:$0xff]  ;;  %v6346_v30 = vld [vmem:[%s17431_s11 + $0x8] sm:$0xff] }
0x131d   : > { %13316 = vmatpush3.bf16.msra.mxu0 %v13313_v41  ;;  %11667 = vmatprep.mubr.msk.f32.mxu0 %vm539_vm1, %v5527_v49  ;;  %v10043_v49 = vld [vmem:[%s17427_s7 + $0x230] sm:$0xff]  ;;  %v10056_v41 = vld [vmem:[%s17431_s11 + $0x60] sm:$0xff] }
0x131e   : > { %13318 = vmatprep.subr.bf16.mxu0 %v13317_v29  ;;  %v13397_v46 = vpack.c.bf16 %v10044_v60, %v10043_v49 }
0x131f   : > { %v16378_v19 = vpop.f32.mrb[214].mxu1 }
0x1320   : > { %v6055_v37 = vpop.f32.mrb[215].mxu1 }
0x1321   : > { %13320 = vmatpush3.bf16.msra.mxu0 %v13317_v29  ;;  %v16515_v29 = vld [vmem:[%s17430_s10 + $0x10] sm:$0xff] }
0x1322   : > { %13322 = vmatprep.subr.bf16.mxu0 %v13321_v18 }
0x1325   : > { %13324 = vmatpush3.bf16.msra.mxu0 %v13321_v18  ;;  %v10058_v18 = vld [vmem:[%s17431_s11 + $0x70] sm:$0xff] }
0x1326   : > { %13326 = vmatprep.subr.bf16.mxu0 %v13325_v50 }
0x1329   : > { %13328 = vmatpush3.bf16.msra.mxu0 %v13325_v50  ;;  %v13437_v50 = vpack.c.bf16 %v10059_v63, %v10058_v18  ;;  %v10076_v18 = vld [vmem:[%s17431_s11 + $0xc0] sm:$0xff]  ;;  %v10077_v63 = vld [vmem:[%s17431_s11 + $0xc8] sm:$0xff] }
0x132a   : > { %13338 = vmatprep.subr.bf16.mxu0 %v13337_v21 }
0x132c   : > { %11668 = vmatmul.mubr.msk.f32.vlgmr.msra.gmra.mrb[180].mxu0 %vm539_vm1, %v16320_v9  ;;  %v10042_v9 = vld [vmem:[%s17427_s7 + $0x228] sm:$0xff] }
0x132d   : > { %13340 = vmatpush3.bf16.msra.mxu0 %v13337_v21  ;;  %11699 = vmatprep.mubr.msk.f32.mxu0 %vm539_vm1, %v5703_v25  ;;  %v13393_v51 = vpack.c.bf16 %v10042_v9, %v10041_v4  ;;  %v16567_v21 = vld [vmem:[%s17430_s10 + $0x48] sm:$0xff] }
0x132e   : > { %13342 = vmatprep.subr.bf16.mxu0 %v13341_v58 }
0x1331   : > { %13344 = vmatpush3.bf16.msra.mxu0 %v13341_v58  ;;  %v10062_v58 = vld [vmem:[%s17431_s11 + $0x90] sm:$0xff] }
0x1332   : > { %13346 = vmatprep.subr.bf16.mxu0 %v13345_v34  ;;  %v13445_v36 = vpack.c.bf16 %v10063_v14, %v10062_v58  ;;  %v10082_v14 = vld [vmem:[%s17431_s11 + $0xf0] sm:$0xff] }
0x1335   : > { %13348 = vmatpush3.bf16.msra.mxu0 %v13345_v34  ;;  %v16590_v34 = vld [vmem:[%s17430_s10 + $0x60] sm:$0xff] }
0x1336   : > { %13350 = vmatprep.subr.bf16.mxu0 %v13349_v55 }
0x1339   : > { %13352 = vmatpush3.bf16.msra.mxu0 %v13349_v55  ;;  %v10065_v55 = vld [vmem:[%s17431_s11 + $0xa8] sm:$0xff] }
0x133a   : > { %13362 = vmatprep.subr.bf16.mxu0 %v13361_v28 }
0x133c   : > { %11700 = vmatmul.mubr.msk.f32.vlgmr.msra.gmra.mrb[180].mxu0 %vm539_vm1, %v16340_v20 }
0x133d   : > { %13364 = vmatpush3.bf16.msra.mxu0 %v13361_v28  ;;  %11731 = vmatprep.mubr.msk.f32.mxu0 %vm539_vm1, %v5879_v8  ;;  %v10057_v8 = vld [vmem:[%s17431_s11 + $0x68] sm:$0xff]  ;;  %v13449_v28 = vpack.c.bf16 %v10065_v55, %v10064_v54  ;;  %v10084_v54 = vld [vmem:[%s17431_s11 + $0x100] sm:$0xff] }
0x133e   : > { %13366 = vmatprep.subr.bf16.mxu0 %v13365_v53  ;;  %v13433_v27 = vpack.c.bf16 %v10057_v8, %v10056_v41  ;;  %v10085_v55 = vld [vmem:[%s17431_s11 + $0x108] sm:$0xff] }
0x1341   : > { %13368 = vmatpush3.bf16.msra.mxu0 %v13365_v53  ;;  %v16637_v53 = vld [vmem:[%s17430_s10 + $0x88] sm:$0xff] }
0x1342   : > { %13370 = vmatprep.subr.bf16.mxu0 %v13369_v35 }
0x1345   : > { %13372 = vmatpush3.bf16.msra.mxu0 %v13369_v35  ;;  %v13453_v35 = vpack.c.bf16 %v10067_v43, %v10066_v52  ;;  %v10086_v52 = vld [vmem:[%s17431_s11 + $0x110] sm:$0xff]  ;;  %v10087_v43 = vld [vmem:[%s17431_s11 + $0x118] sm:$0xff] }
0x1346   : > { %13374 = vmatprep.subr.bf16.mxu0 %v13373_v59 }
0x1349   : > { %13376 = vmatpush3.bf16.msra.mxu0 %v13373_v59  ;;  %v13457_v59 = vpack.c.bf16 %v6346_v30, %v6345_v32  ;;  %v13505_v32 = vpack.c.bf16 %v10087_v43, %v10086_v52  ;;  %v10132_v43 = vld [vmem:[%s17431_s11 + $0x1f0] sm:$0xff] }
0x134a   : > { %13386 = vmatprep.subr.bf16.mxu0 %v13385_v45 }
0x134c   : > { %11732 = vmatmul.mubr.msk.f32.vlgmr.msra.gmra.mrb[180].mxu0 %vm539_vm1, %v16356_v13 }
0x134d   : > { %13388 = vmatpush3.bf16.msra.mxu0 %v13385_v45  ;;  %11763 = vmatprep.mubr.msk.f32.mxu0 %vm539_vm1, %v6055_v37  ;;  %v10108_v37 = vld [vmem:[%s17430_s10 + $0x40] sm:$0xff] }
0x134e   : > { %13390 = vmatprep.subr.bf16.mxu0 %v13389_v3 }
0x1351   : > { %13392 = vmatpush3.bf16.msra.mxu0 %v13389_v3  ;;  %v6348_v3 = vld [vmem:[%s17431_s11 + $0x18] sm:$0xff] }
0x1352   : > { %13394 = vmatprep.subr.bf16.mxu0 %v13393_v51  ;;  %v13461_v49 = vpack.c.bf16 %v6348_v3, %v6347_v40  ;;  %v10097_v40 = vld [vmem:[%s17431_s11 + $0x138] sm:$0xff] }
0x1355   : > { %13396 = vmatpush3.bf16.msra.mxu0 %v13393_v51 }
0x1356   : > { %13398 = vmatprep.subr.bf16.mxu0 %v13397_v46 }
0x1359   : > { %13400 = vmatpush3.bf16.msra.mxu0 %v13397_v46  ;;  %v6349_v46 = vld [vmem:[%s17431_s11 + $0x20] sm:$0xff] }
0x135a   : > { %v13465_v57 = vpack.c.bf16 %v6350_v11, %v6349_v46  ;;  %v10100_v46 = vld [vmem:[%s17431_s11 + $0x150] sm:$0xff]  ;;  %v10101_v11 = vld [vmem:[%s17431_s11 + $0x158] sm:$0xff] }
0x135c   : > { %11764 = vmatmul.mubr.msk.f32.vlgmr.msra.gmra.mrb[180].mxu0 %vm539_vm1, %v16378_v19  ;;  %v16542_v19 = vld [vmem:[%s17430_s10 + $0x38] sm:$0xff] }
0x135d   : > { %11865 = vmatprep.mubr.msk.f32.mxu0 %vm6263_vm8, %v16484_v7 }
0x142f   : > { %v11765_v5 = vpop.f32.mrb[180].mxu0 }
0x1430   : > { %v6164_v61 = vadd.f32 %v11765_v5, %v10047_v62  ;;  %v6145_v20 = vpop.f32.mrb[181].mxu0  ;;  %v6351_v5 = vld [vmem:[%s17431_s11 + $0x30] sm:$0xff] }
0x1431   : > { %v6163_v25 = vadd.f32 %v10047_v62, %v6145_v20 }
0x1432   : > { %v6166_v6 = vmax.f32 %v6164_v61, 0.0  ;;  %v6352_v61 = vld [vmem:[%s17431_s11 + $0x38] sm:$0xff] }
0x1433   : > { %v6165_v2 = vmax.f32 %v6163_v25, 0.0  ;;  %v13469_v25 = vpack.c.bf16 %v6352_v61, %v6351_v5 }
0x1435   : > { %11790 = vmatprep.mubr.msk.f32.mxu1 %vm6179_vm7, %v6165_v2 }
0x1436   : > { %11791 = vmatmul.mubr.msk.f32.vlgmr.msra.gmra.mrb[216].mxu1 %vm6179_vm7, %v6166_v6  ;;  %v6353_v6 = vld [vmem:[%s17431_s11 + $0x40] sm:$0xff] }
0x1437   : > { %11797 = vmatprep.mubr.msk.f32.mxu1 %vm6263_vm8, %v16477_v12 }
0x1509   : > { %v11792_v31 = vpop.f32.mrb[216].mxu1 }
0x150a   : > { %v6252_v10 = vpop.f32.mrb[217].mxu1 }
0x150b   : > { %v16488_v13 = vpack.c.bf16 %v11792_v31, %v6252_v10  ;;  %v6355_v10 = vld [vmem:[%s17431_s11 + $0x50] sm:$0xff] }
0x150d   : > { %13426 = vmatprep.subr.bf16.mxu1 %v16488_v13  ;;  %13482 = vmatprep.subr.bf16.mxu0 %v16488_v13 }
0x150e   : > { %13428 = vmatpush3.bf16.msra.mxu1 %v16488_v13  ;;  %13484 = vmatpush3.bf16.msra.mxu0 %v16488_v13 }
0x150f   : > { %13430 = vmatprep.subr.bf16.mxu1 %v16488_v13  ;;  %13510 = vmatprep.subr.bf16.mxu0 %v16488_v13 }
0x1511   : > { %11798 = vmatmul.mubr.msk.f32.vlgmr.msra.gmra.mrb[218].mxu1 %vm6263_vm8, %v16503_v23  ;;  %11866 = vmatmul.mubr.msk.f32.vlgmr.msra.gmra.mrb[182].mxu0 %vm6263_vm8, %v16508_v47 }
0x1512   : > { %13432 = vmatpush3.bf16.msra.mxu1 %v16488_v13  ;;  %13512 = vmatpush3.bf16.msra.mxu0 %v16488_v13 }
0x1513   : > { %13538 = vmatprep.subr.bf16.mxu0 %v16488_v13  ;;  %11804 = vmatprep.mubr.msk.f32.mxu1 %vm6263_vm8, %v16515_v29 }
0x1514   : > { %11899 = vmatprep.mubr.msk.f32.mxu0 %vm6263_vm8, %v16524_v22  ;;  %13434 = vmatprep.subr.bf16.mxu1 %v13433_v27 }
0x1515   : > { %11805 = vmatmul.mubr.msk.f32.vlgmr.msra.gmra.mrb[220].mxu1 %vm6263_vm8, %v16537_v15  ;;  %11900 = vmatmul.mubr.msk.f32.vlgmr.msra.gmra.mrb[184].mxu0 %vm6263_vm8, %v16542_v19 }
0x1516   : > { %13540 = vmatpush3.bf16.msra.mxu0 %v16488_v13  ;;  %11933 = vmatprep.mubr.msk.f32.mxu0 %vm6263_vm8, %v10108_v37  ;;  %v13485_v37 = vpack.c.bf16 %v10077_v63, %v10076_v18  ;;  %v10114_v18 = vld [vmem:[%s17431_s11 + $0x190] sm:$0xff]  ;;  %v10115_v63 = vld [vmem:[%s17431_s11 + $0x198] sm:$0xff] }
0x1517   : > { %13566 = vmatprep.subr.bf16.mxu0 %v16488_v13  ;;  %13436 = vmatpush3.bf16.msra.mxu1 %v13433_v27 }
0x1518   : > { %13438 = vmatprep.subr.bf16.mxu1 %v13437_v50 }
0x1519   : > { %11934 = vmatmul.mubr.msk.f32.vlgmr.msra.gmra.mrb[186].mxu0 %vm6263_vm8, %v16567_v21 }
0x151a   : > { %13568 = vmatpush3.bf16.msra.mxu0 %v16488_v13  ;;  %11967 = vmatprep.mubr.msk.f32.mxu0 %vm6263_vm8, %v10126_v39  ;;  %v10080_v39 = vld [vmem:[%s17431_s11 + $0xe0] sm:$0xff] }
0x151b   : > { %13594 = vmatprep.subr.bf16.mxu0 %v16488_v13  ;;  %13440 = vmatpush3.bf16.msra.mxu1 %v13437_v50  ;;  %v10078_v50 = vld [vmem:[%s17431_s11 + $0xd0] sm:$0xff] }
0x151c   : > { %13442 = vmatprep.subr.bf16.mxu1 %v13441_v56  ;;  %v13489_v1 = vpack.c.bf16 %v10079_v38, %v10078_v50  ;;  %v10116_v50 = vld [vmem:[%s17431_s11 + $0x1a0] sm:$0xff]  ;;  %v10117_v38 = vld [vmem:[%s17431_s11 + $0x1a8] sm:$0xff] }
0x151d   : > { %11968 = vmatmul.mubr.msk.f32.vlgmr.msra.gmra.mrb[188].mxu0 %vm6263_vm8, %v10127_v16  ;;  %v10083_v16 = vld [vmem:[%s17431_s11 + $0xf8] sm:$0xff] }
0x151e   : > { %13596 = vmatpush3.bf16.msra.mxu0 %v16488_v13  ;;  %12001 = vmatprep.mubr.msk.f32.mxu0 %vm6263_vm8, %v16590_v34 }
0x151f   : > { %13622 = vmatprep.subr.bf16.mxu0 %v16488_v13  ;;  %13444 = vmatpush3.bf16.msra.mxu1 %v13441_v56  ;;  %v10081_v56 = vld [vmem:[%s17431_s11 + $0xe8] sm:$0xff] }
0x1520   : > { %13446 = vmatprep.subr.bf16.mxu1 %v13445_v36  ;;  %v13493_v58 = vpack.c.bf16 %v10081_v56, %v10080_v39  ;;  %v10118_v39 = vld [vmem:[%s17431_s11 + $0x1b0] sm:$0xff]  ;;  %v10119_v56 = vld [vmem:[%s17431_s11 + $0x1b8] sm:$0xff] }
0x1521   : > { %12002 = vmatmul.mubr.msk.f32.vlgmr.msra.gmra.mrb[190].mxu0 %vm6263_vm8, %v16605_v44 }
0x1522   : > { %13624 = vmatpush3.bf16.msra.mxu0 %v16488_v13  ;;  %12035 = vmatprep.mubr.msk.f32.mxu0 %vm6263_vm8, %v16611_v33 }
0x1523   : > { %13650 = vmatprep.subr.bf16.mxu0 %v16488_v13  ;;  %13448 = vmatpush3.bf16.msra.mxu1 %v13445_v36  ;;  %v13497_v36 = vpack.c.bf16 %v10083_v16, %v10082_v14  ;;  %v10122_v16 = vld [vmem:[%s17431_s11 + $0x1d0] sm:$0xff] }
0x1524   : > { %13450 = vmatprep.subr.bf16.mxu1 %v13449_v28 }
0x1525   : > { %12036 = vmatmul.mubr.msk.f32.vlgmr.msra.gmra.mrb[192].mxu0 %vm6263_vm8, %v16621_v26 }
0x1526   : > { %13652 = vmatpush3.bf16.msra.mxu0 %v16488_v13  ;;  %12069 = vmatprep.mubr.msk.f32.mxu0 %vm6263_vm8, %v16627_v24  ;;  %v6356_v13 = vld [vmem:[%s17431_s11 + $0x58] sm:$0xff] }
0x1527   : > { %13452 = vmatpush3.bf16.msra.mxu1 %v13449_v28  ;;  %v13477_v8 = vpack.c.bf16 %v6356_v13, %v6355_v10  ;;  %v13501_v28 = vpack.c.bf16 %v10085_v55, %v10084_v54  ;;  %v10112_v10 = vld [vmem:[%s17431_s11 + $0x180] sm:$0xff]  ;;  %v10113_v13 = vld [vmem:[%s17431_s11 + $0x188] sm:$0xff] }
0x1528   : > { %13454 = vmatprep.subr.bf16.mxu1 %v13453_v35  ;;  %v10130_v55 = vld [vmem:[%s17431_s11 + $0x1e0] sm:$0xff] }
0x1529   : > { %12070 = vmatmul.mubr.msk.f32.vlgmr.msra.gmra.mrb[194].mxu0 %vm6263_vm8, %v16637_v53 }
0x152a   : > { %12103 = vmatprep.mubr.msk.f32.mxu0 %vm6263_vm8, %v16477_v12  ;;  %v6354_v12 = vld [vmem:[%s17431_s11 + $0x48] sm:$0xff] }
0x152b   : > { %13456 = vmatpush3.bf16.msra.mxu1 %v13453_v35  ;;  %v13473_v31 = vpack.c.bf16 %v6354_v12, %v6353_v6  ;;  %v10105_v6 = vld [vmem:[%s17431_s11 + $0x178] sm:$0xff] }
0x152c   : > { %13458 = vmatprep.subr.bf16.mxu1 %v13457_v59 }
0x15e4   : > { %v11799_v0 = vpop.f32.mrb[218].mxu1  ;;  %v16655_v48 = vpop.f32.mrb[182].mxu0 }
0x15e5   : > { %v6336_v45 = vpop.f32.mrb[219].mxu1  ;;  %v6691_v42 = vpop.f32.mrb[183].mxu0 }
0x15e8   : > { %v11806_v4 = vpop.f32.mrb[220].mxu1  ;;  %v16663_v9 = vpop.f32.mrb[184].mxu0 }
0x15e9   : > { %v6432_v51 = vpop.f32.mrb[221].mxu1  ;;  %v16665_v60 = vpop.f32.mrb[185].mxu0 }
0x15ea   : > { %11831 = vmatprep.mubr.msk.f32.mxu1 %vm6179_vm7, %v6432_v51  ;;  %v10099_v51 = vld [vmem:[%s17431_s11 + $0x148] sm:$0xff] }
0x15eb   : > { %11832 = vmatmul.mubr.msk.f32.vlgmr.msra.gmra.mrb[222].mxu1 %vm6179_vm7, %v11806_v4  ;;  %v10098_v4 = vld [vmem:[%s17431_s11 + $0x140] sm:$0xff] }
0x15ec   : > { %13460 = vmatpush3.bf16.msra.mxu1 %v13457_v59  ;;  %11858 = vmatprep.mubr.msk.f32.mxu1 %vm6179_vm7, %v6336_v45  ;;  %v16676_v17 = vpop.f32.mrb[186].mxu0  ;;  %v10094_v59 = vld [vmem:[%s17431_s11 + $0x120] sm:$0xff] }
0x15ed   : > { %13462 = vmatprep.subr.bf16.mxu1 %v13461_v49  ;;  %v16678_v62 = vpop.f32.mrb[187].mxu0 }
0x15f0   : > { %13464 = vmatpush3.bf16.msra.mxu1 %v13461_v49  ;;  %v16686_v20 = vpop.f32.mrb[188].mxu0  ;;  %v13521_v49 = vpack.c.bf16 %v10099_v51, %v10098_v4 }
0x15f1   : > { %13466 = vmatprep.subr.bf16.mxu1 %v13465_v57  ;;  %v16688_v2 = vpop.f32.mrb[189].mxu0 }
0x15f4   : > { %13468 = vmatpush3.bf16.msra.mxu1 %v13465_v57  ;;  %v16702_v41 = vpop.f32.mrb[190].mxu0  ;;  %v13525_v57 = vpack.c.bf16 %v10101_v11, %v10100_v46  ;;  %v10141_v46 = vld [vmem:[%s17431_s11 + $0x238] sm:$0xff] }
0x15f5   : > { %13470 = vmatprep.subr.bf16.mxu1 %v13469_v25  ;;  %v16704_v27 = vpop.f32.mrb[191].mxu0 }
0x15f8   : > { %13472 = vmatpush3.bf16.msra.mxu1 %v13469_v25  ;;  %v16744_v35 = vpop.f32.mrb[192].mxu0  ;;  %v10104_v25 = vld [vmem:[%s17431_s11 + $0x170] sm:$0xff] }
0x15f9   : > { %13474 = vmatprep.subr.bf16.mxu1 %v13473_v31  ;;  %v16746_v30 = vpop.f32.mrb[193].mxu0 }
0x15fc   : > { %13476 = vmatpush3.bf16.msra.mxu1 %v13473_v31  ;;  %v16782_v61 = vpop.f32.mrb[194].mxu0  ;;  %v13533_v31 = vpack.c.bf16 %v10105_v6, %v10104_v25  ;;  %v10151_v25 = vld [vmem:[%s17431_s11 + $0x258] sm:$0xff] }
0x15fd   : > { %13478 = vmatprep.subr.bf16.mxu1 %v13477_v8  ;;  %v16790_v12 = vpop.f32.mrb[195].mxu0 }
0x1600   : > { %13480 = vmatpush3.bf16.msra.mxu1 %v13477_v8  ;;  %v13541_v8 = vpack.c.bf16 %v10113_v13, %v10112_v10  ;;  %v10153_v10 = vld [vmem:[%s17431_s11 + $0x268] sm:$0xff] }
0x1601   : > { %13486 = vmatprep.subr.bf16.mxu1 %v13485_v37 }
0x1603   : > { %11859 = vmatmul.mubr.msk.f32.vlgmr.msra.gmra.mrb[222].mxu1 %vm6179_vm7, %v11799_v0  ;;  %v10095_v0 = vld [vmem:[%s17431_s11 + $0x128] sm:$0xff] }
0x1604   : > { %13488 = vmatpush3.bf16.msra.mxu1 %v13485_v37  ;;  %11892 = vmatprep.mubr.msk.f32.mxu1 %vm6179_vm7, %v6691_v42  ;;  %v13513_v45 = vpack.c.bf16 %v10095_v0, %v10094_v59  ;;  %v10096_v42 = vld [vmem:[%s17431_s11 + $0x130] sm:$0xff]  ;;  %v13545_v37 = vpack.c.bf16 %v10115_v63, %v10114_v18  ;;  %v10134_v0 = vld [vmem:[%s17431_s11 + $0x200] sm:$0xff]  ;;  %v10155_v18 = vld [vmem:[%s17431_s11 + $0x278] sm:$0xff] }
0x1605   : > { %13490 = vmatprep.subr.bf16.mxu1 %v13489_v1  ;;  %v13517_v3 = vpack.c.bf16 %v10097_v40, %v10096_v42  ;;  %v10136_v40 = vld [vmem:[%s17431_s11 + $0x210] sm:$0xff] }
0x1608   : > { %13492 = vmatpush3.bf16.msra.mxu1 %v13489_v1  ;;  %v13549_v1 = vpack.c.bf16 %v10117_v38, %v10116_v50  ;;  %v10158_v50 = vld [vmem:[%s17431_s11 + $0x290] sm:$0xff]  ;;  %v10159_v38 = vld [vmem:[%s17431_s11 + $0x298] sm:$0xff] }
0x1609   : > { %13494 = vmatprep.subr.bf16.mxu1 %v13493_v58 }
0x160c   : > { %13496 = vmatpush3.bf16.msra.mxu1 %v13493_v58  ;;  %v13553_v58 = vpack.c.bf16 %v10119_v56, %v10118_v39  ;;  %v10166_v39 = vld [vmem:[%s17431_s11 + $0x2a0] sm:$0xff]  ;;  %v10167_v56 = vld [vmem:[%s17431_s11 + $0x2a8] sm:$0xff] }
0x160d   : > { %13498 = vmatprep.subr.bf16.mxu1 %v13497_v36 }
0x1610   : > { %13500 = vmatpush3.bf16.msra.mxu1 %v13497_v36  ;;  %v10123_v36 = vld [vmem:[%s17431_s11 + $0x1d8] sm:$0xff] }
0x1611   : > { %13502 = vmatprep.subr.bf16.mxu1 %v13501_v28  ;;  %v13561_v54 = vpack.c.bf16 %v10123_v36, %v10122_v16  ;;  %v10170_v16 = vld [vmem:[%s17431_s11 + $0x2c0] sm:$0xff]  ;;  %v10171_v36 = vld [vmem:[%s17431_s11 + $0x2c8] sm:$0xff] }
0x1614   : > { %13504 = vmatpush3.bf16.msra.mxu1 %v13501_v28  ;;  %v10131_v28 = vld [vmem:[%s17431_s11 + $0x1e8] sm:$0xff] }
0x1615   : > { %13506 = vmatprep.subr.bf16.mxu1 %v13505_v32  ;;  %v13569_v52 = vpack.c.bf16 %v10131_v28, %v10130_v55  ;;  %v10172_v55 = vld [vmem:[%s17431_s11 + $0x2d0] sm:$0xff]  ;;  %v10173_v28 = vld [vmem:[%s17431_s11 + $0x2d8] sm:$0xff] }
0x1618   : > { %13508 = vmatpush3.bf16.msra.mxu1 %v13505_v32  ;;  %v10133_v32 = vld [vmem:[%s17431_s11 + $0x1f8] sm:$0xff] }
0x1619   : > { %13514 = vmatprep.subr.bf16.mxu1 %v13513_v45  ;;  %v13573_v59 = vpack.c.bf16 %v10133_v32, %v10132_v43  ;;  %v10176_v32 = vld [vmem:[%s17431_s11 + $0x2f0] sm:$0xff] }
0x161b   : > { %11893 = vmatmul.mubr.msk.f32.vlgmr.msra.gmra.mrb[222].mxu1 %vm6179_vm7, %v16655_v48  ;;  %v10102_v48 = vld [vmem:[%s17431_s11 + $0x160] sm:$0xff] }
0x161c   : > { %13516 = vmatpush3.bf16.msra.mxu1 %v13513_v45  ;;  %11926 = vmatprep.mubr.msk.f32.mxu1 %vm6179_vm7, %v16665_v60  ;;  %v10103_v60 = vld [vmem:[%s17431_s11 + $0x168] sm:$0xff] }
0x161d   : > { %13518 = vmatprep.subr.bf16.mxu1 %v13517_v3  ;;  %v13529_v5 = vpack.c.bf16 %v10103_v60, %v10102_v48  ;;  %v10135_v45 = vld [vmem:[%s17431_s11 + $0x208] sm:$0xff] }
0x161e   : > { %v13577_v42 = vpack.c.bf16 %v10135_v45, %v10134_v0  ;;  %v10149_v48 = vld [vmem:[%s17431_s11 + $0x248] sm:$0xff]  ;;  %v10184_v45 = vld [vmem:[%s17431_s11 + $0x300] sm:$0xff] }
0x1620   : > { %13520 = vmatpush3.bf16.msra.mxu1 %v13517_v3  ;;  %v10137_v3 = vld [vmem:[%s17431_s11 + $0x218] sm:$0xff] }
0x1621   : > { %13522 = vmatprep.subr.bf16.mxu1 %v13521_v49  ;;  %v13581_v4 = vpack.c.bf16 %v10137_v3, %v10136_v40  ;;  %v10186_v3 = vld [vmem:[%s17431_s11 + $0x310] sm:$0xff] }
0x1624   : > { %13524 = vmatpush3.bf16.msra.mxu1 %v13521_v49  ;;  %v10140_v49 = vld [vmem:[%s17431_s11 + $0x230] sm:$0xff] }
0x1625   : > { %13526 = vmatprep.subr.bf16.mxu1 %v13525_v57  ;;  %v13589_v11 = vpack.c.bf16 %v10141_v46, %v10140_v49  ;;  %v10190_v46 = vld [vmem:[%s17431_s11 + $0x330] sm:$0xff] }
0x1628   : > { %13528 = vmatpush3.bf16.msra.mxu1 %v13525_v57  ;;  %v10148_v57 = vld [vmem:[%s17431_s11 + $0x240] sm:$0xff] }
0x1629   : > { %13530 = vmatprep.subr.bf16.mxu1 %v13529_v5  ;;  %v13597_v60 = vpack.c.bf16 %v10149_v48, %v10148_v57 }
0x162c   : > { %13532 = vmatpush3.bf16.msra.mxu1 %v13529_v5  ;;  %v10150_v5 = vld [vmem:[%s17431_s11 + $0x250] sm:$0xff] }
0x162d   : > { %13534 = vmatprep.subr.bf16.mxu1 %v13533_v31  ;;  %v13601_v6 = vpack.c.bf16 %v10151_v25, %v10150_v5  ;;  %v10195_v5 = vld [vmem:[%s17431_s11 + $0x358] sm:$0xff] }
0x1630   : > { %13536 = vmatpush3.bf16.msra.mxu1 %v13533_v31  ;;  %v10152_v31 = vld [vmem:[%s17431_s11 + $0x260] sm:$0xff] }
0x1631   : > { %13542 = vmatprep.subr.bf16.mxu1 %v13541_v8  ;;  %v13605_v13 = vpack.c.bf16 %v10153_v10, %v10152_v31 }
0x1633   : > { %11927 = vmatmul.mubr.msk.f32.vlgmr.msra.gmra.mrb[222].mxu1 %vm6179_vm7, %v16663_v9  ;;  %v10120_v9 = vld [vmem:[%s17431_s11 + $0x1c0] sm:$0xff] }
0x1634   : > { %13544 = vmatpush3.bf16.msra.mxu1 %v13541_v8  ;;  %11960 = vmatprep.mubr.msk.f32.mxu1 %vm6179_vm7, %v16678_v62  ;;  %v10121_v62 = vld [vmem:[%s17431_s11 + $0x1c8] sm:$0xff]  ;;  %v10154_v8 = vld [vmem:[%s17431_s11 + $0x270] sm:$0xff] }
0x1635   : > { %13546 = vmatprep.subr.bf16.mxu1 %v13545_v37  ;;  %v13557_v14 = vpack.c.bf16 %v10121_v62, %v10120_v9  ;;  %v13609_v63 = vpack.c.bf16 %v10155_v18, %v10154_v8  ;;  %v10168_v9 = vld [vmem:[%s17431_s11 + $0x2b0] sm:$0xff]  ;;  %v10169_v62 = vld [vmem:[%s17431_s11 + $0x2b8] sm:$0xff] }
0x1638   : > { %13548 = vmatpush3.bf16.msra.mxu1 %v13545_v37 }
0x1639   : > { %13550 = vmatprep.subr.bf16.mxu1 %v13549_v1 }
0x163c   : > { %13552 = vmatpush3.bf16.msra.mxu1 %v13549_v1  ;;  %v13617_v1 = vpack.c.bf16 %v10159_v38, %v10158_v50  ;;  %v10205_v38 = vld [vmem:[%s17433_s13 + $0x70] sm:$0xff] }
0x163d   : > { %13554 = vmatprep.subr.bf16.mxu1 %v13553_v58 }
0x1640   : > { %13556 = vmatpush3.bf16.msra.mxu1 %v13553_v58  ;;  %v13625_v58 = vpack.c.bf16 %v10167_v56, %v10166_v39  ;;  %v10210_v56 = vld [vmem:[%s17433_s13 + $0x98] sm:$0xff] }
0x1641   : > { %13558 = vmatprep.subr.bf16.mxu1 %v13557_v14 }
0x1644   : > { %13560 = vmatpush3.bf16.msra.mxu1 %v13557_v14  ;;  %v13629_v14 = vpack.c.bf16 %v10169_v62, %v10168_v9  ;;  %v10214_v9 = vld [vmem:[%s17433_s13 + $0xb8] sm:$0xff] }
0x1645   : > { %13562 = vmatprep.subr.bf16.mxu1 %v13561_v54 }
0x1648   : > { %13564 = vmatpush3.bf16.msra.mxu1 %v13561_v54  ;;  %v13633_v54 = vpack.c.bf16 %v10171_v36, %v10170_v16  ;;  %v7967_v16 = vld [vmem:[%s17433_s13 + $0x8] sm:$0xff] }
0x1649   : > { %13570 = vmatprep.subr.bf16.mxu1 %v13569_v52 }
0x164b   : > { %11961 = vmatmul.mubr.msk.f32.vlgmr.msra.gmra.mrb[222].mxu1 %vm6179_vm7, %v16676_v17  ;;  %v10138_v17 = vld [vmem:[%s17431_s11 + $0x220] sm:$0xff] }
0x164c   : > { %13572 = vmatpush3.bf16.msra.mxu1 %v13569_v52  ;;  %11994 = vmatprep.mubr.msk.f32.mxu1 %vm6179_vm7, %v16688_v2  ;;  %v10139_v2 = vld [vmem:[%s17431_s11 + $0x228] sm:$0xff]  ;;  %v13637_v52 = vpack.c.bf16 %v10173_v28, %v10172_v55  ;;  %v7968_v28 = vld [vmem:[%s17433_s13 + $0x10] sm:$0xff] }
0x164d   : > { %13574 = vmatprep.subr.bf16.mxu1 %v13573_v59  ;;  %v13585_v51 = vpack.c.bf16 %v10139_v2, %v10138_v17  ;;  %v10188_v2 = vld [vmem:[%s17431_s11 + $0x320] sm:$0xff] }
0x1650   : > { %13576 = vmatpush3.bf16.msra.mxu1 %v13573_v59  ;;  %v10177_v59 = vld [vmem:[%s17431_s11 + $0x2f8] sm:$0xff] }
0x1651   : > { %13578 = vmatprep.subr.bf16.mxu1 %v13577_v42  ;;  %v13645_v0 = vpack.c.bf16 %v10177_v59, %v10176_v32  ;;  %v7970_v32 = vld [vmem:[%s17433_s13 + $0x20] sm:$0xff]  ;;  %v7971_v59 = vld [vmem:[%s17433_s13 + $0x28] sm:$0xff] }
0x1654   : > { %13580 = vmatpush3.bf16.msra.mxu1 %v13577_v42  ;;  %v10185_v42 = vld [vmem:[%s17431_s11 + $0x308] sm:$0xff] }
0x1655   : > { %13582 = vmatprep.subr.bf16.mxu1 %v13581_v4  ;;  %v13653_v40 = vpack.c.bf16 %v10185_v42, %v10184_v45  ;;  %v7972_v45 = vld [vmem:[%s17433_s13 + $0x30] sm:$0xff]  ;;  %v7973_v42 = vld [vmem:[%s17433_s13 + $0x38] sm:$0xff] }
0x1658   : > { %13584 = vmatpush3.bf16.msra.mxu1 %v13581_v4  ;;  %v10187_v4 = vld [vmem:[%s17431_s11 + $0x318] sm:$0xff] }
0x1659   : > { %13586 = vmatprep.subr.bf16.mxu1 %v13585_v51  ;;  %v13657_v17 = vpack.c.bf16 %v10187_v4, %v10186_v3  ;;  %v7974_v3 = vld [vmem:[%s17433_s13 + $0x40] sm:$0xff]  ;;  %v7975_v4 = vld [vmem:[%s17433_s13 + $0x48] sm:$0xff] }
0x165c   : > { %13588 = vmatpush3.bf16.msra.mxu1 %v13585_v51  ;;  %v10189_v51 = vld [vmem:[%s17431_s11 + $0x328] sm:$0xff] }
0x165d   : > { %13590 = vmatprep.subr.bf16.mxu1 %v13589_v11  ;;  %v13661_v49 = vpack.c.bf16 %v10189_v51, %v10188_v2  ;;  %v7976_v2 = vld [vmem:[%s17433_s13 + $0x50] sm:$0xff]  ;;  %v7977_v51 = vld [vmem:[%s17433_s13 + $0x58] sm:$0xff] }
0x1660   : > { %13592 = vmatpush3.bf16.msra.mxu1 %v13589_v11  ;;  %v10191_v11 = vld [vmem:[%s17431_s11 + $0x338] sm:$0xff] }
0x1661   : > { %13598 = vmatprep.subr.bf16.mxu1 %v13597_v60  ;;  %v13665_v57 = vpack.c.bf16 %v10191_v11, %v10190_v46  ;;  %v10221_v46 = vld [vmem:[%s17433_s13 + $0xc0] sm:$0xff]  ;;  %v10222_v11 = vld [vmem:[%s17433_s13 + $0xc8] sm:$0xff] }
0x1663   : > { %11995 = vmatmul.mubr.msk.f32.vlgmr.msra.gmra.mrb[222].mxu1 %vm6179_vm7, %v16686_v20  ;;  %v10156_v20 = vld [vmem:[%s17431_s11 + $0x280] sm:$0xff] }
0x1664   : > { %13600 = vmatpush3.bf16.msra.mxu1 %v13597_v60  ;;  %12028 = vmatprep.mubr.msk.f32.mxu1 %vm6179_vm7, %v16704_v27  ;;  %v10157_v27 = vld [vmem:[%s17431_s11 + $0x288] sm:$0xff]  ;;  %v10194_v60 = vld [vmem:[%s17431_s11 + $0x350] sm:$0xff] }
0x1665   : > { %13602 = vmatprep.subr.bf16.mxu1 %v13601_v6  ;;  %v13613_v37 = vpack.c.bf16 %v10157_v27, %v10156_v20  ;;  %v13673_v25 = vpack.c.bf16 %v10195_v5, %v10194_v60  ;;  %v10225_v60 = vld [vmem:[%s17433_s13 + $0xe0] sm:$0xff]  ;;  %v10226_v5 = vld [vmem:[%s17433_s13 + $0xe8] sm:$0xff] }
0x1668   : > { %13604 = vmatpush3.bf16.msra.mxu1 %v13601_v6  ;;  %v10198_v6 = vld [vmem:[%s17432_s12] ss:$0 sm:$0xff] }
0x1669   : > { %13606 = vmatprep.subr.bf16.mxu1 %v13605_v13 }
0x166c   : > { %13608 = vmatpush3.bf16.msra.mxu1 %v13605_v13 }
0x166d   : > { %13610 = vmatprep.subr.bf16.mxu1 %v13609_v63 }
0x1670   : > { %13612 = vmatpush3.bf16.msra.mxu1 %v13609_v63 }
0x1671   : > { %13614 = vmatprep.subr.bf16.mxu1 %v13613_v37 }
0x1674   : > { %13616 = vmatpush3.bf16.msra.mxu1 %v13613_v37 }
0x1675   : > { %13618 = vmatprep.subr.bf16.mxu1 %v13617_v1 }
0x1678   : > { %13620 = vmatpush3.bf16.msra.mxu1 %v13617_v1  ;;  %v10206_v1 = vld [vmem:[%s17433_s13 + $0x78] sm:$0xff] }
0x1679   : > { %13626 = vmatprep.subr.bf16.mxu1 %v13625_v58  ;;  %v13689_v39 = vpack.c.bf16 %v10206_v1, %v10205_v38  ;;  %v10239_v38 = vld [vmem:[%s17433_s13 + $0x130] sm:$0xff]  ;;  %v10240_v1 = vld [vmem:[%s17433_s13 + $0x138] sm:$0xff] }
0x167b   : > { %12029 = vmatmul.mubr.msk.f32.vlgmr.msra.gmra.mrb[222].mxu1 %vm6179_vm7, %v16702_v41  ;;  %v10174_v41 = vld [vmem:[%s17431_s11 + $0x2e0] sm:$0xff] }
0x167c   : > { %13628 = vmatpush3.bf16.msra.mxu1 %v13625_v58  ;;  %12062 = vmatprep.mubr.msk.f32.mxu1 %vm6179_vm7, %v16746_v30  ;;  %v10175_v30 = vld [vmem:[%s17431_s11 + $0x2e8] sm:$0xff] }
0x167d   : > { %13630 = vmatprep.subr.bf16.mxu1 %v13629_v14  ;;  %v13641_v43 = vpack.c.bf16 %v10175_v30, %v10174_v41 }
0x1680   : > { %13632 = vmatpush3.bf16.msra.mxu1 %v13629_v14  ;;  %v7966_v14 = vld [vmem:[%s17433_s13] sm:$0xff] }
0x1681   : > { %13634 = vmatprep.subr.bf16.mxu1 %v13633_v54  ;;  %v13709_v36 = vpack.c.bf16 %v7967_v16, %v7966_v14 }
0x1684   : > { %13636 = vmatpush3.bf16.msra.mxu1 %v13633_v54 }
0x1685   : > { %13638 = vmatprep.subr.bf16.mxu1 %v13637_v52 }
0x1688   : > { %13640 = vmatpush3.bf16.msra.mxu1 %v13637_v52  ;;  %v7969_v52 = vld [vmem:[%s17433_s13 + $0x18] sm:$0xff] }
0x1689   : > { %13642 = vmatprep.subr.bf16.mxu1 %v13641_v43 }
0x168c   : > { %13644 = vmatpush3.bf16.msra.mxu1 %v13641_v43  ;;  %v13713_v43 = vpack.c.bf16 %v7969_v52, %v7968_v28  ;;  %v13997_v28 = vld [vmem:[%s17430_s10 + $0x40] sm:$0xff] }
0x168d   : > { %13646 = vmatprep.subr.bf16.mxu1 %v13645_v0 }
0x1690   : > { %13648 = vmatpush3.bf16.msra.mxu1 %v13645_v0  ;;  %v13717_v0 = vpack.c.bf16 %v7971_v59, %v7970_v32  ;;  %v10259_v32 = vld [vmem:[%s17433_s13 + $0x1b0] sm:$0xff]  ;;  %v10260_v59 = vld [vmem:[%s17433_s13 + $0x1b8] sm:$0xff] }
0x1691   : > { %13654 = vmatprep.subr.bf16.mxu1 %v13653_v40 }
0x1693   : > { %12063 = vmatmul.mubr.msk.f32.vlgmr.msra.gmra.mrb[222].mxu1 %vm6179_vm7, %v16744_v35  ;;  %v10192_v35 = vld [vmem:[%s17431_s11 + $0x340] sm:$0xff] }
0x1694   : > { %13656 = vmatpush3.bf16.msra.mxu1 %v13653_v40  ;;  %12096 = vmatprep.mubr.msk.f32.mxu1 %vm6179_vm7, %v16790_v12  ;;  %v10193_v12 = vld [vmem:[%s17431_s11 + $0x348] sm:$0xff]  ;;  %v13721_v40 = vpack.c.bf16 %v7973_v42, %v7972_v45  ;;  %v10261_v45 = vld [vmem:[%s17433_s13 + $0x1c0] sm:$0xff] }
0x1695   : > { %13658 = vmatprep.subr.bf16.mxu1 %v13657_v17  ;;  %v13669_v48 = vpack.c.bf16 %v10193_v12, %v10192_v35  ;;  %v10223_v35 = vld [vmem:[%s17433_s13 + $0xd0] sm:$0xff]  ;;  %v10224_v12 = vld [vmem:[%s17433_s13 + $0xd8] sm:$0xff] }
0x1698   : > { %13660 = vmatpush3.bf16.msra.mxu1 %v13657_v17  ;;  %v13725_v17 = vpack.c.bf16 %v7975_v4, %v7974_v3  ;;  %v10264_v3 = vld [vmem:[%s17433_s13 + $0x1d8] sm:$0xff] }
0x1699   : > { %13662 = vmatprep.subr.bf16.mxu1 %v13661_v49 }
0x169c   : > { %13664 = vmatpush3.bf16.msra.mxu1 %v13661_v49  ;;  %v13729_v49 = vpack.c.bf16 %v7977_v51, %v7976_v2  ;;  %v10270_v2 = vld [vmem:[%s17433_s13 + $0x1e8] sm:$0xff] }
0x169d   : > { %13666 = vmatprep.subr.bf16.mxu1 %v13665_v57 }
0x16a0   : > { %13668 = vmatpush3.bf16.msra.mxu1 %v13665_v57  ;;  %v13737_v57 = vpack.c.bf16 %v10222_v11, %v10221_v46  ;;  %v10271_v11 = vld [vmem:[%s17433_s13 + $0x1f0] sm:$0xff] }
0x16a1   : > { %13670 = vmatprep.subr.bf16.mxu1 %v13669_v48 }
0x16a4   : > { %13672 = vmatpush3.bf16.msra.mxu1 %v13669_v48  ;;  %v13741_v48 = vpack.c.bf16 %v10224_v12, %v10223_v35  ;;  %v13998_v35 = vld [vmem:[%s17430_s10 + $0x50] sm:$0xff] }
0x16a5   : > { %13674 = vmatprep.subr.bf16.mxu1 %v13673_v25 }
0x16a8   : > { %13676 = vmatpush3.bf16.msra.mxu1 %v13673_v25  ;;  %v13745_v25 = vpack.c.bf16 %v10226_v5, %v10225_v60  ;;  %v10274_v60 = vld [vmem:[%s17433_s13 + $0x208] sm:$0xff] }
0x16ab   : > { %12097 = vmatmul.mubr.msk.f32.vlgmr.msra.gmra.mrb[222].mxu1 %vm6179_vm7, %v16782_v61  ;;  %v10204_v61 = vld [vmem:[%s17433_s13 + $0x68] sm:$0xff] }
0x16ac   : > { %12307 = vmatprep.mubr.msk.f32.mxu1 %vm6263_vm8, %v16590_v34  ;;  %v10203_v34 = vld [vmem:[%s17433_s13 + $0x60] sm:$0xff] }
0x16ad   : > { %v13685_v50 = vpack.c.bf16 %v10204_v61, %v10203_v34 }
0x177e   : > { %v12098_v31 = vpop.f32.mrb[222].mxu1 }
0x177f   : > { %v7884_v10 = vadd.f32 %v12098_v31, %v10198_v6  ;;  %v7865_v13 = vpop.f32.mrb[223].mxu1 }
0x1780   : > { %v7883_v8 = vadd.f32 %v10198_v6, %v7865_v13  ;;  %v10228_v6 = vld [vmem:[%s17433_s13 + $0xf8] sm:$0xff] }
0x1781   : > { %vm7886_vm9 = vcmp.ge.f32.partialorder %v7884_v10, 0.0  ;;  %v7888_v18 = vmul.f32 0.01, %v7884_v10 }
0x1782   : > { %vm7885_vm10 = vcmp.ge.f32.partialorder %v7883_v8, 0.0  ;;  %v7887_v63 = vmul.f32 0.01, %v7883_v8 }
0x1783   : > { %v7890_v20 = vsel %vm7886_vm9, %v7884_v10, %v7888_v18  ;;  %v10229_v10 = vld [vmem:[%s17433_s13 + $0x100] sm:$0xff]  ;;  %v10232_v18 = vld [vmem:[%s17433_s13 + $0x118] sm:$0xff] }
0x1784   : > { %v7889_v27 = vsel %vm7885_vm10, %v7883_v8, %v7887_v63  ;;  %v10231_v8 = vld [vmem:[%s17433_s13 + $0x110] sm:$0xff] }
0x1785   : > { %v16999_v37 = vpack.c.bf16 %v7890_v20, %v7889_v27  ;;  %v13757_v63 = vpack.c.bf16 %v10232_v18, %v10231_v8  ;;  %v10237_v20 = vld [vmem:[%s17433_s13 + $0x120] sm:$0xff]  ;;  %v10238_v27 = vld [vmem:[%s17433_s13 + $0x128] sm:$0xff]  ;;  %v10280_v8 = vld [vmem:[%s17433_s13 + $0x238] sm:$0xff] }
0x1787   : > { %13678 = vmatprep.subr.bf16.mxu0 %v16999_v37  ;;  %13846 = vmatprep.subr.bf16.mxu1 %v16999_v37 }
0x1788   : > { %13680 = vmatpush3.bf16.msra.mxu0 %v16999_v37  ;;  %13848 = vmatpush3.bf16.msra.mxu1 %v16999_v37 }
0x1789   : > { %13682 = vmatprep.subr.bf16.mxu0 %v16999_v37  ;;  %13874 = vmatprep.subr.bf16.mxu1 %v16999_v37 }
0x178b   : > { %12104 = vmatmul.mubr.msk.f32.vlgmr.msra.gmra.mrb[196].mxu0 %vm6263_vm8, %v16503_v23  ;;  %12308 = vmatmul.mubr.msk.f32.vlgmr.msra.gmra.mrb[224].mxu1 %vm6263_vm8, %v16605_v44  ;;  %v10207_v23 = vld [vmem:[%s17433_s13 + $0x80] sm:$0xff]  ;;  %v10208_v44 = vld [vmem:[%s17433_s13 + $0x88] sm:$0xff] }
0x178c   : > { %13684 = vmatpush3.bf16.msra.mxu0 %v16999_v37  ;;  %13876 = vmatpush3.bf16.msra.mxu1 %v16999_v37 }
0x178d   : > { %13902 = vmatprep.subr.bf16.mxu1 %v16999_v37  ;;  %12110 = vmatprep.mubr.msk.f32.mxu0 %vm6263_vm8, %v16515_v29  ;;  %v13693_v29 = vpack.c.bf16 %v10208_v44, %v10207_v23  ;;  %v10241_v23 = vld [vmem:[%s17433_s13 + $0x140] sm:$0xff]  ;;  %v10242_v44 = vld [vmem:[%s17433_s13 + $0x148] sm:$0xff] }
0x178e   : > { %12341 = vmatprep.mubr.msk.f32.mxu1 %vm6263_vm8, %v16611_v33  ;;  %13686 = vmatprep.subr.bf16.mxu0 %v13685_v50  ;;  %v10209_v33 = vld [vmem:[%s17433_s13 + $0x90] sm:$0xff] }
0x178f   : > { %12111 = vmatmul.mubr.msk.f32.vlgmr.msra.gmra.mrb[198].mxu0 %vm6263_vm8, %v16537_v15  ;;  %12342 = vmatmul.mubr.msk.f32.vlgmr.msra.gmra.mrb[226].mxu1 %vm6263_vm8, %v16621_v26  ;;  %v13697_v15 = vpack.c.bf16 %v10210_v56, %v10209_v33  ;;  %v10211_v26 = vld [vmem:[%s17433_s13 + $0xa0] sm:$0xff]  ;;  %v10244_v33 = vld [vmem:[%s17433_s13 + $0x158] sm:$0xff] }
0x1790   : > { %13904 = vmatpush3.bf16.msra.mxu1 %v16999_v37  ;;  %13688 = vmatpush3.bf16.msra.mxu0 %v13685_v50  ;;  %v13765_v50 = vpack.c.bf16 %v10238_v27, %v10237_v20  ;;  %v10286_v20 = vld [vmem:[%s17433_s13 + $0x248] sm:$0xff] }
0x1791   : > { %13690 = vmatprep.subr.bf16.mxu0 %v13689_v39  ;;  %12375 = vmatprep.mubr.msk.f32.mxu1 %vm6263_vm8, %v16627_v24  ;;  %v10212_v24 = vld [vmem:[%s17433_s13 + $0xa8] sm:$0xff] }
0x1792   : > { %v13701_v58 = vpack.c.bf16 %v10212_v24, %v10211_v26  ;;  %v10247_v24 = vld [vmem:[%s17433_s13 + $0x170] sm:$0xff] }
0x1793   : > { %12376 = vmatmul.mubr.msk.f32.vlgmr.msra.gmra.mrb[228].mxu1 %vm6263_vm8, %v16637_v53  ;;  %v10213_v53 = vld [vmem:[%s17433_s13 + $0xb0] sm:$0xff] }
0x1794   : > { %13692 = vmatpush3.bf16.msra.mxu0 %v13689_v39  ;;  %v13705_v62 = vpack.c.bf16 %v10214_v9, %v10213_v53  ;;  %v13769_v39 = vpack.c.bf16 %v10240_v1, %v10239_v38  ;;  %v10253_v9 = vld [vmem:[%s17433_s13 + $0x180] sm:$0xff] }
0x1795   : > { %13694 = vmatprep.subr.bf16.mxu0 %v13693_v29 }
0x1798   : > { %13696 = vmatpush3.bf16.msra.mxu0 %v13693_v29  ;;  %v13773_v29 = vpack.c.bf16 %v10242_v44, %v10241_v23  ;;  %v10287_v23 = vld [vmem:[%s17433_s13 + $0x250] sm:$0xff]  ;;  %v10288_v44 = vld [vmem:[%s17433_s13 + $0x258] sm:$0xff] }
0x1799   : > { %13698 = vmatprep.subr.bf16.mxu0 %v13697_v15 }
0x179c   : > { %13700 = vmatpush3.bf16.msra.mxu0 %v13697_v15  ;;  %v10245_v15 = vld [vmem:[%s17433_s13 + $0x160] sm:$0xff] }
0x179d   : > { %13702 = vmatprep.subr.bf16.mxu0 %v13701_v58 }
0x17a0   : > { %13704 = vmatpush3.bf16.msra.mxu0 %v13701_v58  ;;  %v10248_v58 = vld [vmem:[%s17433_s13 + $0x178] sm:$0xff] }
0x17a1   : > { %13706 = vmatprep.subr.bf16.mxu0 %v13705_v62  ;;  %v13785_v53 = vpack.c.bf16 %v10248_v58, %v10247_v24  ;;  %v10292_v24 = vld [vmem:[%s17433_s13 + $0x278] sm:$0xff] }
0x17a4   : > { %13708 = vmatpush3.bf16.msra.mxu0 %v13705_v62  ;;  %v10254_v62 = vld [vmem:[%s17433_s13 + $0x188] sm:$0xff] }
0x17a5   : > { %13710 = vmatprep.subr.bf16.mxu0 %v13709_v36 }
0x185e   : > { %v12105_v54 = vpop.f32.mrb[196].mxu0 }
0x185f   : > { %v7957_v55 = vpop.f32.mrb[197].mxu0 }
0x1862   : > { %v12112_v41 = vpop.f32.mrb[198].mxu0 }
0x1863   : > { %v8044_v30 = vpop.f32.mrb[199].mxu0 }
0x1864   : > { %12137 = vmatprep.mubr.msk.f32.mxu0 %vm6179_vm7, %v8044_v30  ;;  %v10258_v30 = vld [vmem:[%s17433_s13 + $0x1a8] sm:$0xff] }
0x1865   : > { %12138 = vmatmul.mubr.msk.f32.vlgmr.msra.gmra.mrb[200].mxu0 %vm6179_vm7, %v12112_v41  ;;  %v10257_v41 = vld [vmem:[%s17433_s13 + $0x1a0] sm:$0xff] }
0x1866   : > { %13712 = vmatpush3.bf16.msra.mxu0 %v13709_v36  ;;  %12164 = vmatprep.mubr.msk.f32.mxu0 %vm6179_vm7, %v7957_v55  ;;  %v13793_v36 = vpack.c.bf16 %v10254_v62, %v10253_v9  ;;  %v10256_v55 = vld [vmem:[%s17433_s13 + $0x198] sm:$0xff]  ;;  %v10294_v9 = vld [vmem:[%s17433_s13 + $0x288] sm:$0xff] }
0x1867   : > { %13714 = vmatprep.subr.bf16.mxu0 %v13713_v43 }
0x186a   : > { %13716 = vmatpush3.bf16.msra.mxu0 %v13713_v43  ;;  %v13801_v43 = vpack.c.bf16 %v10258_v30, %v10257_v41  ;;  %v10304_v41 = vld [vmem:[%s17433_s13 + $0x2b8] sm:$0xff] }
0x186b   : > { %13718 = vmatprep.subr.bf16.mxu0 %v13717_v0 }
0x186e   : > { %13720 = vmatpush3.bf16.msra.mxu0 %v13717_v0  ;;  %v13805_v0 = vpack.c.bf16 %v10260_v59, %v10259_v32  ;;  %v10306_v32 = vld [vmem:[%s17433_s13 + $0x2c8] sm:$0xff] }
0x186f   : > { %13722 = vmatprep.subr.bf16.mxu0 %v13721_v40 }
0x1872   : > { %13724 = vmatpush3.bf16.msra.mxu0 %v13721_v40  ;;  %v10263_v40 = vld [vmem:[%s17433_s13 + $0x1d0] sm:$0xff] }
0x1873   : > { %13726 = vmatprep.subr.bf16.mxu0 %v13725_v17  ;;  %v13813_v4 = vpack.c.bf16 %v10264_v3, %v10263_v40  ;;  %v10310_v40 = vld [vmem:[%s17433_s13 + $0x2e8] sm:$0xff] }
0x1876   : > { %13728 = vmatpush3.bf16.msra.mxu0 %v13725_v17  ;;  %v10269_v17 = vld [vmem:[%s17433_s13 + $0x1e0] sm:$0xff] }
0x1877   : > { %13730 = vmatprep.subr.bf16.mxu0 %v13729_v49  ;;  %v13821_v46 = vpack.c.bf16 %v10270_v2, %v10269_v17  ;;  %v10312_v17 = vld [vmem:[%s17433_s13 + $0x2f8] sm:$0xff] }
0x187a   : > { %13732 = vmatpush3.bf16.msra.mxu0 %v13729_v49 }
0x187b   : > { %13734 = vmatprep.subr.bf16.mxu0 %v16999_v37 }
0x187d   : > { %12165 = vmatmul.mubr.msk.f32.vlgmr.msra.gmra.mrb[200].mxu0 %vm6179_vm7, %v12105_v54  ;;  %v10255_v54 = vld [vmem:[%s17433_s13 + $0x190] sm:$0xff] }
0x187e   : > { %13736 = vmatpush3.bf16.msra.mxu0 %v16999_v37  ;;  %12171 = vmatprep.mubr.msk.f32.mxu0 %vm6263_vm8, %v16484_v7  ;;  %v10227_v7 = vld [vmem:[%s17433_s13 + $0xf0] sm:$0xff]  ;;  %v13797_v52 = vpack.c.bf16 %v10256_v55, %v10255_v54  ;;  %v10301_v54 = vld [vmem:[%s17433_s13 + $0x2a0] sm:$0xff]  ;;  %v10302_v55 = vld [vmem:[%s17433_s13 + $0x2a8] sm:$0xff] }
0x187f   : > { %13738 = vmatprep.subr.bf16.mxu0 %v13737_v57  ;;  %v13749_v31 = vpack.c.bf16 %v10228_v6, %v10227_v7  ;;  %v10276_v7 = vld [vmem:[%s17433_s13 + $0x218] sm:$0xff] }
0x1881   : > { %12172 = vmatmul.mubr.msk.f32.vlgmr.msra.gmra.mrb[202].mxu0 %vm6263_vm8, %v16508_v47  ;;  %v10230_v47 = vld [vmem:[%s17433_s13 + $0x108] sm:$0xff] }
0x1882   : > { %13740 = vmatpush3.bf16.msra.mxu0 %v13737_v57  ;;  %v13753_v13 = vpack.c.bf16 %v10230_v47, %v10229_v10  ;;  %v10272_v57 = vld [vmem:[%s17433_s13 + $0x1f8] sm:$0xff]  ;;  %v10278_v10 = vld [vmem:[%s17433_s13 + $0x228] sm:$0xff] }
0x1883   : > { %13742 = vmatprep.subr.bf16.mxu0 %v13741_v48  ;;  %v13825_v12 = vpack.c.bf16 %v10272_v57, %v10271_v11  ;;  %v10319_v11 = vld [vmem:[%s17433_s13 + $0x310] sm:$0xff]  ;;  %v10320_v57 = vld [vmem:[%s17433_s13 + $0x318] sm:$0xff] }
0x1886   : > { %13744 = vmatpush3.bf16.msra.mxu0 %v13741_v48  ;;  %v10273_v48 = vld [vmem:[%s17433_s13 + $0x200] sm:$0xff] }
0x1887   : > { %13746 = vmatprep.subr.bf16.mxu0 %v13745_v25  ;;  %v13829_v5 = vpack.c.bf16 %v10274_v60, %v10273_v48  ;;  %v10322_v48 = vld [vmem:[%s17433_s13 + $0x328] sm:$0xff] }
0x188a   : > { %13748 = vmatpush3.bf16.msra.mxu0 %v13745_v25  ;;  %v10275_v25 = vld [vmem:[%s17433_s13 + $0x210] sm:$0xff] }
0x188b   : > { %13750 = vmatprep.subr.bf16.mxu0 %v13749_v31  ;;  %v13833_v6 = vpack.c.bf16 %v10276_v7, %v10275_v25  ;;  %v10325_v7 = vld [vmem:[%s17433_s13 + $0x340] sm:$0xff] }
0x188e   : > { %13752 = vmatpush3.bf16.msra.mxu0 %v13749_v31  ;;  %v10277_v31 = vld [vmem:[%s17433_s13 + $0x220] sm:$0xff] }
0x188f   : > { %13754 = vmatprep.subr.bf16.mxu0 %v13753_v13  ;;  %v13837_v47 = vpack.c.bf16 %v10278_v10, %v10277_v31  ;;  %v10327_v10 = vld [vmem:[%s17433_s13 + $0x350] sm:$0xff] }
0x1892   : > { %13756 = vmatpush3.bf16.msra.mxu0 %v13753_v13  ;;  %v10279_v13 = vld [vmem:[%s17433_s13 + $0x230] sm:$0xff] }
0x1893   : > { %13758 = vmatprep.subr.bf16.mxu0 %v13757_v63  ;;  %v13841_v18 = vpack.c.bf16 %v10280_v8, %v10279_v13  ;;  %v10331_v8 = vld [vmem:[%s17434_s14] ss:$0 sm:$0xff] }
0x1896   : > { %13760 = vmatpush3.bf16.msra.mxu0 %v13757_v63  ;;  %v10285_v63 = vld [vmem:[%s17433_s13 + $0x240] sm:$0xff] }
0x1897   : > { %13762 = vmatprep.subr.bf16.mxu0 %v16999_v37  ;;  %v13849_v27 = vpack.c.bf16 %v10286_v20, %v10285_v63 }
0x1954   : > { %v12173_v34 = vpop.f32.mrb[202].mxu0 }
0x1955   : > { %v8294_v61 = vpop.f32.mrb[203].mxu0 }
0x1956   : > { %12198 = vmatprep.mubr.msk.f32.mxu0 %vm6179_vm7, %v8294_v61 }
0x1957   : > { %12199 = vmatmul.mubr.msk.f32.vlgmr.msra.gmra.mrb[200].mxu0 %vm6179_vm7, %v12173_v34  ;;  %v12309_v34 = vpop.f32.mrb[224].mxu1 }
0x1958   : > { %13764 = vmatpush3.bf16.msra.mxu0 %v16999_v37  ;;  %12205 = vmatprep.mubr.msk.f32.mxu0 %vm6263_vm8, %v16524_v22  ;;  %v10243_v22 = vld [vmem:[%s17433_s13 + $0x150] sm:$0xff]  ;;  %v8978_v61 = vpop.f32.mrb[225].mxu1 }
0x1959   : > { %13766 = vmatprep.subr.bf16.mxu0 %v13765_v50  ;;  %v13777_v56 = vpack.c.bf16 %v10244_v33, %v10243_v22  ;;  %v13853_v33 = vpack.c.bf16 %v10288_v44, %v10287_v23 }
0x195b   : > { %12206 = vmatmul.mubr.msk.f32.vlgmr.msra.gmra.mrb[204].mxu0 %vm6263_vm8, %v16542_v19  ;;  %v10246_v19 = vld [vmem:[%s17433_s13 + $0x168] sm:$0xff] }
0x195c   : > { %13768 = vmatpush3.bf16.msra.mxu0 %v13765_v50  ;;  %v13781_v26 = vpack.c.bf16 %v10246_v19, %v10245_v15  ;;  %v17289_v50 = vpop.f32.mrb[226].mxu1  ;;  %v10290_v15 = vld [vmem:[%s17433_s13 + $0x268] sm:$0xff] }
0x195d   : > { %13770 = vmatprep.subr.bf16.mxu0 %v13769_v39  ;;  %v9149_v38 = vpop.f32.mrb[227].mxu1 }
0x195e   : > { %v17291_v1 = vpop.f32.mrb[228].mxu1 }
0x1960   : > { %13772 = vmatpush3.bf16.msra.mxu0 %v13769_v39  ;;  %v17293_v39 = vpop.f32.mrb[229].mxu1 }
0x1961   : > { %13774 = vmatprep.subr.bf16.mxu0 %v13773_v29 }
0x1964   : > { %13776 = vmatpush3.bf16.msra.mxu0 %v13773_v29 }
0x1965   : > { %13778 = vmatprep.subr.bf16.mxu0 %v13777_v56 }
0x1968   : > { %13780 = vmatpush3.bf16.msra.mxu0 %v13777_v56  ;;  %v10289_v56 = vld [vmem:[%s17433_s13 + $0x260] sm:$0xff] }
0x1969   : > { %13782 = vmatprep.subr.bf16.mxu0 %v13781_v26  ;;  %v13857_v19 = vpack.c.bf16 %v10290_v15, %v10289_v56 }
0x196c   : > { %13784 = vmatpush3.bf16.msra.mxu0 %v13781_v26  ;;  %v10291_v26 = vld [vmem:[%s17433_s13 + $0x270] sm:$0xff] }
0x196d   : > { %13786 = vmatprep.subr.bf16.mxu0 %v13785_v53  ;;  %v13861_v58 = vpack.c.bf16 %v10292_v24, %v10291_v26 }
0x1970   : > { %13788 = vmatpush3.bf16.msra.mxu0 %v13785_v53  ;;  %v10293_v53 = vld [vmem:[%s17433_s13 + $0x280] sm:$0xff] }
0x1971   : > { %13790 = vmatprep.subr.bf16.mxu0 %v16999_v37  ;;  %v13865_v62 = vpack.c.bf16 %v10294_v9, %v10293_v53 }
0x1a2e   : > { %v12207_v14 = vpop.f32.mrb[204].mxu0 }
0x1a2f   : > { %v8465_v16 = vpop.f32.mrb[205].mxu0 }
0x1a30   : > { %12232 = vmatprep.mubr.msk.f32.mxu0 %vm6179_vm7, %v8465_v16  ;;  %v10296_v16 = vld [vmem:[%s17433_s13 + $0x298] sm:$0xff] }
0x1a31   : > { %12233 = vmatmul.mubr.msk.f32.vlgmr.msra.gmra.mrb[200].mxu0 %vm6179_vm7, %v12207_v14  ;;  %v10295_v14 = vld [vmem:[%s17433_s13 + $0x290] sm:$0xff] }
0x1a32   : > { %13792 = vmatpush3.bf16.msra.mxu0 %v16999_v37  ;;  %12239 = vmatprep.mubr.msk.f32.mxu0 %vm6263_vm8, %v13997_v28  ;;  %v13877_v28 = vpack.c.bf16 %v10302_v55, %v10301_v54 }
0x1a33   : > { %13794 = vmatprep.subr.bf16.mxu0 %v13793_v36 }
0x1a35   : > { %12240 = vmatmul.mubr.msk.f32.vlgmr.msra.gmra.mrb[206].mxu0 %vm6263_vm8, %v16567_v21  ;;  %v10262_v21 = vld [vmem:[%s17433_s13 + $0x1c8] sm:$0xff] }
0x1a36   : > { %13796 = vmatpush3.bf16.msra.mxu0 %v13793_v36  ;;  %v13809_v42 = vpack.c.bf16 %v10262_v21, %v10261_v45  ;;  %v13869_v36 = vpack.c.bf16 %v10296_v16, %v10295_v14  ;;  %v10308_v45 = vld [vmem:[%s17433_s13 + $0x2d8] sm:$0xff] }
0x1a37   : > { %13798 = vmatprep.subr.bf16.mxu0 %v13797_v52 }
0x1a3a   : > { %13800 = vmatpush3.bf16.msra.mxu0 %v13797_v52  ;;  %v10303_v52 = vld [vmem:[%s17433_s13 + $0x2b0] sm:$0xff] }
0x1a3b   : > { %13802 = vmatprep.subr.bf16.mxu0 %v13801_v43  ;;  %v13881_v30 = vpack.c.bf16 %v10304_v41, %v10303_v52 }
0x1a3e   : > { %13804 = vmatpush3.bf16.msra.mxu0 %v13801_v43  ;;  %v10305_v43 = vld [vmem:[%s17433_s13 + $0x2c0] sm:$0xff] }
0x1a3f   : > { %13806 = vmatprep.subr.bf16.mxu0 %v13805_v0  ;;  %v13885_v59 = vpack.c.bf16 %v10306_v32, %v10305_v43 }
0x1a42   : > { %13808 = vmatpush3.bf16.msra.mxu0 %v13805_v0  ;;  %v10307_v0 = vld [vmem:[%s17433_s13 + $0x2d0] sm:$0xff] }
0x1a43   : > { %13810 = vmatprep.subr.bf16.mxu0 %v13809_v42  ;;  %v13889_v21 = vpack.c.bf16 %v10308_v45, %v10307_v0 }
0x1a46   : > { %13812 = vmatpush3.bf16.msra.mxu0 %v13809_v42  ;;  %v10309_v42 = vld [vmem:[%s17433_s13 + $0x2e0] sm:$0xff] }
0x1a47   : > { %13814 = vmatprep.subr.bf16.mxu0 %v13813_v4  ;;  %v13893_v3 = vpack.c.bf16 %v10310_v40, %v10309_v42 }
0x1a4a   : > { %13816 = vmatpush3.bf16.msra.mxu0 %v13813_v4  ;;  %v10311_v4 = vld [vmem:[%s17433_s13 + $0x2f0] sm:$0xff] }
0x1a4b   : > { %13818 = vmatprep.subr.bf16.mxu0 %v16999_v37  ;;  %v13897_v2 = vpack.c.bf16 %v10312_v17, %v10311_v4 }
0x1b08   : > { %v12241_v51 = vpop.f32.mrb[206].mxu0 }
0x1b09   : > { %v8636_v49 = vpop.f32.mrb[207].mxu0 }
0x1b0a   : > { %12266 = vmatprep.mubr.msk.f32.mxu0 %vm6179_vm7, %v8636_v49  ;;  %v10318_v49 = vld [vmem:[%s17433_s13 + $0x308] sm:$0xff] }
0x1b0b   : > { %12267 = vmatmul.mubr.msk.f32.vlgmr.msra.gmra.mrb[200].mxu0 %vm6179_vm7, %v12241_v51  ;;  %v10317_v51 = vld [vmem:[%s17433_s13 + $0x300] sm:$0xff] }
0x1b0c   : > { %13820 = vmatpush3.bf16.msra.mxu0 %v16999_v37  ;;  %12273 = vmatprep.mubr.msk.f32.mxu0 %vm6263_vm8, %v13998_v35  ;;  %v13999_v37 = vld [vmem:[%s17430_s10 + $0x58] sm:$0xff]  ;;  %v13909_v35 = vpack.c.bf16 %v10320_v57, %v10319_v11 }
0x1b0d   : > { %13822 = vmatprep.subr.bf16.mxu0 %v13821_v46 }
0x1b0f   : > { %12274 = vmatmul.mubr.msk.f32.vlgmr.msra.gmra.mrb[208].mxu0 %vm6263_vm8, %v13999_v37  ;;  %v10323_v37 = vld [vmem:[%s17433_s13 + $0x330] sm:$0xff] }
0x1b10   : > { %13824 = vmatpush3.bf16.msra.mxu0 %v13821_v46  ;;  %v13905_v46 = vpack.c.bf16 %v10318_v49, %v10317_v51 }
0x1b11   : > { %13826 = vmatprep.subr.bf16.mxu0 %v13825_v12 }
0x1b14   : > { %13828 = vmatpush3.bf16.msra.mxu0 %v13825_v12  ;;  %v10321_v12 = vld [vmem:[%s17433_s13 + $0x320] sm:$0xff] }
0x1b15   : > { %13830 = vmatprep.subr.bf16.mxu0 %v13829_v5  ;;  %v13913_v60 = vpack.c.bf16 %v10322_v48, %v10321_v12 }
0x1b18   : > { %13832 = vmatpush3.bf16.msra.mxu0 %v13829_v5  ;;  %v10324_v5 = vld [vmem:[%s17433_s13 + $0x338] sm:$0xff] }
0x1b19   : > { %13834 = vmatprep.subr.bf16.mxu0 %v13833_v6  ;;  %v13917_v25 = vpack.c.bf16 %v10324_v5, %v10323_v37 }
0x1b1c   : > { %13836 = vmatpush3.bf16.msra.mxu0 %v13833_v6  ;;  %v10326_v6 = vld [vmem:[%s17433_s13 + $0x348] sm:$0xff] }
0x1b1d   : > { %13838 = vmatprep.subr.bf16.mxu0 %v13837_v47  ;;  %v13921_v31 = vpack.c.bf16 %v10326_v6, %v10325_v7 }
0x1b20   : > { %13840 = vmatpush3.bf16.msra.mxu0 %v13837_v47  ;;  %v10328_v47 = vld [vmem:[%s17433_s13 + $0x358] sm:$0xff] }
0x1b21   : > { %13842 = vmatprep.subr.bf16.mxu0 %v13841_v18  ;;  %v13925_v13 = vpack.c.bf16 %v10328_v47, %v10327_v10 }
0x1b24   : > { %13844 = vmatpush3.bf16.msra.mxu0 %v13841_v18 }
0x1b25   : > { %13850 = vmatprep.subr.bf16.mxu0 %v13849_v27 }
0x1be2   : > { %v12275_v29 = vpop.f32.mrb[208].mxu0 }
0x1be3   : > { %v8807_v22 = vpop.f32.mrb[209].mxu0 }
0x1be4   : > { %12300 = vmatprep.mubr.msk.f32.mxu0 %vm6179_vm7, %v8807_v22 }
0x1be5   : > { %12301 = vmatmul.mubr.msk.f32.vlgmr.msra.gmra.mrb[200].mxu0 %vm6179_vm7, %v12275_v29 }
0x1be6   : > { %13852 = vmatpush3.bf16.msra.mxu0 %v13849_v27  ;;  %12334 = vmatprep.mubr.msk.f32.mxu0 %vm6179_vm7, %v8978_v61 }
0x1be7   : > { %13854 = vmatprep.subr.bf16.mxu0 %v13853_v33 }
0x1bea   : > { %13856 = vmatpush3.bf16.msra.mxu0 %v13853_v33 }
0x1beb   : > { %13858 = vmatprep.subr.bf16.mxu0 %v13857_v19 }
0x1bee   : > { %13860 = vmatpush3.bf16.msra.mxu0 %v13857_v19 }
0x1bef   : > { %13862 = vmatprep.subr.bf16.mxu0 %v13861_v58 }
0x1bf2   : > { %13864 = vmatpush3.bf16.msra.mxu0 %v13861_v58 }
0x1bf3   : > { %13866 = vmatprep.subr.bf16.mxu0 %v13865_v62 }
0x1bf6   : > { %13868 = vmatpush3.bf16.msra.mxu0 %v13865_v62 }
0x1bf7   : > { %13870 = vmatprep.subr.bf16.mxu0 %v13869_v36 }
0x1bfa   : > { %13872 = vmatpush3.bf16.msra.mxu0 %v13869_v36 }
0x1bfb   : > { %13878 = vmatprep.subr.bf16.mxu0 %v13877_v28 }
0x1bfd   : > { %12335 = vmatmul.mubr.msk.f32.vlgmr.msra.gmra.mrb[200].mxu0 %vm6179_vm7, %v12309_v34 }
0x1bfe   : > { %13880 = vmatpush3.bf16.msra.mxu0 %v13877_v28  ;;  %12368 = vmatprep.mubr.msk.f32.mxu0 %vm6179_vm7, %v9149_v38 }
0x1bff   : > { %13882 = vmatprep.subr.bf16.mxu0 %v13881_v30 }
0x1c02   : > { %13884 = vmatpush3.bf16.msra.mxu0 %v13881_v30 }
0x1c03   : > { %13886 = vmatprep.subr.bf16.mxu0 %v13885_v59 }
0x1c06   : > { %13888 = vmatpush3.bf16.msra.mxu0 %v13885_v59 }
0x1c07   : > { %13890 = vmatprep.subr.bf16.mxu0 %v13889_v21 }
0x1c0a   : > { %13892 = vmatpush3.bf16.msra.mxu0 %v13889_v21 }
0x1c0b   : > { %13894 = vmatprep.subr.bf16.mxu0 %v13893_v3 }
0x1c0e   : > { %13896 = vmatpush3.bf16.msra.mxu0 %v13893_v3 }
0x1c0f   : > { %13898 = vmatprep.subr.bf16.mxu0 %v13897_v2 }
0x1c12   : > { %13900 = vmatpush3.bf16.msra.mxu0 %v13897_v2 }
0x1c13   : > { %13906 = vmatprep.subr.bf16.mxu0 %v13905_v46 }
0x1c15   : > { %12369 = vmatmul.mubr.msk.f32.vlgmr.msra.gmra.mrb[200].mxu0 %vm6179_vm7, %v17289_v50 }
0x1c16   : > { %13908 = vmatpush3.bf16.msra.mxu0 %v13905_v46  ;;  %12402 = vmatprep.mubr.msk.f32.mxu0 %vm6179_vm7, %v17293_v39 }
0x1c17   : > { %13910 = vmatprep.subr.bf16.mxu0 %v13909_v35 }
0x1c1a   : > { %13912 = vmatpush3.bf16.msra.mxu0 %v13909_v35 }
0x1c1b   : > { %13914 = vmatprep.subr.bf16.mxu0 %v13913_v60 }
0x1c1e   : > { %13916 = vmatpush3.bf16.msra.mxu0 %v13913_v60 }
0x1c1f   : > { %13918 = vmatprep.subr.bf16.mxu0 %v13917_v25 }
0x1c22   : > { %13920 = vmatpush3.bf16.msra.mxu0 %v13917_v25 }
0x1c23   : > { %13922 = vmatprep.subr.bf16.mxu0 %v13921_v31 }
0x1c26   : > { %13924 = vmatpush3.bf16.msra.mxu0 %v13921_v31 }
0x1c27   : > { %13926 = vmatprep.subr.bf16.mxu0 %v13925_v13 }
0x1c2a   : > { %13928 = vmatpush3.bf16.msra.mxu0 %v13925_v13 }
0x1c2d   : > { %12403 = vmatmul.mubr.msk.f32.vlgmr.msra.gmra.mrb[200].mxu0 %vm6179_vm7, %v17291_v1 }
0x1d00   : > { %v12404_v18 = vpop.f32.mrb[200].mxu0 }
0x1d01   : > { %v9433_v63 = vadd.f32 %v12404_v18, %v10331_v8  ;;  %v9414_v20 = vpop.f32.mrb[201].mxu0 }
0x1d02   : > { %v9432_v27 = vadd.f32 %v10331_v8, %v9414_v20 }
0x1d03   : > { %vm9435_vm11 = vcmp.ge.f32.partialorder %v9433_v63, 0.0  ;;  %v9437_v34 = vmul.f32 0.01, %v9433_v63 }
0x1d04   : > { %vm9434_vm12 = vcmp.ge.f32.partialorder %v9432_v27, 0.0  ;;  %v9436_v61 = vmul.f32 0.01, %v9432_v27 }
0x1d05   : > { %v9439_v50 = vsel %vm9435_vm11, %v9433_v63, %v9437_v34 }
0x1d06   : > { %9441 = vst.msk [vmem:[%s494_s22 + $0x8] sm:$0xff] %vm6179_vm7, %v9439_v50  ;;  %v9438_v38 = vsel %vm9434_vm12, %v9432_v27, %v9436_v61 }
0x1d07   : > { %9440 = vst.msk [vmem:[%s494_s22] sm:$0xff] %vm6179_vm7, %v9438_v38 }
0x1d08 PF: > { %s25_s18 = sadd.s32 1, %s14006_s18  }
0x1d09   : > { %p22_p4 = scmp.ge.s32.totalorder %s25_s18, 4  }
0x1d0b   :  { %24 = sbr.rel (!%p22_p4) target bundleno = 1 (0x1), region = 180 }

</bundles_post_ra>
